<compile_context>
chip_gen: v7x
topology: tpu7x:2x2x1
jax: 0.10.0
libtpu: 0.0.40
codegen_flags: <defaults>
</compile_context>

<pallas_src>
import functools
import math

import jax
import jax.numpy as jnp
from jax.experimental import pallas as pl
from jax.experimental.pallas import tpu as pltpu

NEG_SLOPE = 0.01  # F.leaky_relu default


# ----------------------------------------------------------------------------
# helpers
# ----------------------------------------------------------------------------
def _round_up(x, m):
    return (x + m - 1) // m * m


def _choose_row_tile(m, max_tile=256):
    """Row (M) tile: multiple of 8, <= max_tile, dividing the padded M."""
    m8 = _round_up(max(m, 1), 8)
    if m8 <= max_tile:
        return m8, m8
    for t in range(max_tile, 7, -8):
        if m8 % t == 0:
            return t, m8
    return max_tile, _round_up(m8, max_tile)  # unreachable (8 always divides)


def _choose_k_tile(k, max_tile=512):
    """K tile: multiple of 128, <= max_tile, dividing the padded K."""
    k_pad = _round_up(max(k, 1), 128)
    for t in range(max_tile, 127, -128):
        if k_pad % t == 0:
            return t, k_pad
    return 128, k_pad  # unreachable (128 always divides)


# ----------------------------------------------------------------------------
# the one Pallas kernel: tiled GEMM + bias + activation
# ----------------------------------------------------------------------------
def _linear_act_kernel(x_ref, w_ref, b_ref, o_ref, acc_ref, *, act):
    @pl.when(pl.program_id(2) == 0)
    def _():
        acc_ref[...] = jnp.zeros_like(acc_ref)

    acc_ref[...] += jnp.dot(
        x_ref[...], w_ref[...], preferred_element_type=jnp.float32
    )

    @pl.when(pl.program_id(2) == pl.num_programs(2) - 1)
    def _():
        z = acc_ref[...] + b_ref[...]
        if act == "leaky_relu":
            z = jnp.where(z > 0, z, NEG_SLOPE * z)
        elif act == "scaled_tanh":
            z = 0.5 * jnp.tanh(z) + 0.5
        o_ref[...] = z.astype(o_ref.dtype)


def fused_linear(x, w, b, *, act="leaky_relu",
                 max_row_tile=256, max_k_tile=512, lane_tile=128):
    """act(x[:, :Kw] @ w + b), lane-padded.

    x : (M, Kx) float32, Kx >= Kw (extra trailing columns are ignored because
        the weight is zero-row padded up to Kx).
    w : (Kw, N) float32   (i.e. transpose of PyTorch nn.Linear weight)
    b : (N,)   float32
    Returns (M_pad, N_pad) float32 with M_pad = round-up of M to the row tile
    and N_pad = round-up of N to 128.  Caller slices [:M, :N] when needed.
    """
    if act not in ("leaky_relu", "scaled_tanh", "none"):
        raise ValueError(f"unknown act {act!r}")
    M, Kx = x.shape
    Kw, N = w.shape
    assert Kx >= Kw and b.shape == (N,)

    # Zero-row pad the weight so extra (padded) x columns contribute nothing.
    if Kx > Kw:
        w = jnp.pad(w, ((0, Kx - Kw), (0, 0)))
    K = Kx

    TM, M_pad = _choose_row_tile(M, max_row_tile)
    TK, K_pad = _choose_k_tile(K, max_k_tile)
    N_pad = _round_up(N, lane_tile)
    TN = lane_tile

    if M_pad != M:
        x = jnp.pad(x, ((0, M_pad - M), (0, 0)))
    if K_pad != K:
        x = jnp.pad(x, ((0, 0), (0, K_pad - K)))
        w = jnp.pad(w, ((0, K_pad - K), (0, 0)))
    if N_pad != N:
        w = jnp.pad(w, ((0, 0), (0, N_pad - N)))
        b = jnp.pad(b, (0, N_pad - N))
    b2 = b.reshape(1, N_pad)

    grid = (M_pad // TM, N_pad // TN, K_pad // TK)

    cost = pl.CostEstimate(
        flops=2 * M_pad * K_pad * N_pad,
        transcendentals=M_pad * N_pad if act == "scaled_tanh" else 0,
        bytes_accessed=4 * (M_pad * K_pad + K_pad * N_pad
                            + M_pad * N_pad + N_pad),
    )

    return pl.pallas_call(
        functools.partial(_linear_act_kernel, act=act),
        out_shape=jax.ShapeDtypeStruct((M_pad, N_pad), jnp.float32),
        grid_spec=pltpu.PrefetchScalarGridSpec(
            num_scalar_prefetch=0,
            grid=grid,
            in_specs=[
                pl.BlockSpec((TM, TK), lambda i, j, k: (i, k)),   # x tile
                pl.BlockSpec((TK, TN), lambda i, j, k: (k, j)),   # w tile
                pl.BlockSpec((1, TN), lambda i, j, k: (0, j)),    # bias tile
            ],
            out_specs=pl.BlockSpec((TM, TN), lambda i, j, k: (i, j)),
            scratch_shapes=[pltpu.VMEM((TM, TN), jnp.float32)],
        ),
        compiler_params=pltpu.CompilerParams(
            dimension_semantics=("parallel", "parallel", "arbitrary"),
        ),
        cost_estimate=cost,
    )(x, w, b2)


# ----------------------------------------------------------------------------
# conv = im2col (wrapper layout plumbing) + fused GEMM kernel
# ----------------------------------------------------------------------------
def _im2col(x_nchw, kh, kw, stride):
    B, C, H, W = x_nchw.shape
    Ho = (H - kh) // stride + 1
    Wo = (W - kw) // stride + 1
    taps = []
    for i in range(kh):
        for j in range(kw):
            taps.append(
                x_nchw[:, :,
                       i:i + stride * (Ho - 1) + 1:stride,
                       j:j + stride * (Wo - 1) + 1:stride])
    p = jnp.stack(taps, axis=-1)                 # (B, C, Ho, Wo, kh*kw)
    p = p.transpose(0, 2, 3, 1, 4)               # (B, Ho, Wo, C, kh*kw)
    return p.reshape(B * Ho * Wo, C * kh * kw), Ho, Wo


def conv2d_leaky(x_nchw, w_oihw, b, *, stride):
    """PyTorch Conv2d(stride, padding=0) + leaky_relu via im2col + Pallas GEMM."""
    B, C, _, _ = x_nchw.shape
    C_out, C_in, kh, kw = w_oihw.shape
    assert C == C_in
    patches, Ho, Wo = _im2col(x_nchw, kh, kw, stride)     # (B*Ho*Wo, C*kh*kw)
    w_gemm = w_oihw.reshape(C_out, C_in * kh * kw).T      # (K, C_out)
    out = fused_linear(patches, w_gemm, b, act="leaky_relu")
    out = out[:B * Ho * Wo, :C_out]                       # strip M/N padding
    return out.reshape(B, Ho, Wo, C_out).transpose(0, 3, 1, 2)  # NCHW


# ----------------------------------------------------------------------------
# Actor parameters + forward
# ----------------------------------------------------------------------------
def conv2d_size_out(size, kernel_size=5, stride=2):
    return (size - (kernel_size - 1) - 1) // stride + 1


def init_actor_params(key, height, width, channels, action_dim, control_dim):
    """nn.Conv2d / nn.Linear default-style init (uniform +-1/sqrt(fan_in)).
    Linear weights are stored (in, out) = transpose of PyTorch's (out, in)."""
    convw = conv2d_size_out(conv2d_size_out(width, 7), 5)
    convh = conv2d_size_out(conv2d_size_out(height, 7), 5)
    feat = convh * convw * 32

    def uni(k, shape, fan_in):
        bound = 1.0 / math.sqrt(fan_in)
        return jax.random.uniform(k, shape, jnp.float32, -bound, bound)

    ks = jax.random.split(key, 18)
    p = {
        "conv1_w": uni(ks[0], (16, channels, 7, 7), channels * 49),
        "conv1_b": uni(ks[1], (16,), channels * 49),
        "conv2_w": uni(ks[2], (32, 16, 5, 5), 16 * 25),
        "conv2_b": uni(ks[3], (32,), 16 * 25),
        "fc1_w": uni(ks[4], (feat, 1024), feat),
        "fc1_b": uni(ks[5], (1024,), feat),
        "fc2_w": uni(ks[6], (1024, 512), 1024),
        "fc2_b": uni(ks[7], (512,), 1024),
        "fcc1_w": uni(ks[8], (control_dim, 12), control_dim),
        "fcc1_b": uni(ks[9], (12,), control_dim),
        "fc3_w": uni(ks[10], (512 + 12, 256), 512 + 12),
        "fc3_b": uni(ks[11], (256,), 512 + 12),
        "fc4_w": uni(ks[12], (256, 128), 256),
        "fc4_b": uni(ks[13], (128,), 256),
        "fc5_w": uni(ks[14], (128, 64), 128),
        "fc5_b": uni(ks[15], (64,), 128),
        "fc6_w": uni(ks[16], (64, action_dim), 64),
        "fc6_b": uni(ks[17], (action_dim,), 64),
    }
    return p


def actor_forward(params, state, controls_state):
    """Actor.forward: conv trunk -> MLP head -> 0.5*tanh(.)+0.5."""
    B = state.shape[0]
    action_dim = params["fc6_w"].shape[1]

    # conv trunk (each conv = im2col + fused Pallas GEMM + leaky_relu)
    x = conv2d_leaky(state, params["conv1_w"], params["conv1_b"], stride=2)
    x = conv2d_leaky(x, params["conv2_w"], params["conv2_b"], stride=2)
    x = x.reshape(B, -1)                               # == x.view(B, -1), NCHW order

    # image branch
    h = fused_linear(x, params["fc1_w"], params["fc1_b"])   # (Bp, 1024)
    h = fused_linear(h, params["fc2_w"], params["fc2_b"])   # (Bp, 512)

    # controls branch (12 -> lane-padded to 128; padded cols are exactly 0)
    c = fused_linear(jnp.asarray(controls_state, jnp.float32),
                     params["fcc1_w"], params["fcc1_b"])    # (Bp, 128)

    # concat + fc3: rebuild fc3's weight rows to match the lane-padded concat
    n_img = params["fc2_w"].shape[1]       # 512
    n_ctl = params["fcc1_w"].shape[1]      # 12
    w3 = params["fc3_w"]                   # (524, 256)
    w3_full = jnp.concatenate([
        w3[:n_img],
        jnp.zeros((h.shape[1] - n_img, w3.shape[1]), w3.dtype),
        w3[n_img:],
        jnp.zeros((c.shape[1] - n_ctl, w3.shape[1]), w3.dtype),
    ], axis=0)                                              # (h+c width, 256)
    cat = jnp.concatenate([h, c], axis=1)                   # (Bp, 640)

    h = fused_linear(cat, w3_full, params["fc3_b"])         # (Bp, 256)
    h = fused_linear(h, params["fc4_w"], params["fc4_b"])   # (Bp, 128)
    h = fused_linear(h, params["fc5_w"], params["fc5_b"])   # (Bp, 128), cols 64.. = 0
    out = fused_linear(h, params["fc6_w"], params["fc6_b"],
                       act="scaled_tanh")                   # (Bp, 128)
    return out[:B, :action_dim]


# ----------------------------------------------------------------------------
# pure-JAX reference (for correctness check)
# ----------------------------------------------------------------------------
def actor_reference(params, state, controls_state):
    def leaky(v):
        return jnp.where(v > 0, v, NEG_SLOPE * v)

    x = jax.lax.conv_general_dilated(
        state, params["conv1_w"], window_strides=(2, 2), padding="VALID",
        dimension_numbers=("NCHW", "OIHW", "NCHW"))
    x = leaky(x + params["conv1_b"][None, :, None, None])
    x = jax.lax.conv_general_dilated(
        x, params["conv2_w"], window_strides=(2, 2), padding="VALID",
        dimension_numbers=("NCHW", "OIHW", "NCHW"))
    x = leaky(x + params["conv2_b"][None, :, None, None])
    x = x.reshape(x.shape[0], -1)
    x = leaky(x @ params["fc1_w"] + params["fc1_b"])
    x = leaky(x @ params["fc2_w"] + params["fc2_b"])
    y = leaky(controls_state @ params["fcc1_w"] + params["fcc1_b"])
    y = jnp.concatenate([x, y], axis=1)
    y = leaky(y @ params["fc3_w"] + params["fc3_b"])
    y = leaky(y @ params["fc4_w"] + params["fc4_b"])
    y = leaky(y @ params["fc5_w"] + params["fc5_b"])
    y = jnp.tanh(y @ params["fc6_w"] + params["fc6_b"])
    return 0.5 * y + 0.5


# ----------------------------------------------------------------------------
if __name__ == "__main__":
    key = jax.random.PRNGKey(0)
    k_params, k_state, k_ctrl = jax.random.split(key, 3)

    # Small shapes consistent with the module (Actor takes height/width args):
    # 29x29x1 image -> conv sizes 12x12 -> 4x4, feat = 4*4*32 = 512.
    HEIGHT, WIDTH, CHANNELS = 29, 29, 1
    ACTION_DIM, CONTROL_DIM = 4, 4
    BATCH = 2

    params = init_actor_params(k_params, HEIGHT, WIDTH, CHANNELS,
                               ACTION_DIM, CONTROL_DIM)
    state = jax.random.normal(k_state, (BATCH, CHANNELS, HEIGHT, WIDTH),
                              jnp.float32)
    controls = jax.random.normal(k_ctrl, (BATCH, CONTROL_DIM), jnp.float32)

    fwd = jax.jit(actor_forward)
    out = jax.block_until_ready(fwd(params, state, controls))

    ref = actor_reference(params, state, controls)
    assert out.shape == (BATCH, ACTION_DIM), out.shape
    assert bool(jnp.all(jnp.isfinite(out)))
    max_err = float(jnp.max(jnp.abs(out - ref)))
    assert max_err < 5e-3, f"max abs err vs reference: {max_err}"

    print("KERNEL_OK")
</pallas_src>

<mosaic_0001>
module attributes {stable_mosaic.version = 11 : i64} {
  func.func @_linear_act_kernel(%arg0: i32, %arg1: i32, %arg2: i32, %arg3: memref<144x128xf32, #tpu.memory_space<vmem>>, %arg4: memref<128x128xf32, #tpu.memory_space<vmem>>, %arg5: memref<1x128xf32, #tpu.memory_space<vmem>>, %arg6: memref<144x128xf32, #tpu.memory_space<vmem>>, %arg7: memref<144x128xf32, #tpu.memory_space<vmem>>) attributes {dimension_semantics = [#tpu.dimension_semantics<parallel>, #tpu.dimension_semantics<parallel>, #tpu.dimension_semantics<arbitrary>], iteration_bounds = array<i64: 2, 1, 1>, scalar_prefetch = 0 : i64, scratch_operands = 1 : i64, tpu.core_type = #tpu.core_type<tc>, window_params = [{transform_indices = @transform_0, window_bounds = array<i64: 144, 128>}, {transform_indices = @transform_1, window_bounds = array<i64: 128, 128>}, {transform_indices = @transform_2, window_bounds = array<i64: 1, 128>}, {transform_indices = @transform_3, window_bounds = array<i64: 144, 128>}]} {
    %c0_i32 = arith.constant 0 : i32
    %0 = arith.cmpi eq, %arg2, %c0_i32 : i32
    %1 = arith.extui %0 : i1 to i32
    %c0_i32_0 = arith.constant 0 : i32
    %2 = arith.cmpi ne, %1, %c0_i32_0 : i32
    scf.if %2 {
      %cst_10 = arith.constant 0.000000e+00 : f32
      %12 = vector.broadcast %cst_10 : f32 to vector<144x128xf32>
      %c0_11 = arith.constant 0 : index
      %c0_12 = arith.constant 0 : index
      %13 = vector.load %arg7[%c0_11, %c0_12] : memref<144x128xf32, #tpu.memory_space<vmem>>, vector<144x128xf32>
      tpu.vector_store %arg7[%c0_11, %c0_12], %12 {strides = array<i32>} : memref<144x128xf32, #tpu.memory_space<vmem>>, vector<144x128xf32>,
    } else {
    }
    %c0 = arith.constant 0 : index
    %c0_1 = arith.constant 0 : index
    %3 = vector.load %arg7[%c0, %c0_1] : memref<144x128xf32, #tpu.memory_space<vmem>>, vector<144x128xf32>
    %c0_2 = arith.constant 0 : index
    %c0_3 = arith.constant 0 : index
    %4 = vector.load %arg3[%c0_2, %c0_3] : memref<144x128xf32, #tpu.memory_space<vmem>>, vector<144x128xf32>
    %c0_4 = arith.constant 0 : index
    %c0_5 = arith.constant 0 : index
    %5 = vector.load %arg4[%c0_4, %c0_5] : memref<128x128xf32, #tpu.memory_space<vmem>>, vector<128x128xf32>
    %cst = arith.constant dense<0.000000e+00> : vector<144x128xf32>
    %6 = tpu.matmul %4, %5, %cst {dimension_numbers = #tpu.dot_dimension_numbers<[1], [0], [0], [1], [0, 0, 1, 1], [], []>} : vector<144x128xf32>, vector<128x128xf32>, vector<144x128xf32> -> vector<144x128xf32>
    %7 = arith.addf %3, %6 : vector<144x128xf32>
    %c0_6 = arith.constant 0 : index
    %c0_7 = arith.constant 0 : index
    %8 = vector.load %arg7[%c0_6, %c0_7] : memref<144x128xf32, #tpu.memory_space<vmem>>, vector<144x128xf32>
    tpu.vector_store %arg7[%c0_6, %c0_7], %7 {strides = array<i32>} : memref<144x128xf32, #tpu.memory_space<vmem>>, vector<144x128xf32>,
    %c0_i32_8 = arith.constant 0 : i32
    %9 = arith.cmpi eq, %arg2, %c0_i32_8 : i32
    %10 = arith.extui %9 : i1 to i32
    %c0_i32_9 = arith.constant 0 : i32
    %11 = arith.cmpi ne, %10, %c0_i32_9 : i32
    scf.if %11 {
      %c0_10 = arith.constant 0 : index
      %c0_11 = arith.constant 0 : index
      %12 = vector.load %arg7[%c0_10, %c0_11] : memref<144x128xf32, #tpu.memory_space<vmem>>, vector<144x128xf32>
      %c0_12 = arith.constant 0 : index
      %c0_13 = arith.constant 0 : index
      %13 = vector.load %arg5[%c0_12, %c0_13] : memref<1x128xf32, #tpu.memory_space<vmem>>, vector<1x128xf32>
      %14 = vector.broadcast %13 : vector<1x128xf32> to vector<144x128xf32>
      %15 = arith.addf %12, %14 : vector<144x128xf32>
      %cst_14 = arith.constant 0.000000e+00 : f32
      %16 = vector.broadcast %cst_14 : f32 to vector<144x128xf32>
      %17 = arith.cmpf ogt, %15, %16 : vector<144x128xf32>
      %cst_15 = arith.constant 0.00999999977 : f32
      %18 = vector.broadcast %cst_15 : f32 to vector<144x128xf32>
      %19 = arith.mulf %18, %15 : vector<144x128xf32>
      %20 = arith.select %17, %15, %19 : vector<144x128xi1>, vector<144x128xf32>
      %c0_16 = arith.constant 0 : index
      %c0_17 = arith.constant 0 : index
      %21 = vector.load %arg6[%c0_16, %c0_17] : memref<144x128xf32, #tpu.memory_space<vmem>>, vector<144x128xf32>
      tpu.vector_store %arg6[%c0_16, %c0_17], %20 {strides = array<i32>} : memref<144x128xf32, #tpu.memory_space<vmem>>, vector<144x128xf32>,
    } else {
    }
    return
  }
  func.func @transform_0(%arg0: i32, %arg1: i32, %arg2: i32) -> (i32, i32) {
    %c0_i32 = arith.constant 0 : i32
    return %arg0, %arg2 : i32, i32
  }
  func.func @transform_1(%arg0: i32, %arg1: i32, %arg2: i32) -> (i32, i32) {
    %c0_i32 = arith.constant 0 : i32
    return %arg2, %arg1 : i32, i32
  }
  func.func @transform_2(%arg0: i32, %arg1: i32, %arg2: i32) -> (i32, i32) {
    %c0_i32 = arith.constant 0 : i32
    %c0_i32_0 = arith.constant 0 : i32
    return %c0_i32, %arg1 : i32, i32
  }
  func.func @transform_3(%arg0: i32, %arg1: i32, %arg2: i32) -> (i32, i32) {
    %c0_i32 = arith.constant 0 : i32
    return %arg0, %arg1 : i32, i32
  }
}

module attributes {stable_mosaic.version = 11 : i64} {
  func.func @_linear_act_kernel(%arg0: i32, %arg1: i32, %arg2: i32, %arg3: memref<32x512xf32, #tpu.memory_space<vmem>>, %arg4: memref<512x128xf32, #tpu.memory_space<vmem>>, %arg5: memref<1x128xf32, #tpu.memory_space<vmem>>, %arg6: memref<32x128xf32, #tpu.memory_space<vmem>>, %arg7: memref<32x128xf32, #tpu.memory_space<vmem>>) attributes {dimension_semantics = [#tpu.dimension_semantics<parallel>, #tpu.dimension_semantics<parallel>, #tpu.dimension_semantics<arbitrary>], iteration_bounds = array<i64: 1, 1, 1>, scalar_prefetch = 0 : i64, scratch_operands = 1 : i64, tpu.core_type = #tpu.core_type<tc>, window_params = [{transform_indices = @transform_0, window_bounds = array<i64: 32, 512>}, {transform_indices = @transform_1, window_bounds = array<i64: 512, 128>}, {transform_indices = @transform_2, window_bounds = array<i64: 1, 128>}, {transform_indices = @transform_3, window_bounds = array<i64: 32, 128>}]} {
    %c0_i32 = arith.constant 0 : i32
    %0 = arith.cmpi eq, %arg2, %c0_i32 : i32
    %1 = arith.extui %0 : i1 to i32
    %c0_i32_0 = arith.constant 0 : i32
    %2 = arith.cmpi ne, %1, %c0_i32_0 : i32
    scf.if %2 {
      %cst_10 = arith.constant 0.000000e+00 : f32
      %12 = vector.broadcast %cst_10 : f32 to vector<32x128xf32>
      %c0_11 = arith.constant 0 : index
      %c0_12 = arith.constant 0 : index
      %13 = vector.load %arg7[%c0_11, %c0_12] : memref<32x128xf32, #tpu.memory_space<vmem>>, vector<32x128xf32>
      tpu.vector_store %arg7[%c0_11, %c0_12], %12 {strides = array<i32>} : memref<32x128xf32, #tpu.memory_space<vmem>>, vector<32x128xf32>,
    } else {
    }
    %c0 = arith.constant 0 : index
    %c0_1 = arith.constant 0 : index
    %3 = vector.load %arg7[%c0, %c0_1] : memref<32x128xf32, #tpu.memory_space<vmem>>, vector<32x128xf32>
    %c0_2 = arith.constant 0 : index
    %c0_3 = arith.constant 0 : index
    %4 = vector.load %arg3[%c0_2, %c0_3] : memref<32x512xf32, #tpu.memory_space<vmem>>, vector<32x512xf32>
    %c0_4 = arith.constant 0 : index
    %c0_5 = arith.constant 0 : index
    %5 = vector.load %arg4[%c0_4, %c0_5] : memref<512x128xf32, #tpu.memory_space<vmem>>, vector<512x128xf32>
    %cst = arith.constant dense<0.000000e+00> : vector<32x128xf32>
    %6 = tpu.matmul %4, %5, %cst {dimension_numbers = #tpu.dot_dimension_numbers<[1], [0], [0], [1], [0, 0, 1, 1], [], []>} : vector<32x512xf32>, vector<512x128xf32>, vector<32x128xf32> -> vector<32x128xf32>
    %7 = arith.addf %3, %6 : vector<32x128xf32>
    %c0_6 = arith.constant 0 : index
    %c0_7 = arith.constant 0 : index
    %8 = vector.load %arg7[%c0_6, %c0_7] : memref<32x128xf32, #tpu.memory_space<vmem>>, vector<32x128xf32>
    tpu.vector_store %arg7[%c0_6, %c0_7], %7 {strides = array<i32>} : memref<32x128xf32, #tpu.memory_space<vmem>>, vector<32x128xf32>,
    %c0_i32_8 = arith.constant 0 : i32
    %9 = arith.cmpi eq, %arg2, %c0_i32_8 : i32
    %10 = arith.extui %9 : i1 to i32
    %c0_i32_9 = arith.constant 0 : i32
    %11 = arith.cmpi ne, %10, %c0_i32_9 : i32
    scf.if %11 {
      %c0_10 = arith.constant 0 : index
      %c0_11 = arith.constant 0 : index
      %12 = vector.load %arg7[%c0_10, %c0_11] : memref<32x128xf32, #tpu.memory_space<vmem>>, vector<32x128xf32>
      %c0_12 = arith.constant 0 : index
      %c0_13 = arith.constant 0 : index
      %13 = vector.load %arg5[%c0_12, %c0_13] : memref<1x128xf32, #tpu.memory_space<vmem>>, vector<1x128xf32>
      %14 = vector.broadcast %13 : vector<1x128xf32> to vector<32x128xf32>
      %15 = arith.addf %12, %14 : vector<32x128xf32>
      %cst_14 = arith.constant 0.000000e+00 : f32
      %16 = vector.broadcast %cst_14 : f32 to vector<32x128xf32>
      %17 = arith.cmpf ogt, %15, %16 : vector<32x128xf32>
      %cst_15 = arith.constant 0.00999999977 : f32
      %18 = vector.broadcast %cst_15 : f32 to vector<32x128xf32>
      %19 = arith.mulf %18, %15 : vector<32x128xf32>
      %20 = arith.select %17, %15, %19 : vector<32x128xi1>, vector<32x128xf32>
      %c0_16 = arith.constant 0 : index
      %c0_17 = arith.constant 0 : index
      %21 = vector.load %arg6[%c0_16, %c0_17] : memref<32x128xf32, #tpu.memory_space<vmem>>, vector<32x128xf32>
      tpu.vector_store %arg6[%c0_16, %c0_17], %20 {strides = array<i32>} : memref<32x128xf32, #tpu.memory_space<vmem>>, vector<32x128xf32>,
    } else {
    }
    return
  }
  func.func @transform_0(%arg0: i32, %arg1: i32, %arg2: i32) -> (i32, i32) {
    %c0_i32 = arith.constant 0 : i32
    return %arg0, %arg2 : i32, i32
  }
  func.func @transform_1(%arg0: i32, %arg1: i32, %arg2: i32) -> (i32, i32) {
    %c0_i32 = arith.constant 0 : i32
    return %arg2, %arg1 : i32, i32
  }
  func.func @transform_2(%arg0: i32, %arg1: i32, %arg2: i32) -> (i32, i32) {
    %c0_i32 = arith.constant 0 : i32
    %c0_i32_0 = arith.constant 0 : i32
    return %c0_i32, %arg1 : i32, i32
  }
  func.func @transform_3(%arg0: i32, %arg1: i32, %arg2: i32) -> (i32, i32) {
    %c0_i32 = arith.constant 0 : i32
    return %arg0, %arg1 : i32, i32
  }
}

module attributes {stable_mosaic.version = 11 : i64} {
  func.func @_linear_act_kernel(%arg0: i32, %arg1: i32, %arg2: i32, %arg3: memref<8x512xf32, #tpu.memory_space<vmem>>, %arg4: memref<512x128xf32, #tpu.memory_space<vmem>>, %arg5: memref<1x128xf32, #tpu.memory_space<vmem>>, %arg6: memref<8x128xf32, #tpu.memory_space<vmem>>, %arg7: memref<8x128xf32, #tpu.memory_space<vmem>>) attributes {dimension_semantics = [#tpu.dimension_semantics<parallel>, #tpu.dimension_semantics<parallel>, #tpu.dimension_semantics<arbitrary>], iteration_bounds = array<i64: 1, 8, 1>, scalar_prefetch = 0 : i64, scratch_operands = 1 : i64, tpu.core_type = #tpu.core_type<tc>, window_params = [{transform_indices = @transform_0, window_bounds = array<i64: 8, 512>}, {transform_indices = @transform_1, window_bounds = array<i64: 512, 128>}, {transform_indices = @transform_2, window_bounds = array<i64: 1, 128>}, {transform_indices = @transform_3, window_bounds = array<i64: 8, 128>}]} {
    %c0_i32 = arith.constant 0 : i32
    %0 = arith.cmpi eq, %arg2, %c0_i32 : i32
    %1 = arith.extui %0 : i1 to i32
    %c0_i32_0 = arith.constant 0 : i32
    %2 = arith.cmpi ne, %1, %c0_i32_0 : i32
    scf.if %2 {
      %cst_10 = arith.constant 0.000000e+00 : f32
      %12 = vector.broadcast %cst_10 : f32 to vector<8x128xf32>
      %c0_11 = arith.constant 0 : index
      %c0_12 = arith.constant 0 : index
      %13 = vector.load %arg7[%c0_11, %c0_12] : memref<8x128xf32, #tpu.memory_space<vmem>>, vector<8x128xf32>
      tpu.vector_store %arg7[%c0_11, %c0_12], %12 {strides = array<i32>} : memref<8x128xf32, #tpu.memory_space<vmem>>, vector<8x128xf32>,
    } else {
    }
    %c0 = arith.constant 0 : index
    %c0_1 = arith.constant 0 : index
    %3 = vector.load %arg7[%c0, %c0_1] : memref<8x128xf32, #tpu.memory_space<vmem>>, vector<8x128xf32>
    %c0_2 = arith.constant 0 : index
    %c0_3 = arith.constant 0 : index
    %4 = vector.load %arg3[%c0_2, %c0_3] : memref<8x512xf32, #tpu.memory_space<vmem>>, vector<8x512xf32>
    %c0_4 = arith.constant 0 : index
    %c0_5 = arith.constant 0 : index
    %5 = vector.load %arg4[%c0_4, %c0_5] : memref<512x128xf32, #tpu.memory_space<vmem>>, vector<512x128xf32>
    %cst = arith.constant dense<0.000000e+00> : vector<8x128xf32>
    %6 = tpu.matmul %4, %5, %cst {dimension_numbers = #tpu.dot_dimension_numbers<[1], [0], [0], [1], [0, 0, 1, 1], [], []>} : vector<8x512xf32>, vector<512x128xf32>, vector<8x128xf32> -> vector<8x128xf32>
    %7 = arith.addf %3, %6 : vector<8x128xf32>
    %c0_6 = arith.constant 0 : index
    %c0_7 = arith.constant 0 : index
    %8 = vector.load %arg7[%c0_6, %c0_7] : memref<8x128xf32, #tpu.memory_space<vmem>>, vector<8x128xf32>
    tpu.vector_store %arg7[%c0_6, %c0_7], %7 {strides = array<i32>} : memref<8x128xf32, #tpu.memory_space<vmem>>, vector<8x128xf32>,
    %c0_i32_8 = arith.constant 0 : i32
    %9 = arith.cmpi eq, %arg2, %c0_i32_8 : i32
    %10 = arith.extui %9 : i1 to i32
    %c0_i32_9 = arith.constant 0 : i32
    %11 = arith.cmpi ne, %10, %c0_i32_9 : i32
    scf.if %11 {
      %c0_10 = arith.constant 0 : index
      %c0_11 = arith.constant 0 : index
      %12 = vector.load %arg7[%c0_10, %c0_11] : memref<8x128xf32, #tpu.memory_space<vmem>>, vector<8x128xf32>
      %c0_12 = arith.constant 0 : index
      %c0_13 = arith.constant 0 : index
      %13 = vector.load %arg5[%c0_12, %c0_13] : memref<1x128xf32, #tpu.memory_space<vmem>>, vector<1x128xf32>
      %14 = vector.broadcast %13 : vector<1x128xf32> to vector<8x128xf32>
      %15 = arith.addf %12, %14 : vector<8x128xf32>
      %cst_14 = arith.constant 0.000000e+00 : f32
      %16 = vector.broadcast %cst_14 : f32 to vector<8x128xf32>
      %17 = arith.cmpf ogt, %15, %16 : vector<8x128xf32>
      %cst_15 = arith.constant 0.00999999977 : f32
      %18 = vector.broadcast %cst_15 : f32 to vector<8x128xf32>
      %19 = arith.mulf %18, %15 : vector<8x128xf32>
      %20 = arith.select %17, %15, %19 : vector<8x128xi1>, vector<8x128xf32>
      %c0_16 = arith.constant 0 : index
      %c0_17 = arith.constant 0 : index
      %21 = vector.load %arg6[%c0_16, %c0_17] : memref<8x128xf32, #tpu.memory_space<vmem>>, vector<8x128xf32>
      tpu.vector_store %arg6[%c0_16, %c0_17], %20 {strides = array<i32>} : memref<8x128xf32, #tpu.memory_space<vmem>>, vector<8x128xf32>,
    } else {
    }
    return
  }
  func.func @transform_0(%arg0: i32, %arg1: i32, %arg2: i32) -> (i32, i32) {
    %c0_i32 = arith.constant 0 : i32
    return %arg0, %arg2 : i32, i32
  }
  func.func @transform_1(%arg0: i32, %arg1: i32, %arg2: i32) -> (i32, i32) {
    %c0_i32 = arith.constant 0 : i32
    return %arg2, %arg1 : i32, i32
  }
  func.func @transform_2(%arg0: i32, %arg1: i32, %arg2: i32) -> (i32, i32) {
    %c0_i32 = arith.constant 0 : i32
    %c0_i32_0 = arith.constant 0 : i32
    return %c0_i32, %arg1 : i32, i32
  }
  func.func @transform_3(%arg0: i32, %arg1: i32, %arg2: i32) -> (i32, i32) {
    %c0_i32 = arith.constant 0 : i32
    return %arg0, %arg1 : i32, i32
  }
}

module attributes {stable_mosaic.version = 11 : i64} {
  func.func @_linear_act_kernel(%arg0: i32, %arg1: i32, %arg2: i32, %arg3: memref<8x512xf32, #tpu.memory_space<vmem>>, %arg4: memref<512x128xf32, #tpu.memory_space<vmem>>, %arg5: memref<1x128xf32, #tpu.memory_space<vmem>>, %arg6: memref<8x128xf32, #tpu.memory_space<vmem>>, %arg7: memref<8x128xf32, #tpu.memory_space<vmem>>) attributes {dimension_semantics = [#tpu.dimension_semantics<parallel>, #tpu.dimension_semantics<parallel>, #tpu.dimension_semantics<arbitrary>], iteration_bounds = array<i64: 1, 4, 2>, scalar_prefetch = 0 : i64, scratch_operands = 1 : i64, tpu.core_type = #tpu.core_type<tc>, window_params = [{transform_indices = @transform_0, window_bounds = array<i64: 8, 512>}, {transform_indices = @transform_1, window_bounds = array<i64: 512, 128>}, {transform_indices = @transform_2, window_bounds = array<i64: 1, 128>}, {transform_indices = @transform_3, window_bounds = array<i64: 8, 128>}]} {
    %c0_i32 = arith.constant 0 : i32
    %0 = arith.cmpi eq, %arg2, %c0_i32 : i32
    %1 = arith.extui %0 : i1 to i32
    %c0_i32_0 = arith.constant 0 : i32
    %2 = arith.cmpi ne, %1, %c0_i32_0 : i32
    scf.if %2 {
      %cst_9 = arith.constant 0.000000e+00 : f32
      %12 = vector.broadcast %cst_9 : f32 to vector<8x128xf32>
      %c0_10 = arith.constant 0 : index
      %c0_11 = arith.constant 0 : index
      %13 = vector.load %arg7[%c0_10, %c0_11] : memref<8x128xf32, #tpu.memory_space<vmem>>, vector<8x128xf32>
      tpu.vector_store %arg7[%c0_10, %c0_11], %12 {strides = array<i32>} : memref<8x128xf32, #tpu.memory_space<vmem>>, vector<8x128xf32>,
    } else {
    }
    %c0 = arith.constant 0 : index
    %c0_1 = arith.constant 0 : index
    %3 = vector.load %arg7[%c0, %c0_1] : memref<8x128xf32, #tpu.memory_space<vmem>>, vector<8x128xf32>
    %c0_2 = arith.constant 0 : index
    %c0_3 = arith.constant 0 : index
    %4 = vector.load %arg3[%c0_2, %c0_3] : memref<8x512xf32, #tpu.memory_space<vmem>>, vector<8x512xf32>
    %c0_4 = arith.constant 0 : index
    %c0_5 = arith.constant 0 : index
    %5 = vector.load %arg4[%c0_4, %c0_5] : memref<512x128xf32, #tpu.memory_space<vmem>>, vector<512x128xf32>
    %cst = arith.constant dense<0.000000e+00> : vector<8x128xf32>
    %6 = tpu.matmul %4, %5, %cst {dimension_numbers = #tpu.dot_dimension_numbers<[1], [0], [0], [1], [0, 0, 1, 1], [], []>} : vector<8x512xf32>, vector<512x128xf32>, vector<8x128xf32> -> vector<8x128xf32>
    %7 = arith.addf %3, %6 : vector<8x128xf32>
    %c0_6 = arith.constant 0 : index
    %c0_7 = arith.constant 0 : index
    %8 = vector.load %arg7[%c0_6, %c0_7] : memref<8x128xf32, #tpu.memory_space<vmem>>, vector<8x128xf32>
    tpu.vector_store %arg7[%c0_6, %c0_7], %7 {strides = array<i32>} : memref<8x128xf32, #tpu.memory_space<vmem>>, vector<8x128xf32>,
    %c1_i32 = arith.constant 1 : i32
    %9 = arith.cmpi eq, %arg2, %c1_i32 : i32
    %10 = arith.extui %9 : i1 to i32
    %c0_i32_8 = arith.constant 0 : i32
    %11 = arith.cmpi ne, %10, %c0_i32_8 : i32
    scf.if %11 {
      %c0_9 = arith.constant 0 : index
      %c0_10 = arith.constant 0 : index
      %12 = vector.load %arg7[%c0_9, %c0_10] : memref<8x128xf32, #tpu.memory_space<vmem>>, vector<8x128xf32>
      %c0_11 = arith.constant 0 : index
      %c0_12 = arith.constant 0 : index
      %13 = vector.load %arg5[%c0_11, %c0_12] : memref<1x128xf32, #tpu.memory_space<vmem>>, vector<1x128xf32>
      %14 = vector.broadcast %13 : vector<1x128xf32> to vector<8x128xf32>
      %15 = arith.addf %12, %14 : vector<8x128xf32>
      %cst_13 = arith.constant 0.000000e+00 : f32
      %16 = vector.broadcast %cst_13 : f32 to vector<8x128xf32>
      %17 = arith.cmpf ogt, %15, %16 : vector<8x128xf32>
      %cst_14 = arith.constant 0.00999999977 : f32
      %18 = vector.broadcast %cst_14 : f32 to vector<8x128xf32>
      %19 = arith.mulf %18, %15 : vector<8x128xf32>
      %20 = arith.select %17, %15, %19 : vector<8x128xi1>, vector<8x128xf32>
      %c0_15 = arith.constant 0 : index
      %c0_16 = arith.constant 0 : index
      %21 = vector.load %arg6[%c0_15, %c0_16] : memref<8x128xf32, #tpu.memory_space<vmem>>, vector<8x128xf32>
      tpu.vector_store %arg6[%c0_15, %c0_16], %20 {strides = array<i32>} : memref<8x128xf32, #tpu.memory_space<vmem>>, vector<8x128xf32>,
    } else {
    }
    return
  }
  func.func @transform_0(%arg0: i32, %arg1: i32, %arg2: i32) -> (i32, i32) {
    %c0_i32 = arith.constant 0 : i32
    return %arg0, %arg2 : i32, i32
  }
  func.func @transform_1(%arg0: i32, %arg1: i32, %arg2: i32) -> (i32, i32) {
    %c0_i32 = arith.constant 0 : i32
    return %arg2, %arg1 : i32, i32
  }
  func.func @transform_2(%arg0: i32, %arg1: i32, %arg2: i32) -> (i32, i32) {
    %c0_i32 = arith.constant 0 : i32
    %c0_i32_0 = arith.constant 0 : i32
    return %c0_i32, %arg1 : i32, i32
  }
  func.func @transform_3(%arg0: i32, %arg1: i32, %arg2: i32) -> (i32, i32) {
    %c0_i32 = arith.constant 0 : i32
    return %arg0, %arg1 : i32, i32
  }
}

module attributes {stable_mosaic.version = 11 : i64} {
  func.func @_linear_act_kernel(%arg0: i32, %arg1: i32, %arg2: i32, %arg3: memref<8x128xf32, #tpu.memory_space<vmem>>, %arg4: memref<128x128xf32, #tpu.memory_space<vmem>>, %arg5: memref<1x128xf32, #tpu.memory_space<vmem>>, %arg6: memref<8x128xf32, #tpu.memory_space<vmem>>, %arg7: memref<8x128xf32, #tpu.memory_space<vmem>>) attributes {dimension_semantics = [#tpu.dimension_semantics<parallel>, #tpu.dimension_semantics<parallel>, #tpu.dimension_semantics<arbitrary>], iteration_bounds = array<i64: 1, 2, 5>, scalar_prefetch = 0 : i64, scratch_operands = 1 : i64, tpu.core_type = #tpu.core_type<tc>, window_params = [{transform_indices = @transform_0, window_bounds = array<i64: 8, 128>}, {transform_indices = @transform_1, window_bounds = array<i64: 128, 128>}, {transform_indices = @transform_2, window_bounds = array<i64: 1, 128>}, {transform_indices = @transform_3, window_bounds = array<i64: 8, 128>}]} {
    %c0_i32 = arith.constant 0 : i32
    %0 = arith.cmpi eq, %arg2, %c0_i32 : i32
    %1 = arith.extui %0 : i1 to i32
    %c0_i32_0 = arith.constant 0 : i32
    %2 = arith.cmpi ne, %1, %c0_i32_0 : i32
    scf.if %2 {
      %cst_9 = arith.constant 0.000000e+00 : f32
      %12 = vector.broadcast %cst_9 : f32 to vector<8x128xf32>
      %c0_10 = arith.constant 0 : index
      %c0_11 = arith.constant 0 : index
      %13 = vector.load %arg7[%c0_10, %c0_11] : memref<8x128xf32, #tpu.memory_space<vmem>>, vector<8x128xf32>
      tpu.vector_store %arg7[%c0_10, %c0_11], %12 {strides = array<i32>} : memref<8x128xf32, #tpu.memory_space<vmem>>, vector<8x128xf32>,
    } else {
    }
    %c0 = arith.constant 0 : index
    %c0_1 = arith.constant 0 : index
    %3 = vector.load %arg7[%c0, %c0_1] : memref<8x128xf32, #tpu.memory_space<vmem>>, vector<8x128xf32>
    %c0_2 = arith.constant 0 : index
    %c0_3 = arith.constant 0 : index
    %4 = vector.load %arg3[%c0_2, %c0_3] : memref<8x128xf32, #tpu.memory_space<vmem>>, vector<8x128xf32>
    %c0_4 = arith.constant 0 : index
    %c0_5 = arith.constant 0 : index
    %5 = vector.load %arg4[%c0_4, %c0_5] : memref<128x128xf32, #tpu.memory_space<vmem>>, vector<128x128xf32>
    %cst = arith.constant dense<0.000000e+00> : vector<8x128xf32>
    %6 = tpu.matmul %4, %5, %cst {dimension_numbers = #tpu.dot_dimension_numbers<[1], [0], [0], [1], [0, 0, 1, 1], [], []>} : vector<8x128xf32>, vector<128x128xf32>, vector<8x128xf32> -> vector<8x128xf32>
    %7 = arith.addf %3, %6 : vector<8x128xf32>
    %c0_6 = arith.constant 0 : index
    %c0_7 = arith.constant 0 : index
    %8 = vector.load %arg7[%c0_6, %c0_7] : memref<8x128xf32, #tpu.memory_space<vmem>>, vector<8x128xf32>
    tpu.vector_store %arg7[%c0_6, %c0_7], %7 {strides = array<i32>} : memref<8x128xf32, #tpu.memory_space<vmem>>, vector<8x128xf32>,
    %c4_i32 = arith.constant 4 : i32
    %9 = arith.cmpi eq, %arg2, %c4_i32 : i32
    %10 = arith.extui %9 : i1 to i32
    %c0_i32_8 = arith.constant 0 : i32
    %11 = arith.cmpi ne, %10, %c0_i32_8 : i32
    scf.if %11 {
      %c0_9 = arith.constant 0 : index
      %c0_10 = arith.constant 0 : index
      %12 = vector.load %arg7[%c0_9, %c0_10] : memref<8x128xf32, #tpu.memory_space<vmem>>, vector<8x128xf32>
      %c0_11 = arith.constant 0 : index
      %c0_12 = arith.constant 0 : index
      %13 = vector.load %arg5[%c0_11, %c0_12] : memref<1x128xf32, #tpu.memory_space<vmem>>, vector<1x128xf32>
      %14 = vector.broadcast %13 : vector<1x128xf32> to vector<8x128xf32>
      %15 = arith.addf %12, %14 : vector<8x128xf32>
      %cst_13 = arith.constant 0.000000e+00 : f32
      %16 = vector.broadcast %cst_13 : f32 to vector<8x128xf32>
      %17 = arith.cmpf ogt, %15, %16 : vector<8x128xf32>
      %cst_14 = arith.constant 0.00999999977 : f32
      %18 = vector.broadcast %cst_14 : f32 to vector<8x128xf32>
      %19 = arith.mulf %18, %15 : vector<8x128xf32>
      %20 = arith.select %17, %15, %19 : vector<8x128xi1>, vector<8x128xf32>
      %c0_15 = arith.constant 0 : index
      %c0_16 = arith.constant 0 : index
      %21 = vector.load %arg6[%c0_15, %c0_16] : memref<8x128xf32, #tpu.memory_space<vmem>>, vector<8x128xf32>
      tpu.vector_store %arg6[%c0_15, %c0_16], %20 {strides = array<i32>} : memref<8x128xf32, #tpu.memory_space<vmem>>, vector<8x128xf32>,
    } else {
    }
    return
  }
  func.func @transform_0(%arg0: i32, %arg1: i32, %arg2: i32) -> (i32, i32) {
    %c0_i32 = arith.constant 0 : i32
    return %arg0, %arg2 : i32, i32
  }
  func.func @transform_1(%arg0: i32, %arg1: i32, %arg2: i32) -> (i32, i32) {
    %c0_i32 = arith.constant 0 : i32
    return %arg2, %arg1 : i32, i32
  }
  func.func @transform_2(%arg0: i32, %arg1: i32, %arg2: i32) -> (i32, i32) {
    %c0_i32 = arith.constant 0 : i32
    %c0_i32_0 = arith.constant 0 : i32
    return %c0_i32, %arg1 : i32, i32
  }
  func.func @transform_3(%arg0: i32, %arg1: i32, %arg2: i32) -> (i32, i32) {
    %c0_i32 = arith.constant 0 : i32
    return %arg0, %arg1 : i32, i32
  }
}

module attributes {stable_mosaic.version = 11 : i64} {
  func.func @_linear_act_kernel(%arg0: i32, %arg1: i32, %arg2: i32, %arg3: memref<8x128xf32, #tpu.memory_space<vmem>>, %arg4: memref<128x128xf32, #tpu.memory_space<vmem>>, %arg5: memref<1x128xf32, #tpu.memory_space<vmem>>, %arg6: memref<8x128xf32, #tpu.memory_space<vmem>>, %arg7: memref<8x128xf32, #tpu.memory_space<vmem>>) attributes {dimension_semantics = [#tpu.dimension_semantics<parallel>, #tpu.dimension_semantics<parallel>, #tpu.dimension_semantics<arbitrary>], iteration_bounds = array<i64: 1, 1, 1>, scalar_prefetch = 0 : i64, scratch_operands = 1 : i64, tpu.core_type = #tpu.core_type<tc>, window_params = [{transform_indices = @transform_0, window_bounds = array<i64: 8, 128>}, {transform_indices = @transform_1, window_bounds = array<i64: 128, 128>}, {transform_indices = @transform_2, window_bounds = array<i64: 1, 128>}, {transform_indices = @transform_3, window_bounds = array<i64: 8, 128>}]} {
    %c0_i32 = arith.constant 0 : i32
    %0 = arith.cmpi eq, %arg2, %c0_i32 : i32
    %1 = arith.extui %0 : i1 to i32
    %c0_i32_0 = arith.constant 0 : i32
    %2 = arith.cmpi ne, %1, %c0_i32_0 : i32
    scf.if %2 {
      %cst_10 = arith.constant 0.000000e+00 : f32
      %12 = vector.broadcast %cst_10 : f32 to vector<8x128xf32>
      %c0_11 = arith.constant 0 : index
      %c0_12 = arith.constant 0 : index
      %13 = vector.load %arg7[%c0_11, %c0_12] : memref<8x128xf32, #tpu.memory_space<vmem>>, vector<8x128xf32>
      tpu.vector_store %arg7[%c0_11, %c0_12], %12 {strides = array<i32>} : memref<8x128xf32, #tpu.memory_space<vmem>>, vector<8x128xf32>,
    } else {
    }
    %c0 = arith.constant 0 : index
    %c0_1 = arith.constant 0 : index
    %3 = vector.load %arg7[%c0, %c0_1] : memref<8x128xf32, #tpu.memory_space<vmem>>, vector<8x128xf32>
    %c0_2 = arith.constant 0 : index
    %c0_3 = arith.constant 0 : index
    %4 = vector.load %arg3[%c0_2, %c0_3] : memref<8x128xf32, #tpu.memory_space<vmem>>, vector<8x128xf32>
    %c0_4 = arith.constant 0 : index
    %c0_5 = arith.constant 0 : index
    %5 = vector.load %arg4[%c0_4, %c0_5] : memref<128x128xf32, #tpu.memory_space<vmem>>, vector<128x128xf32>
    %cst = arith.constant dense<0.000000e+00> : vector<8x128xf32>
    %6 = tpu.matmul %4, %5, %cst {dimension_numbers = #tpu.dot_dimension_numbers<[1], [0], [0], [1], [0, 0, 1, 1], [], []>} : vector<8x128xf32>, vector<128x128xf32>, vector<8x128xf32> -> vector<8x128xf32>
    %7 = arith.addf %3, %6 : vector<8x128xf32>
    %c0_6 = arith.constant 0 : index
    %c0_7 = arith.constant 0 : index
    %8 = vector.load %arg7[%c0_6, %c0_7] : memref<8x128xf32, #tpu.memory_space<vmem>>, vector<8x128xf32>
    tpu.vector_store %arg7[%c0_6, %c0_7], %7 {strides = array<i32>} : memref<8x128xf32, #tpu.memory_space<vmem>>, vector<8x128xf32>,
    %c0_i32_8 = arith.constant 0 : i32
    %9 = arith.cmpi eq, %arg2, %c0_i32_8 : i32
    %10 = arith.extui %9 : i1 to i32
    %c0_i32_9 = arith.constant 0 : i32
    %11 = arith.cmpi ne, %10, %c0_i32_9 : i32
    scf.if %11 {
      %c0_10 = arith.constant 0 : index
      %c0_11 = arith.constant 0 : index
      %12 = vector.load %arg7[%c0_10, %c0_11] : memref<8x128xf32, #tpu.memory_space<vmem>>, vector<8x128xf32>
      %c0_12 = arith.constant 0 : index
      %c0_13 = arith.constant 0 : index
      %13 = vector.load %arg5[%c0_12, %c0_13] : memref<1x128xf32, #tpu.memory_space<vmem>>, vector<1x128xf32>
      %14 = vector.broadcast %13 : vector<1x128xf32> to vector<8x128xf32>
      %15 = arith.addf %12, %14 : vector<8x128xf32>
      %cst_14 = arith.constant 0.000000e+00 : f32
      %16 = vector.broadcast %cst_14 : f32 to vector<8x128xf32>
      %17 = arith.cmpf ogt, %15, %16 : vector<8x128xf32>
      %cst_15 = arith.constant 0.00999999977 : f32
      %18 = vector.broadcast %cst_15 : f32 to vector<8x128xf32>
      %19 = arith.mulf %18, %15 : vector<8x128xf32>
      %20 = arith.select %17, %15, %19 : vector<8x128xi1>, vector<8x128xf32>
      %c0_16 = arith.constant 0 : index
      %c0_17 = arith.constant 0 : index
      %21 = vector.load %arg6[%c0_16, %c0_17] : memref<8x128xf32, #tpu.memory_space<vmem>>, vector<8x128xf32>
      tpu.vector_store %arg6[%c0_16, %c0_17], %20 {strides = array<i32>} : memref<8x128xf32, #tpu.memory_space<vmem>>, vector<8x128xf32>,
    } else {
    }
    return
  }
  func.func @transform_0(%arg0: i32, %arg1: i32, %arg2: i32) -> (i32, i32) {
    %c0_i32 = arith.constant 0 : i32
    return %arg0, %arg2 : i32, i32
  }
  func.func @transform_1(%arg0: i32, %arg1: i32, %arg2: i32) -> (i32, i32) {
    %c0_i32 = arith.constant 0 : i32
    return %arg2, %arg1 : i32, i32
  }
  func.func @transform_2(%arg0: i32, %arg1: i32, %arg2: i32) -> (i32, i32) {
    %c0_i32 = arith.constant 0 : i32
    %c0_i32_0 = arith.constant 0 : i32
    return %c0_i32, %arg1 : i32, i32
  }
  func.func @transform_3(%arg0: i32, %arg1: i32, %arg2: i32) -> (i32, i32) {
    %c0_i32 = arith.constant 0 : i32
    return %arg0, %arg1 : i32, i32
  }
}

module attributes {stable_mosaic.version = 11 : i64} {
  func.func @_linear_act_kernel(%arg0: i32, %arg1: i32, %arg2: i32, %arg3: memref<8x256xf32, #tpu.memory_space<vmem>>, %arg4: memref<256x128xf32, #tpu.memory_space<vmem>>, %arg5: memref<1x128xf32, #tpu.memory_space<vmem>>, %arg6: memref<8x128xf32, #tpu.memory_space<vmem>>, %arg7: memref<8x128xf32, #tpu.memory_space<vmem>>) attributes {dimension_semantics = [#tpu.dimension_semantics<parallel>, #tpu.dimension_semantics<parallel>, #tpu.dimension_semantics<arbitrary>], iteration_bounds = array<i64: 1, 1, 1>, scalar_prefetch = 0 : i64, scratch_operands = 1 : i64, tpu.core_type = #tpu.core_type<tc>, window_params = [{transform_indices = @transform_0, window_bounds = array<i64: 8, 256>}, {transform_indices = @transform_1, window_bounds = array<i64: 256, 128>}, {transform_indices = @transform_2, window_bounds = array<i64: 1, 128>}, {transform_indices = @transform_3, window_bounds = array<i64: 8, 128>}]} {
    %c0_i32 = arith.constant 0 : i32
    %0 = arith.cmpi eq, %arg2, %c0_i32 : i32
    %1 = arith.extui %0 : i1 to i32
    %c0_i32_0 = arith.constant 0 : i32
    %2 = arith.cmpi ne, %1, %c0_i32_0 : i32
    scf.if %2 {
      %cst_10 = arith.constant 0.000000e+00 : f32
      %12 = vector.broadcast %cst_10 : f32 to vector<8x128xf32>
      %c0_11 = arith.constant 0 : index
      %c0_12 = arith.constant 0 : index
      %13 = vector.load %arg7[%c0_11, %c0_12] : memref<8x128xf32, #tpu.memory_space<vmem>>, vector<8x128xf32>
      tpu.vector_store %arg7[%c0_11, %c0_12], %12 {strides = array<i32>} : memref<8x128xf32, #tpu.memory_space<vmem>>, vector<8x128xf32>,
    } else {
    }
    %c0 = arith.constant 0 : index
    %c0_1 = arith.constant 0 : index
    %3 = vector.load %arg7[%c0, %c0_1] : memref<8x128xf32, #tpu.memory_space<vmem>>, vector<8x128xf32>
    %c0_2 = arith.constant 0 : index
    %c0_3 = arith.constant 0 : index
    %4 = vector.load %arg3[%c0_2, %c0_3] : memref<8x256xf32, #tpu.memory_space<vmem>>, vector<8x256xf32>
    %c0_4 = arith.constant 0 : index
    %c0_5 = arith.constant 0 : index
    %5 = vector.load %arg4[%c0_4, %c0_5] : memref<256x128xf32, #tpu.memory_space<vmem>>, vector<256x128xf32>
    %cst = arith.constant dense<0.000000e+00> : vector<8x128xf32>
    %6 = tpu.matmul %4, %5, %cst {dimension_numbers = #tpu.dot_dimension_numbers<[1], [0], [0], [1], [0, 0, 1, 1], [], []>} : vector<8x256xf32>, vector<256x128xf32>, vector<8x128xf32> -> vector<8x128xf32>
    %7 = arith.addf %3, %6 : vector<8x128xf32>
    %c0_6 = arith.constant 0 : index
    %c0_7 = arith.constant 0 : index
    %8 = vector.load %arg7[%c0_6, %c0_7] : memref<8x128xf32, #tpu.memory_space<vmem>>, vector<8x128xf32>
    tpu.vector_store %arg7[%c0_6, %c0_7], %7 {strides = array<i32>} : memref<8x128xf32, #tpu.memory_space<vmem>>, vector<8x128xf32>,
    %c0_i32_8 = arith.constant 0 : i32
    %9 = arith.cmpi eq, %arg2, %c0_i32_8 : i32
    %10 = arith.extui %9 : i1 to i32
    %c0_i32_9 = arith.constant 0 : i32
    %11 = arith.cmpi ne, %10, %c0_i32_9 : i32
    scf.if %11 {
      %c0_10 = arith.constant 0 : index
      %c0_11 = arith.constant 0 : index
      %12 = vector.load %arg7[%c0_10, %c0_11] : memref<8x128xf32, #tpu.memory_space<vmem>>, vector<8x128xf32>
      %c0_12 = arith.constant 0 : index
      %c0_13 = arith.constant 0 : index
      %13 = vector.load %arg5[%c0_12, %c0_13] : memref<1x128xf32, #tpu.memory_space<vmem>>, vector<1x128xf32>
      %14 = vector.broadcast %13 : vector<1x128xf32> to vector<8x128xf32>
      %15 = arith.addf %12, %14 : vector<8x128xf32>
      %cst_14 = arith.constant 0.000000e+00 : f32
      %16 = vector.broadcast %cst_14 : f32 to vector<8x128xf32>
      %17 = arith.cmpf ogt, %15, %16 : vector<8x128xf32>
      %cst_15 = arith.constant 0.00999999977 : f32
      %18 = vector.broadcast %cst_15 : f32 to vector<8x128xf32>
      %19 = arith.mulf %18, %15 : vector<8x128xf32>
      %20 = arith.select %17, %15, %19 : vector<8x128xi1>, vector<8x128xf32>
      %c0_16 = arith.constant 0 : index
      %c0_17 = arith.constant 0 : index
      %21 = vector.load %arg6[%c0_16, %c0_17] : memref<8x128xf32, #tpu.memory_space<vmem>>, vector<8x128xf32>
      tpu.vector_store %arg6[%c0_16, %c0_17], %20 {strides = array<i32>} : memref<8x128xf32, #tpu.memory_space<vmem>>, vector<8x128xf32>,
    } else {
    }
    return
  }
  func.func @transform_0(%arg0: i32, %arg1: i32, %arg2: i32) -> (i32, i32) {
    %c0_i32 = arith.constant 0 : i32
    return %arg0, %arg2 : i32, i32
  }
  func.func @transform_1(%arg0: i32, %arg1: i32, %arg2: i32) -> (i32, i32) {
    %c0_i32 = arith.constant 0 : i32
    return %arg2, %arg1 : i32, i32
  }
  func.func @transform_2(%arg0: i32, %arg1: i32, %arg2: i32) -> (i32, i32) {
    %c0_i32 = arith.constant 0 : i32
    %c0_i32_0 = arith.constant 0 : i32
    return %c0_i32, %arg1 : i32, i32
  }
  func.func @transform_3(%arg0: i32, %arg1: i32, %arg2: i32) -> (i32, i32) {
    %c0_i32 = arith.constant 0 : i32
    return %arg0, %arg1 : i32, i32
  }
}

module attributes {stable_mosaic.version = 11 : i64} {
  func.func @_linear_act_kernel(%arg0: i32, %arg1: i32, %arg2: i32, %arg3: memref<8x128xf32, #tpu.memory_space<vmem>>, %arg4: memref<128x128xf32, #tpu.memory_space<vmem>>, %arg5: memref<1x128xf32, #tpu.memory_space<vmem>>, %arg6: memref<8x128xf32, #tpu.memory_space<vmem>>, %arg7: memref<8x128xf32, #tpu.memory_space<vmem>>) attributes {dimension_semantics = [#tpu.dimension_semantics<parallel>, #tpu.dimension_semantics<parallel>, #tpu.dimension_semantics<arbitrary>], iteration_bounds = array<i64: 1, 1, 1>, scalar_prefetch = 0 : i64, scratch_operands = 1 : i64, tpu.core_type = #tpu.core_type<tc>, window_params = [{transform_indices = @transform_0, window_bounds = array<i64: 8, 128>}, {transform_indices = @transform_1, window_bounds = array<i64: 128, 128>}, {transform_indices = @transform_2, window_bounds = array<i64: 1, 128>}, {transform_indices = @transform_3, window_bounds = array<i64: 8, 128>}]} {
    %c0_i32 = arith.constant 0 : i32
    %0 = arith.cmpi eq, %arg2, %c0_i32 : i32
    %1 = arith.extui %0 : i1 to i32
    %c0_i32_0 = arith.constant 0 : i32
    %2 = arith.cmpi ne, %1, %c0_i32_0 : i32
    scf.if %2 {
      %cst_10 = arith.constant 0.000000e+00 : f32
      %12 = vector.broadcast %cst_10 : f32 to vector<8x128xf32>
      %c0_11 = arith.constant 0 : index
      %c0_12 = arith.constant 0 : index
      %13 = vector.load %arg7[%c0_11, %c0_12] : memref<8x128xf32, #tpu.memory_space<vmem>>, vector<8x128xf32>
      tpu.vector_store %arg7[%c0_11, %c0_12], %12 {strides = array<i32>} : memref<8x128xf32, #tpu.memory_space<vmem>>, vector<8x128xf32>,
    } else {
    }
    %c0 = arith.constant 0 : index
    %c0_1 = arith.constant 0 : index
    %3 = vector.load %arg7[%c0, %c0_1] : memref<8x128xf32, #tpu.memory_space<vmem>>, vector<8x128xf32>
    %c0_2 = arith.constant 0 : index
    %c0_3 = arith.constant 0 : index
    %4 = vector.load %arg3[%c0_2, %c0_3] : memref<8x128xf32, #tpu.memory_space<vmem>>, vector<8x128xf32>
    %c0_4 = arith.constant 0 : index
    %c0_5 = arith.constant 0 : index
    %5 = vector.load %arg4[%c0_4, %c0_5] : memref<128x128xf32, #tpu.memory_space<vmem>>, vector<128x128xf32>
    %cst = arith.constant dense<0.000000e+00> : vector<8x128xf32>
    %6 = tpu.matmul %4, %5, %cst {dimension_numbers = #tpu.dot_dimension_numbers<[1], [0], [0], [1], [0, 0, 1, 1], [], []>} : vector<8x128xf32>, vector<128x128xf32>, vector<8x128xf32> -> vector<8x128xf32>
    %7 = arith.addf %3, %6 : vector<8x128xf32>
    %c0_6 = arith.constant 0 : index
    %c0_7 = arith.constant 0 : index
    %8 = vector.load %arg7[%c0_6, %c0_7] : memref<8x128xf32, #tpu.memory_space<vmem>>, vector<8x128xf32>
    tpu.vector_store %arg7[%c0_6, %c0_7], %7 {strides = array<i32>} : memref<8x128xf32, #tpu.memory_space<vmem>>, vector<8x128xf32>,
    %c0_i32_8 = arith.constant 0 : i32
    %9 = arith.cmpi eq, %arg2, %c0_i32_8 : i32
    %10 = arith.extui %9 : i1 to i32
    %c0_i32_9 = arith.constant 0 : i32
    %11 = arith.cmpi ne, %10, %c0_i32_9 : i32
    scf.if %11 {
      %c0_10 = arith.constant 0 : index
      %c0_11 = arith.constant 0 : index
      %12 = vector.load %arg7[%c0_10, %c0_11] : memref<8x128xf32, #tpu.memory_space<vmem>>, vector<8x128xf32>
      %c0_12 = arith.constant 0 : index
      %c0_13 = arith.constant 0 : index
      %13 = vector.load %arg5[%c0_12, %c0_13] : memref<1x128xf32, #tpu.memory_space<vmem>>, vector<1x128xf32>
      %14 = vector.broadcast %13 : vector<1x128xf32> to vector<8x128xf32>
      %15 = arith.addf %12, %14 : vector<8x128xf32>
      %16 = math.tanh %15 : vector<8x128xf32>
      %cst_14 = arith.constant 5.000000e-01 : f32
      %17 = vector.broadcast %cst_14 : f32 to vector<8x128xf32>
      %18 = arith.mulf %17, %16 : vector<8x128xf32>
      %cst_15 = arith.constant 5.000000e-01 : f32
      %19 = vector.broadcast %cst_15 : f32 to vector<8x128xf32>
      %20 = arith.addf %18, %19 : vector<8x128xf32>
      %c0_16 = arith.constant 0 : index
      %c0_17 = arith.constant 0 : index
      %21 = vector.load %arg6[%c0_16, %c0_17] : memref<8x128xf32, #tpu.memory_space<vmem>>, vector<8x128xf32>
      tpu.vector_store %arg6[%c0_16, %c0_17], %20 {strides = array<i32>} : memref<8x128xf32, #tpu.memory_space<vmem>>, vector<8x128xf32>,
    } else {
    }
    return
  }
  func.func @transform_0(%arg0: i32, %arg1: i32, %arg2: i32) -> (i32, i32) {
    %c0_i32 = arith.constant 0 : i32
    return %arg0, %arg2 : i32, i32
  }
  func.func @transform_1(%arg0: i32, %arg1: i32, %arg2: i32) -> (i32, i32) {
    %c0_i32 = arith.constant 0 : i32
    return %arg2, %arg1 : i32, i32
  }
  func.func @transform_2(%arg0: i32, %arg1: i32, %arg2: i32) -> (i32, i32) {
    %c0_i32 = arith.constant 0 : i32
    %c0_i32_0 = arith.constant 0 : i32
    return %c0_i32, %arg1 : i32, i32
  }
  func.func @transform_3(%arg0: i32, %arg1: i32, %arg2: i32) -> (i32, i32) {
    %c0_i32 = arith.constant 0 : i32
    return %arg0, %arg1 : i32, i32
  }
}

</mosaic_0001>

<bundles_post_ra>
// kernel: actor_forward.9
= control target key start
LH: loop header
LB: loop body
LE: loop exit
PB: predicated region body
PF: predicated region fallthrough
CT: control target
= control target key end

     0   :  { %s974_s12 = smov 0   ;;  %s976_s13 = smov 0   ;;  %s1125_s0 = inlined_call_operand.vmem [shape: f32[288,128], index: 0, kind: input, shape index: {}]   ;;  %s1126_s1 = inlined_call_operand.vmem [shape: f32[128,128], index: 1, kind: input, shape index: {}]   ;;  %s1127_s2 = inlined_call_operand.vmem [shape: f32[1,128], index: 2, kind: input, shape index: {}]   ;;  %s1128_s3 = inlined_call_operand.vmem [shape: f32[288,128], index: 3, kind: output, shape index: {}]  }
   0x1   :  { %s978_s14 = smov 0  }
   0x2 LB: > { %s32_s15 = sadd.s32 1, %s948_s13  ;;  %p759_p0 = scmp.ge.s32.totalorder %s952_s14, 1  ;;  %s952_s14 = sphi %s978_s14, %s13_s14   ;;  %s948_s13 = sphi %s976_s13, %s1130_s13   ;;  %s944_s12 = sphi %s974_s12, %s1129_s12  }
   0x3   : > { %p34_p1 = scmp.ge.s32.totalorder %s32_s15, 2  ;;  %p188_p2 = scmp.lt.s32.totalorder %s952_s14, 3 }
   0x5   : > { %s1132_s15 = smov (%p34_p1, %s32_s15), 0  ;;  %p189_p3 = pnand %p759_p0, %p188_p2 }
   0x6   : > { %v317_v0 = vld [vmem:[%s1126_s1] sm:$0xff] (!%p189_p3)  ;;  %v318_v1 = vld [vmem:[%s1126_s1 + $0x8] sm:$0xff] (!%p189_p3)  ;;  %v319_v2 = vld [vmem:[%s1126_s1 + $0x10] sm:$0xff] (!%p189_p3)  ;;  %s229_s22 = smul.u32 (!%p189_p3), 18, %s944_s12 }
   0x7   : > { %192 = sbr.rel (%p189_p3) target bundleno = 277 (0x115), region = 32  ;;  %v858_v3 = vpack.c.bf16 (!%p189_p3), %v318_v1, %v317_v0  ;;  %v320_v4 = vld [vmem:[%s1126_s1 + $0x18] sm:$0xff] (!%p189_p3)  ;;  %v321_v6 = vld [vmem:[%s1126_s1 + $0x20] sm:$0xff] (!%p189_p3)  ;;  %v322_v7 = vld [vmem:[%s1126_s1 + $0x28] sm:$0xff] (!%p189_p3) }
   0x8   : > { %v862_v5 = vpack.c.bf16 (!%p189_p3), %v320_v4, %v319_v2  ;;  %p230_p4 = scmp.lt.s32.totalorder (!%p189_p3), %s229_s22, 35  ;;  %v866_v8 = vpack.c.bf16 (!%p189_p3), %v322_v7, %v321_v6  ;;  %v323_v9 = vld [vmem:[%s1126_s1 + $0x30] sm:$0xff] (!%p189_p3)  ;;  %v324_v10 = vld [vmem:[%s1126_s1 + $0x38] sm:$0xff] (!%p189_p3)  ;;  %v325_v14 = vld [vmem:[%s1126_s1 + $0x40] sm:$0xff] (!%p189_p3) }
   0x9   : > { %859 = vmatprep.subr.bf16.mxu0 (!%p189_p3), %v858_v3  ;;  %890 = vmatprep.subr.bf16.mxu1 (!%p189_p3), %v858_v3  ;;  %v870_v13 = vpack.c.bf16 (!%p189_p3), %v324_v10, %v323_v9  ;;  %v326_v15 = vld [vmem:[%s1126_s1 + $0x48] sm:$0xff] (!%p189_p3)  ;;  %v327_v17 = vld [vmem:[%s1126_s1 + $0x50] sm:$0xff] (!%p189_p3)  ;;  %v328_v18 = vld [vmem:[%s1126_s1 + $0x58] sm:$0xff] (!%p189_p3) }
   0xa   : > { %861 = vmatpush3.bf16.msra.mxu0 (!%p189_p3), %v858_v3  ;;  %898 = vmatpush3.bf16.msra.mxu1 (!%p189_p3), %v858_v3  ;;  %v874_v16 = vpack.c.bf16 (!%p189_p3), %v326_v15, %v325_v14  ;;  %v878_v19 = vpack.c.bf16 (!%p189_p3), %v328_v18, %v327_v17  ;;  %v329_v20 = vld [vmem:[%s1126_s1 + $0x60] sm:$0xff] (!%p189_p3)  ;;  %v330_v21 = vld [vmem:[%s1126_s1 + $0x68] sm:$0xff] (!%p189_p3)  ;;  %v331_v23 = vld [vmem:[%s1126_s1 + $0x70] sm:$0xff] (!%p189_p3) }
   0xb   : > { %863 = vmatprep.subr.bf16.mxu0 (!%p189_p3), %v862_v5  ;;  %891 = vmatprep.subr.bf16.mxu1 (!%p189_p3), %v862_v5  ;;  %v882_v22 = vpack.c.bf16 (!%p189_p3), %v330_v21, %v329_v20  ;;  %v332_v24 = vld [vmem:[%s1126_s1 + $0x78] sm:$0xff] (!%p189_p3)  ;;  %v1071_v42 = vld [vmem:[%s1127_s2] ss:$0 sm:$0xff] (!%p189_p3) }
   0xc   : > { %v886_v25 = vpack.c.bf16 (!%p189_p3), %v332_v24, %v331_v23 }
   0xe   : > { %s1134_s22 = smov (!%p230_p4, %s229_s22), 35  ;;  %865 = vmatpush3.bf16.msra.mxu0 %v862_v5  ;;  %899 = vmatpush3.bf16.msra.mxu1 %v862_v5 }
   0xf   : > { %s760_s6 = sshll.u32 %s1134_s22, 3  ;;  %867 = vmatprep.subr.bf16.mxu0 %v866_v8  ;;  %892 = vmatprep.subr.bf16.mxu1 %v866_v8 }
  0x10   : > { %s1024_s9 = scalar_lea.vmem %s1125_s0, %s760_s6  ;;  %s1082_s8 = scalar_lea.vmem %s1128_s3, %s760_s6 }
  0x11   : > { %v299_v11 = vld [vmem:[%s1024_s9] sm:$0xff]  ;;  %v309_v12 = vld [vmem:[%s1024_s9 + $0x50] sm:$0xff]  ;;  %v300_v26 = vld [vmem:[%s1024_s9 + $0x8] sm:$0xff] }
  0x12   : > { %831 = vmatprep.mubr.f32.mxu0 %v299_v11  ;;  %846 = vmatprep.mubr.f32.mxu1 %v309_v12  ;;  %v310_v27 = vld [vmem:[%s1024_s9 + $0x58] sm:$0xff]  ;;  %v301_v28 = vld [vmem:[%s1024_s9 + $0x10] sm:$0xff]  ;;  %v311_v29 = vld [vmem:[%s1024_s9 + $0x60] sm:$0xff] }
  0x13   : > { %869 = vmatpush3.bf16.msra.mxu0 %v866_v8  ;;  %900 = vmatpush3.bf16.msra.mxu1 %v866_v8  ;;  %v302_v30 = vld [vmem:[%s1024_s9 + $0x18] sm:$0xff]  ;;  %v312_v31 = vld [vmem:[%s1024_s9 + $0x68] sm:$0xff]  ;;  %v303_v32 = vld [vmem:[%s1024_s9 + $0x20] sm:$0xff] }
  0x14   : > { %871 = vmatprep.subr.bf16.mxu0 %v870_v13  ;;  %893 = vmatprep.subr.bf16.mxu1 %v870_v13  ;;  %v313_v33 = vld [vmem:[%s1024_s9 + $0x70] sm:$0xff]  ;;  %v304_v34 = vld [vmem:[%s1024_s9 + $0x28] sm:$0xff]  ;;  %v314_v35 = vld [vmem:[%s1024_s9 + $0x78] sm:$0xff] }
  0x15   : > { %v305_v36 = vld [vmem:[%s1024_s9 + $0x30] sm:$0xff]  ;;  %v315_v37 = vld [vmem:[%s1024_s9 + $0x80] sm:$0xff]  ;;  %v306_v38 = vld [vmem:[%s1024_s9 + $0x38] sm:$0xff] }
  0x16   : > { %v316_v39 = vld [vmem:[%s1024_s9 + $0x88] sm:$0xff]  ;;  %v307_v40 = vld [vmem:[%s1024_s9 + $0x40] sm:$0xff] }
  0x17   : > { %873 = vmatpush3.bf16.msra.mxu0 %v870_v13  ;;  %901 = vmatpush3.bf16.msra.mxu1 %v870_v13  ;;  %v308_v41 = vld [vmem:[%s1024_s9 + $0x48] sm:$0xff] }
  0x18   : > { %875 = vmatprep.subr.bf16.mxu0 %v874_v16  ;;  %894 = vmatprep.subr.bf16.mxu1 %v874_v16 }
  0x1b   : > { %877 = vmatpush3.bf16.msra.mxu0 %v874_v16  ;;  %902 = vmatpush3.bf16.msra.mxu1 %v874_v16 }
  0x1c   : > { %879 = vmatprep.subr.bf16.mxu0 %v878_v19  ;;  %895 = vmatprep.subr.bf16.mxu1 %v878_v19 }
  0x1f   : > { %881 = vmatpush3.bf16.msra.mxu0 %v878_v19  ;;  %903 = vmatpush3.bf16.msra.mxu1 %v878_v19 }
  0x20   : > { %883 = vmatprep.subr.bf16.mxu0 %v882_v22  ;;  %896 = vmatprep.subr.bf16.mxu1 %v882_v22 }
  0x23   : > { %885 = vmatpush3.bf16.msra.mxu0 %v882_v22  ;;  %904 = vmatpush3.bf16.msra.mxu1 %v882_v22 }
  0x24   : > { %887 = vmatprep.subr.bf16.mxu0 %v886_v25  ;;  %897 = vmatprep.subr.bf16.mxu1 %v886_v25 }
  0x27   : > { %889 = vmatpush3.bf16.msra.mxu0 %v886_v25  ;;  %905 = vmatpush3.bf16.msra.mxu1 %v886_v25 }
  0x2a   : > { %832 = vmatmul.mubr.f32.vlgmr.msra.gmra.mrb[0].mxu0 %v300_v26  ;;  %847 = vmatmul.mubr.f32.vlgmr.msra.gmra.mrb[0].mxu1 %v310_v27 }
  0x2b   : > { %834 = vmatprep.mubr.f32.mxu0 %v301_v28  ;;  %849 = vmatprep.mubr.f32.mxu1 %v311_v29 }
  0x2e   : > { %835 = vmatmul.mubr.f32.gmra.mrb[2].mxu0 %v302_v30  ;;  %850 = vmatmul.mubr.f32.gmra.mrb[2].mxu1 %v312_v31 }
  0x2f   : > { %837 = vmatprep.mubr.f32.mxu0 %v303_v32  ;;  %852 = vmatprep.mubr.f32.mxu1 %v313_v33 }
  0x32   : > { %838 = vmatmul.mubr.f32.gmra.mrb[4].mxu0 %v304_v34  ;;  %853 = vmatmul.mubr.f32.gmra.mrb[4].mxu1 %v314_v35 }
  0x33   : > { %840 = vmatprep.mubr.f32.mxu0 %v305_v36  ;;  %855 = vmatprep.mubr.f32.mxu1 %v315_v37 }
  0x36   : > { %841 = vmatmul.mubr.f32.gmra.mrb[6].mxu0 %v306_v38  ;;  %856 = vmatmul.mubr.f32.gmra.mrb[6].mxu1 %v316_v39 }
  0x37   : > { %843 = vmatprep.mubr.f32.mxu0 %v307_v40 }
  0x3a   : > { %844 = vmatmul.mubr.f32.gmra.mrb[8].mxu0 %v308_v41 }
  0xfd   : > { %v833_v43 = vpop.f32.mrb[0].mxu0  ;;  %v848_v44 = vpop.f32.mrb[0].mxu1 }
  0xfe   : > { %v553_v45 = vadd.f32 %v833_v43, %v1071_v42  ;;  %v399_v46 = vpop.f32.mrb[1].mxu0  ;;  %v563_v47 = vadd.f32 %v848_v44, %v1071_v42  ;;  %v449_v48 = vpop.f32.mrb[1].mxu1 }
  0xff   : > { %v552_v49 = vadd.f32 %v1071_v42, %v399_v46  ;;  %v562_v50 = vadd.f32 %v1071_v42, %v449_v48 }
 0x100   : > { %vm571_vm0 = vcmp.gt.f32.partialorder %v553_v45, 0.0  ;;  %v589_v51 = vmul.f32 0.01, %v553_v45  ;;  %vm581_vm1 = vcmp.gt.f32.partialorder %v563_v47, 0.0  ;;  %v599_v52 = vmul.f32 0.01, %v563_v47 }
 0x101   : > { %vm570_vm2 = vcmp.gt.f32.partialorder %v552_v49, 0.0  ;;  %v588_v53 = vmul.f32 0.01, %v552_v49  ;;  %vm580_vm3 = vcmp.gt.f32.partialorder %v562_v50, 0.0  ;;  %v598_v54 = vmul.f32 0.01, %v562_v50 }
 0x102   : > { %v607_v55 = vsel %vm571_vm0, %v553_v45, %v589_v51  ;;  %v617_v56 = vsel %vm581_vm1, %v563_v47, %v599_v52  ;;  %v836_v57 = vpop.f32.mrb[2].mxu0  ;;  %v851_v58 = vpop.f32.mrb[2].mxu1 }
 0x103   : > { %625 = vst [vmem:[%s1082_s8 + $0x8] sm:$0xff] %v607_v55  ;;  %v606_v59 = vsel %vm570_vm2, %v552_v49, %v588_v53  ;;  %635 = vst [vmem:[%s1082_s8 + $0x58] sm:$0xff] %v617_v56  ;;  %v616_v60 = vsel %vm580_vm3, %v562_v50, %v598_v54  ;;  %v555_v61 = vadd.f32 %v836_v57, %v1071_v42  ;;  %v409_v62 = vpop.f32.mrb[3].mxu0  ;;  %v459_v0 = vpop.f32.mrb[3].mxu1 }
 0x104   : > { %v565_v63 = vadd.f32 %v851_v58, %v1071_v42  ;;  %624 = vst [vmem:[%s1082_s8] sm:$0xff] %v606_v59  ;;  %634 = vst [vmem:[%s1082_s8 + $0x50] sm:$0xff] %v616_v60  ;;  %v554_v1 = vadd.f32 %v1071_v42, %v409_v62  ;;  %v564_v2 = vadd.f32 %v1071_v42, %v459_v0 }
 0x105   : > { %vm573_vm4 = vcmp.gt.f32.partialorder %v555_v61, 0.0  ;;  %v591_v3 = vmul.f32 0.01, %v555_v61  ;;  %v839_v9 = vpop.f32.mrb[4].mxu0  ;;  %v854_v10 = vpop.f32.mrb[4].mxu1 }
 0x106   : > { %vm583_vm5 = vcmp.gt.f32.partialorder %v565_v63, 0.0  ;;  %v601_v4 = vmul.f32 0.01, %v565_v63  ;;  %vm572_vm6 = vcmp.gt.f32.partialorder %v554_v1, 0.0  ;;  %v590_v5 = vmul.f32 0.01, %v554_v1 }
 0x107   : > { %vm582_vm7 = vcmp.gt.f32.partialorder %v564_v2, 0.0  ;;  %v600_v6 = vmul.f32 0.01, %v564_v2  ;;  %v609_v7 = vsel %vm573_vm4, %v555_v61, %v591_v3  ;;  %v557_v13 = vadd.f32 %v839_v9, %v1071_v42  ;;  %v419_v14 = vpop.f32.mrb[5].mxu0  ;;  %v469_v16 = vpop.f32.mrb[5].mxu1 }
 0x108   : > { %v619_v8 = vsel %vm583_vm5, %v565_v63, %v601_v4  ;;  %627 = vst [vmem:[%s1082_s8 + $0x18] sm:$0xff] %v609_v7  ;;  %v608_v11 = vsel %vm572_vm6, %v554_v1, %v590_v5  ;;  %v567_v15 = vadd.f32 %v854_v10, %v1071_v42  ;;  %v556_v17 = vadd.f32 %v1071_v42, %v419_v14 }
 0x109   : > { %637 = vst [vmem:[%s1082_s8 + $0x68] sm:$0xff] %v619_v8  ;;  %v618_v12 = vsel %vm582_vm7, %v564_v2, %v600_v6  ;;  %626 = vst [vmem:[%s1082_s8 + $0x10] sm:$0xff] %v608_v11  ;;  %v566_v18 = vadd.f32 %v1071_v42, %v469_v16  ;;  %v842_v19 = vpop.f32.mrb[6].mxu0  ;;  %v857_v20 = vpop.f32.mrb[6].mxu1  ;;  %vm575_vm8 = vcmp.gt.f32.partialorder %v557_v13, 0.0 }
 0x10a   : > { %636 = vst [vmem:[%s1082_s8 + $0x60] sm:$0xff] %v618_v12  ;;  %v593_v21 = vmul.f32 0.01, %v557_v13  ;;  %vm585_vm9 = vcmp.gt.f32.partialorder %v567_v15, 0.0  ;;  %v603_v22 = vmul.f32 0.01, %v567_v15  ;;  %v559_v27 = vadd.f32 %v842_v19, %v1071_v42 }
 0x10b   : > { %vm574_vm10 = vcmp.gt.f32.partialorder %v556_v17, 0.0  ;;  %v592_v23 = vmul.f32 0.01, %v556_v17  ;;  %vm584_vm11 = vcmp.gt.f32.partialorder %v566_v18, 0.0  ;;  %v602_v24 = vmul.f32 0.01, %v566_v18 }
 0x10c   : > { %v611_v25 = vsel %vm575_vm8, %v557_v13, %v593_v21  ;;  %v621_v26 = vsel %vm585_vm9, %v567_v15, %v603_v22  ;;  %v429_v28 = vpop.f32.mrb[7].mxu0  ;;  %v569_v29 = vadd.f32 %v857_v20, %v1071_v42  ;;  %v479_v30 = vpop.f32.mrb[7].mxu1  ;;  %vm577_vm12 = vcmp.gt.f32.partialorder %v559_v27, 0.0 }
 0x10d   : > { %629 = vst [vmem:[%s1082_s8 + $0x28] sm:$0xff] %v611_v25  ;;  %v610_v31 = vsel %vm574_vm10, %v556_v17, %v592_v23  ;;  %639 = vst [vmem:[%s1082_s8 + $0x78] sm:$0xff] %v621_v26  ;;  %v620_v32 = vsel %vm584_vm11, %v566_v18, %v602_v24  ;;  %v558_v33 = vadd.f32 %v1071_v42, %v429_v28  ;;  %v845_v35 = vpop.f32.mrb[8].mxu0  ;;  %v595_v36 = vmul.f32 0.01, %v559_v27 }
 0x10e   : > { %v568_v34 = vadd.f32 %v1071_v42, %v479_v30  ;;  %628 = vst [vmem:[%s1082_s8 + $0x20] sm:$0xff] %v610_v31  ;;  %638 = vst [vmem:[%s1082_s8 + $0x70] sm:$0xff] %v620_v32  ;;  %vm587_vm13 = vcmp.gt.f32.partialorder %v569_v29, 0.0  ;;  %v605_v37 = vmul.f32 0.01, %v569_v29  ;;  %v561_v43 = vadd.f32 %v845_v35, %v1071_v42  ;;  %v439_v44 = vpop.f32.mrb[9].mxu0 }
 0x10f   : > { %vm576_vm14 = vcmp.gt.f32.partialorder %v558_v33, 0.0  ;;  %v594_v38 = vmul.f32 0.01, %v558_v33  ;;  %v613_v40 = vsel %vm577_vm12, %v559_v27, %v595_v36  ;;  %v560_v47 = vadd.f32 %v1071_v42, %v439_v44 }
 0x110   : > { %vm586_vm15 = vcmp.gt.f32.partialorder %v568_v34, 0.0  ;;  %v604_v39 = vmul.f32 0.01, %v568_v34  ;;  %v623_v41 = vsel %vm587_vm13, %v569_v29, %v605_v37  ;;  %631 = vst [vmem:[%s1082_s8 + $0x38] sm:$0xff] %v613_v40  ;;  %vm579_vm0 = vcmp.gt.f32.partialorder %v561_v43, 0.0 }
 0x111   : > { %v612_v45 = vsel %vm576_vm14, %v558_v33, %v594_v38  ;;  %641 = vst [vmem:[%s1082_s8 + $0x88] sm:$0xff] %v623_v41  ;;  %v597_v48 = vmul.f32 0.01, %v561_v43  ;;  %vm578_vm1 = vcmp.gt.f32.partialorder %v560_v47, 0.0  ;;  %v596_v49 = vmul.f32 0.01, %v560_v47 }
 0x112   : > { %v622_v46 = vsel %vm586_vm15, %v568_v34, %v604_v39  ;;  %630 = vst [vmem:[%s1082_s8 + $0x30] sm:$0xff] %v612_v45 }
 0x113   : > { %640 = vst [vmem:[%s1082_s8 + $0x80] sm:$0xff] %v622_v46  ;;  %v615_v50 = vsel %vm579_vm0, %v561_v43, %v597_v48  ;;  %v614_v51 = vsel %vm578_vm1, %v560_v47, %v596_v49 }
 0x114   : > { %633 = vst [vmem:[%s1082_s8 + $0x48] sm:$0xff] %v615_v50  ;;  %632 = vst [vmem:[%s1082_s8 + $0x40] sm:$0xff] %v614_v51 }
 0x115 PF: > { %s13_s14 = sadd.s32 1, %s952_s14   ;;  %s1129_s12 = smov %s948_s13 }
 0x116   : > { %p10_p5 = scmp.ge.s32.totalorder %s13_s14, 4   ;;  %s1130_s13 = smov %s1132_s15 }
 0x118   :  { %12 = sbr.rel (!%p10_p5) target bundleno = 2 (0x2), region = 76 }

// kernel: actor_forward.10
= control target key start
LH: loop header
LB: loop body
LE: loop exit
PB: predicated region body
PF: predicated region fallthrough
CT: control target
= control target key end

     0   :  { %s750_s1 = inlined_call_operand.vmem [shape: f32[512,128], index: 1, kind: input, shape index: {}]   ;;  %s751_s0 = inlined_call_operand.vmem [shape: f32[32,512], index: 0, kind: input, shape index: {}]   ;;  %s752_s2 = inlined_call_operand.vmem [shape: f32[1,128], index: 2, kind: input, shape index: {}]   ;;  %s753_s3 = inlined_call_operand.vmem [shape: f32[32,128], index: 3, kind: output, shape index: {}]  }
   0x1   :  { %v58_v0 = vld [vmem:[%s750_s1 + $0x80] sm:$0xff]  ;;  %v59_v1 = vld [vmem:[%s750_s1 + $0x88] sm:$0xff]  ;;  %v60_v11 = vld [vmem:[%s750_s1 + $0x90] sm:$0xff] }
   0x2   :  { %v90_v2 = vld [vmem:[%s750_s1 + $0x180] sm:$0xff]  ;;  %v411_v3 = vpack.c.bf16 %v59_v1, %v58_v0  ;;  %v91_v4 = vld [vmem:[%s750_s1 + $0x188] sm:$0xff]  ;;  %v61_v13 = vld [vmem:[%s750_s1 + $0x98] sm:$0xff] }
   0x3   :  { %v42_v5 = vld [vmem:[%s750_s1] sm:$0xff]  ;;  %v43_v6 = vld [vmem:[%s750_s1 + $0x8] sm:$0xff]  ;;  %v443_v7 = vpack.c.bf16 %v91_v4, %v90_v2  ;;  %v92_v14 = vld [vmem:[%s750_s1 + $0x190] sm:$0xff]  ;;  %v415_v16 = vpack.c.bf16 %v61_v13, %v60_v11 }
   0x4   :  { %v413_v8 = vpack.c.bf16 %v43_v6, %v42_v5  ;;  %v74_v9 = vld [vmem:[%s750_s1 + $0x100] sm:$0xff]  ;;  %v75_v10 = vld [vmem:[%s750_s1 + $0x108] sm:$0xff]  ;;  %412 = vmatprep.subr.bf16.mxu0 %v411_v3  ;;  %v93_v15 = vld [vmem:[%s750_s1 + $0x198] sm:$0xff] }
   0x5   :  { %v445_v12 = vpack.c.bf16 %v75_v10, %v74_v9  ;;  %444 = vmatprep.subr.bf16.mxu1 %v443_v7  ;;  %v447_v17 = vpack.c.bf16 %v93_v15, %v92_v14  ;;  %v44_v18 = vld [vmem:[%s750_s1 + $0x10] sm:$0xff]  ;;  %v45_v19 = vld [vmem:[%s750_s1 + $0x18] sm:$0xff]  ;;  %v62_v23 = vld [vmem:[%s750_s1 + $0xa0] sm:$0xff] }
   0x6   :  { %414 = vmatpush3.bf16.msra.mxu0 %v413_v8  ;;  %v76_v20 = vld [vmem:[%s750_s1 + $0x110] sm:$0xff]  ;;  %v417_v21 = vpack.c.bf16 %v45_v19, %v44_v18  ;;  %v77_v22 = vld [vmem:[%s750_s1 + $0x118] sm:$0xff]  ;;  %v63_v24 = vld [vmem:[%s750_s1 + $0xa8] sm:$0xff] }
   0x7   :  { %446 = vmatpush3.bf16.msra.mxu1 %v445_v12  ;;  %416 = vmatprep.subr.bf16.mxu0 %v415_v16  ;;  %v449_v25 = vpack.c.bf16 %v77_v22, %v76_v20  ;;  %v419_v26 = vpack.c.bf16 %v63_v24, %v62_v23  ;;  %v94_v27 = vld [vmem:[%s750_s1 + $0x1a0] sm:$0xff]  ;;  %v95_v28 = vld [vmem:[%s750_s1 + $0x1a8] sm:$0xff]  ;;  %v64_v35 = vld [vmem:[%s750_s1 + $0xb0] sm:$0xff] }
   0x8   :  { %448 = vmatprep.subr.bf16.mxu1 %v447_v17  ;;  %v46_v29 = vld [vmem:[%s750_s1 + $0x20] sm:$0xff]  ;;  %v451_v30 = vpack.c.bf16 %v95_v28, %v94_v27  ;;  %v47_v31 = vld [vmem:[%s750_s1 + $0x28] sm:$0xff]  ;;  %v65_v36 = vld [vmem:[%s750_s1 + $0xb8] sm:$0xff] }
   0x9   :  { %v78_v32 = vld [vmem:[%s750_s1 + $0x120] sm:$0xff]  ;;  %v79_v33 = vld [vmem:[%s750_s1 + $0x128] sm:$0xff]  ;;  %v421_v34 = vpack.c.bf16 %v47_v31, %v46_v29  ;;  %v96_v37 = vld [vmem:[%s750_s1 + $0x1b0] sm:$0xff]  ;;  %v423_v39 = vpack.c.bf16 %v65_v36, %v64_v35 }
   0xa   :  { %418 = vmatpush3.bf16.msra.mxu0 %v417_v21  ;;  %v453_v38 = vpack.c.bf16 %v79_v33, %v78_v32  ;;  %v97_v40 = vld [vmem:[%s750_s1 + $0x1b8] sm:$0xff]  ;;  %v48_v41 = vld [vmem:[%s750_s1 + $0x30] sm:$0xff]  ;;  %v66_v46 = vld [vmem:[%s750_s1 + $0xc0] sm:$0xff] }
   0xb   :  { %450 = vmatpush3.bf16.msra.mxu1 %v449_v25  ;;  %420 = vmatprep.subr.bf16.mxu0 %v419_v26  ;;  %v49_v42 = vld [vmem:[%s750_s1 + $0x38] sm:$0xff]  ;;  %v455_v43 = vpack.c.bf16 %v97_v40, %v96_v37  ;;  %v80_v44 = vld [vmem:[%s750_s1 + $0x130] sm:$0xff]  ;;  %v67_v47 = vld [vmem:[%s750_s1 + $0xc8] sm:$0xff] }
   0xc   :  { %452 = vmatprep.subr.bf16.mxu1 %v451_v30  ;;  %v81_v45 = vld [vmem:[%s750_s1 + $0x138] sm:$0xff]  ;;  %v98_v48 = vld [vmem:[%s750_s1 + $0x1c0] sm:$0xff]  ;;  %v99_v49 = vld [vmem:[%s750_s1 + $0x1c8] sm:$0xff]  ;;  %v425_v50 = vpack.c.bf16 %v49_v42, %v48_v41  ;;  %v427_v52 = vpack.c.bf16 %v67_v47, %v66_v46 }
   0xd   :  { %v457_v51 = vpack.c.bf16 %v81_v45, %v80_v44  ;;  %v50_v53 = vld [vmem:[%s750_s1 + $0x40] sm:$0xff]  ;;  %v51_v54 = vld [vmem:[%s750_s1 + $0x48] sm:$0xff]  ;;  %v459_v56 = vpack.c.bf16 %v99_v49, %v98_v48  ;;  %v68_v58 = vld [vmem:[%s750_s1 + $0xd0] sm:$0xff] }
   0xe   :  { %422 = vmatpush3.bf16.msra.mxu0 %v421_v34  ;;  %v82_v55 = vld [vmem:[%s750_s1 + $0x140] sm:$0xff]  ;;  %v83_v57 = vld [vmem:[%s750_s1 + $0x148] sm:$0xff]  ;;  %v69_v59 = vld [vmem:[%s750_s1 + $0xd8] sm:$0xff]  ;;  %v429_v62 = vpack.c.bf16 %v51_v54, %v50_v53 }
   0xf   :  { %454 = vmatpush3.bf16.msra.mxu1 %v453_v38  ;;  %424 = vmatprep.subr.bf16.mxu0 %v423_v39  ;;  %v100_v60 = vld [vmem:[%s750_s1 + $0x1d0] sm:$0xff]  ;;  %v101_v61 = vld [vmem:[%s750_s1 + $0x1d8] sm:$0xff]  ;;  %v461_v63 = vpack.c.bf16 %v83_v57, %v82_v55  ;;  %v431_v0 = vpack.c.bf16 %v69_v59, %v68_v58  ;;  %v70_v6 = vld [vmem:[%s750_s1 + $0xe0] sm:$0xff] }
  0x10   :  { %456 = vmatprep.subr.bf16.mxu1 %v455_v43  ;;  %v52_v1 = vld [vmem:[%s750_s1 + $0x50] sm:$0xff]  ;;  %v53_v2 = vld [vmem:[%s750_s1 + $0x58] sm:$0xff]  ;;  %v463_v4 = vpack.c.bf16 %v101_v61, %v100_v60  ;;  %v71_v7 = vld [vmem:[%s750_s1 + $0xe8] sm:$0xff] }
  0x11   :  { %v84_v3 = vld [vmem:[%s750_s1 + $0x150] sm:$0xff]  ;;  %v85_v5 = vld [vmem:[%s750_s1 + $0x158] sm:$0xff]  ;;  %v102_v8 = vld [vmem:[%s750_s1 + $0x1e0] sm:$0xff]  ;;  %v433_v10 = vpack.c.bf16 %v53_v2, %v52_v1  ;;  %v435_v14 = vpack.c.bf16 %v71_v7, %v70_v6 }
  0x12   :  { %426 = vmatpush3.bf16.msra.mxu0 %v425_v50  ;;  %v103_v9 = vld [vmem:[%s750_s1 + $0x1e8] sm:$0xff]  ;;  %v54_v11 = vld [vmem:[%s750_s1 + $0x60] sm:$0xff]  ;;  %v465_v13 = vpack.c.bf16 %v85_v5, %v84_v3  ;;  %v29_v17 = vld [vmem:[%s751_s0 + $0x18] sm:$0xff] }
  0x13   :  { %458 = vmatpush3.bf16.msra.mxu1 %v457_v51  ;;  %428 = vmatprep.subr.bf16.mxu0 %v427_v52  ;;  %v55_v12 = vld [vmem:[%s750_s1 + $0x68] sm:$0xff]  ;;  %v86_v15 = vld [vmem:[%s750_s1 + $0x160] sm:$0xff]  ;;  %v467_v18 = vpack.c.bf16 %v103_v9, %v102_v8  ;;  %v72_v20 = vld [vmem:[%s750_s1 + $0xf0] sm:$0xff] }
  0x14   :  { %460 = vmatprep.subr.bf16.mxu1 %v459_v56  ;;  %v27_v16 = vld [vmem:[%s751_s0 + $0x8] sm:$0xff]  ;;  %v73_v21 = vld [vmem:[%s750_s1 + $0xf8] sm:$0xff]  ;;  %v104_v22 = vld [vmem:[%s750_s1 + $0x1f0] sm:$0xff]  ;;  %255 = vmatprep.mubr.f32.mxu1 %v29_v17  ;;  %v437_v24 = vpack.c.bf16 %v55_v12, %v54_v11 }
  0x15   :  { %v87_v19 = vld [vmem:[%s750_s1 + $0x168] sm:$0xff]  ;;  %170 = vmatprep.mubr.f32.mxu0 %v27_v16  ;;  %v105_v23 = vld [vmem:[%s750_s1 + $0x1f8] sm:$0xff]  ;;  %v439_v26 = vpack.c.bf16 %v73_v21, %v72_v20  ;;  %v56_v27 = vld [vmem:[%s750_s1 + $0x70] sm:$0xff] }
  0x16   :  { %430 = vmatpush3.bf16.msra.mxu0 %v429_v62  ;;  %v469_v25 = vpack.c.bf16 %v87_v19, %v86_v15  ;;  %v57_v28 = vld [vmem:[%s750_s1 + $0x78] sm:$0xff]  ;;  %v471_v29 = vpack.c.bf16 %v105_v23, %v104_v22  ;;  %v88_v30 = vld [vmem:[%s750_s1 + $0x170] sm:$0xff]  ;;  %v26_v34 = vld [vmem:[%s751_s0] sm:$0xff] }
  0x17   :  { %462 = vmatpush3.bf16.msra.mxu1 %v461_v63  ;;  %432 = vmatprep.subr.bf16.mxu0 %v431_v0  ;;  %v89_v31 = vld [vmem:[%s750_s1 + $0x178] sm:$0xff]  ;;  %v441_v32 = vpack.c.bf16 %v57_v28, %v56_v27  ;;  %v28_v35 = vld [vmem:[%s751_s0 + $0x10] sm:$0xff]  ;;  %v31_v36 = vld [vmem:[%s751_s0 + $0x28] sm:$0xff] }
  0x18   :  { %464 = vmatprep.subr.bf16.mxu1 %v463_v4  ;;  %v473_v33 = vpack.c.bf16 %v89_v31, %v88_v30  ;;  %v33_v37 = vld [vmem:[%s751_s0 + $0x38] sm:$0xff]  ;;  %v30_v38 = vld [vmem:[%s751_s0 + $0x20] sm:$0xff]  ;;  %v32_v39 = vld [vmem:[%s751_s0 + $0x30] sm:$0xff] }
  0x19   :  { %v35_v40 = vld [vmem:[%s751_s0 + $0x48] sm:$0xff]  ;;  %v37_v41 = vld [vmem:[%s751_s0 + $0x58] sm:$0xff]  ;;  %v34_v42 = vld [vmem:[%s751_s0 + $0x40] sm:$0xff] }
  0x1a   :  { %434 = vmatpush3.bf16.msra.mxu0 %v433_v10  ;;  %v36_v43 = vld [vmem:[%s751_s0 + $0x50] sm:$0xff]  ;;  %v39_v44 = vld [vmem:[%s751_s0 + $0x68] sm:$0xff]  ;;  %v41_v45 = vld [vmem:[%s751_s0 + $0x78] sm:$0xff] }
  0x1b   :  { %466 = vmatpush3.bf16.msra.mxu1 %v465_v13  ;;  %436 = vmatprep.subr.bf16.mxu0 %v435_v14  ;;  %v38_v46 = vld [vmem:[%s751_s0 + $0x60] sm:$0xff]  ;;  %v40_v47 = vld [vmem:[%s751_s0 + $0x70] sm:$0xff] }
  0x1c   :  { %468 = vmatprep.subr.bf16.mxu1 %v467_v18  ;;  %v322_v54 = vld [vmem:[%s752_s2] ss:$0 sm:$0xff] }
  0x1e   :  { %438 = vmatpush3.bf16.msra.mxu0 %v437_v24 }
  0x1f   :  { %470 = vmatpush3.bf16.msra.mxu1 %v469_v25  ;;  %440 = vmatprep.subr.bf16.mxu0 %v439_v26 }
  0x20   :  { %472 = vmatprep.subr.bf16.mxu1 %v471_v29 }
  0x22   :  { %442 = vmatpush3.bf16.msra.mxu0 %v441_v32 }
  0x23   :  { %474 = vmatpush3.bf16.msra.mxu1 %v473_v33 }
  0x25   :  { %171 = vmatmul.mubr.f32.vlgmr.msra.gmra.mrb[0].mxu0 %v26_v34 }
  0x26   :  { %256 = vmatmul.mubr.f32.vlgmr.msra.gmra.mrb[0].mxu1 %v28_v35  ;;  %175 = vmatprep.mubr.f32.mxu0 %v31_v36 }
  0x27   :  { %260 = vmatprep.mubr.f32.mxu1 %v33_v37 }
  0x29   :  { %176 = vmatmul.mubr.f32.gmra.mrb[2].mxu0 %v30_v38 }
  0x2a   :  { %261 = vmatmul.mubr.f32.gmra.mrb[2].mxu1 %v32_v39  ;;  %180 = vmatprep.mubr.f32.mxu0 %v35_v40 }
  0x2b   :  { %265 = vmatprep.mubr.f32.mxu1 %v37_v41 }
  0x2d   :  { %181 = vmatmul.mubr.f32.gmra.mrb[4].mxu0 %v34_v42 }
  0x2e   :  { %266 = vmatmul.mubr.f32.gmra.mrb[4].mxu1 %v36_v43  ;;  %185 = vmatprep.mubr.f32.mxu0 %v39_v44 }
  0x2f   :  { %270 = vmatprep.mubr.f32.mxu1 %v41_v45 }
  0x31   :  { %186 = vmatmul.mubr.f32.gmra.mrb[6].mxu0 %v38_v46 }
  0x32   :  { %271 = vmatmul.mubr.f32.gmra.mrb[6].mxu1 %v40_v47 }
  0xf8   :  { %v355_v48 = vpop.f32.mrb[0].mxu0 }
  0xf9   :  { %v399_v49 = vpop.f32.mrb[0].mxu1  ;;  %v356_v50 = vpop.f32.mrb[1].mxu0 }
  0xfa   :  { %v357_v51 = vadd.f32 %v356_v50, %v355_v48  ;;  %v400_v52 = vpop.f32.mrb[1].mxu1 }
  0xfb   :  { %v401_v53 = vadd.f32 %v400_v52, %v399_v49 }
  0xfc   :  { %v358_v55 = vpop.f32.mrb[2].mxu0 }
  0xfd   :  { %v258_v56 = vadd.f32 %v401_v53, %v357_v51  ;;  %v402_v57 = vpop.f32.mrb[2].mxu1  ;;  %v359_v58 = vpop.f32.mrb[3].mxu0 }
  0xfe   :  { %v360_v59 = vadd.f32 %v359_v58, %v358_v55  ;;  %v403_v60 = vpop.f32.mrb[3].mxu1 }
  0xff   :  { %v298_v61 = vadd.f32 %v322_v54, %v258_v56  ;;  %v404_v62 = vadd.f32 %v403_v60, %v402_v57 }
 0x100   :  { %v361_v63 = vpop.f32.mrb[4].mxu0 }
 0x101   :  { %vm302_vm0 = vcmp.gt.f32.partialorder %v298_v61, 0.0  ;;  %v306_v0 = vmul.f32 0.01, %v298_v61  ;;  %v263_v1 = vadd.f32 %v404_v62, %v360_v59  ;;  %v405_v2 = vpop.f32.mrb[4].mxu1  ;;  %v362_v3 = vpop.f32.mrb[5].mxu0 }
 0x102   :  { %v363_v4 = vadd.f32 %v362_v3, %v361_v63  ;;  %v406_v5 = vpop.f32.mrb[5].mxu1 }
 0x103   :  { %v310_v6 = vsel %vm302_vm0, %v298_v61, %v306_v0  ;;  %v299_v7 = vadd.f32 %v322_v54, %v263_v1  ;;  %v407_v8 = vadd.f32 %v406_v5, %v405_v2 }
 0x104   :  { %314 = vst [vmem:[%s753_s3] sm:$0xff] %v310_v6  ;;  %v364_v9 = vpop.f32.mrb[6].mxu0 }
 0x105   :  { %vm303_vm1 = vcmp.gt.f32.partialorder %v299_v7, 0.0  ;;  %v307_v10 = vmul.f32 0.01, %v299_v7  ;;  %v268_v11 = vadd.f32 %v407_v8, %v363_v4  ;;  %v408_v12 = vpop.f32.mrb[6].mxu1  ;;  %v365_v13 = vpop.f32.mrb[7].mxu0 }
 0x106   :  { %v366_v14 = vadd.f32 %v365_v13, %v364_v9  ;;  %v409_v15 = vpop.f32.mrb[7].mxu1 }
 0x107   :  { %v311_v16 = vsel %vm303_vm1, %v299_v7, %v307_v10  ;;  %v300_v17 = vadd.f32 %v322_v54, %v268_v11  ;;  %v410_v18 = vadd.f32 %v409_v15, %v408_v12 }
 0x108   :  { %315 = vst [vmem:[%s753_s3 + $0x8] sm:$0xff] %v311_v16 }
 0x109   :  { %vm304_vm2 = vcmp.gt.f32.partialorder %v300_v17, 0.0  ;;  %v308_v19 = vmul.f32 0.01, %v300_v17  ;;  %v273_v20 = vadd.f32 %v410_v18, %v366_v14 }
 0x10b   :  { %v312_v21 = vsel %vm304_vm2, %v300_v17, %v308_v19  ;;  %v301_v22 = vadd.f32 %v322_v54, %v273_v20 }
 0x10c   :  { %316 = vst [vmem:[%s753_s3 + $0x10] sm:$0xff] %v312_v21 }
 0x10d   :  { %vm305_vm3 = vcmp.gt.f32.partialorder %v301_v22, 0.0  ;;  %v309_v23 = vmul.f32 0.01, %v301_v22 }
 0x10f   :  { %v313_v24 = vsel %vm305_vm3, %v301_v22, %v309_v23 }
 0x110   :  { %317 = vst [vmem:[%s753_s3 + $0x18] sm:$0xff] %v313_v24 }

// kernel: actor_forward.11
= control target key start
LH: loop header
LB: loop body
LE: loop exit
PB: predicated region body
PF: predicated region fallthrough
CT: control target
= control target key end

     0   :  { %s1138_s12 = smov 0   ;;  %s1140_s13 = smov 0   ;;  %s1417_s0 = inlined_call_operand.vmem [shape: f32[8,512], index: 0, kind: input, shape index: {}]   ;;  %s1418_s1 = inlined_call_operand.vmem [shape: f32[512,1024], index: 1, kind: input, shape index: {}]   ;;  %s1419_s2 = inlined_call_operand.vmem [shape: f32[1,1024], index: 2, kind: input, shape index: {}]   ;;  %s1420_s3 = inlined_call_operand.vmem [shape: f32[8,1024], index: 3, kind: output, shape index: {}]  }
   0x1   :  { %s1142_s14 = smov 0   ;;  %s1144_s15 = smov 0  }
   0x2   :  { %s1146_s16 = smov 0  }
   0x3 LB: > { %s28_s17 = sadd.s32 1, %s1112_s15  ;;  %p76_p1 = scmp.ne.s32.totalorder %s1104_s13, %s1100_s12  ;;  %s1116_s16 = sphi %s1146_s16, %s13_s16   ;;  %s1112_s15 = sphi %s1144_s15, %s1424_s15   ;;  %s1108_s14 = sphi %s1142_s14, %s1423_s14   ;;  %s1104_s13 = sphi %s1140_s13, %s1422_s13   ;;  %s1100_s12 = sphi %s1138_s12, %s1421_s12  }
   0x4   : > { %p30_p0 = scmp.ge.s32.totalorder %s28_s17, 8  ;;  %p77_p2 = scmp.eq.s32.totalorder %s1116_s16, 0 }
   0x5   : > { %s69_s19 = sadd.s32 1, %s1104_s13  ;;  %p895_p5 = scmp.ge.s32.totalorder %s1116_s16, 8 }
   0x6   : > { %s1426_s17 = smov (%p30_p0, %s28_s17), 0  ;;  %p78_p3 = por %p77_p2, %p76_p1 }
   0x7   : > { %s65_s18 = ssub.s32 %s1112_s15, %s1426_s17  ;;  %169 = sbr.rel (%p895_p5) target bundleno = 82 (0x52), region = 20 }
   0x8   : > { %p67_p4 = scmp.eq.s32.totalorder %s65_s18, 0 }
   0xa   : > { %s1173_s20 = scalar_select %p67_p4, %s1104_s13, %s69_s19  }
   0xe   : > { %172 = sbr.rel (!%p78_p3) target bundleno = 82 (0x52), region = 24  ;;  %s174_s21 = sand.u32 (%p78_p3), 1, %s1104_s13  }
   0xf   : > { %s897_s22 = sshll.u32 (%p78_p3), %s1112_s15, 3  ;;  %s896_s23 = sshll.u32 (%p78_p3), %s174_s21, 9 }
  0x10   : > { %s1181_s26 = scalar_lea.vmem (%p78_p3), %s1418_s1, %s897_s22  ;;  %s1186_s27 = scalar_lea.vmem (%p78_p3), [#allocation3], %s896_s23 }
  0x11   : > { %v335_v0 = vld [vmem:[%s1181_s26] sm:$0xff] (%p78_p3) }
  0x12   : > { %v337_v1 = vld [vmem:[%s1181_s26 + $0x40] sm:$0xff] (%p78_p3)  ;;  %336 = vst [vmem:[%s1186_s27] sm:$0xff] (%p78_p3), %v335_v0 }
  0x13   : > { %v339_v2 = vld [vmem:[%s1181_s26 + $0x80] sm:$0xff] (%p78_p3)  ;;  %338 = vst [vmem:[%s1186_s27 + $0x8] sm:$0xff] (%p78_p3), %v337_v1 }
  0x14   : > { %340 = vst [vmem:[%s1186_s27 + $0x10] sm:$0xff] (%p78_p3), %v339_v2  ;;  %v341_v3 = vld [vmem:[%s1181_s26 + $0xc0] sm:$0xff] (%p78_p3) }
  0x15   : > { %v343_v4 = vld [vmem:[%s1181_s26 + $0x100] sm:$0xff]  ;;  %342 = vst [vmem:[%s1186_s27 + $0x18] sm:$0xff] %v341_v3 }
  0x16   : > { %v345_v5 = vld [vmem:[%s1181_s26 + $0x140] sm:$0xff]  ;;  %344 = vst [vmem:[%s1186_s27 + $0x20] sm:$0xff] %v343_v4 }
  0x17   : > { %346 = vst [vmem:[%s1186_s27 + $0x28] sm:$0xff] %v345_v5  ;;  %v347_v6 = vld [vmem:[%s1181_s26 + $0x180] sm:$0xff] }
  0x18   : > { %v349_v7 = vld [vmem:[%s1181_s26 + $0x1c0] sm:$0xff]  ;;  %348 = vst [vmem:[%s1186_s27 + $0x30] sm:$0xff] %v347_v6 }
  0x19   : > { %v351_v8 = vld [vmem:[%s1181_s26 + $0x200] sm:$0xff]  ;;  %350 = vst [vmem:[%s1186_s27 + $0x38] sm:$0xff] %v349_v7 }
  0x1a   : > { %352 = vst [vmem:[%s1186_s27 + $0x40] sm:$0xff] %v351_v8  ;;  %v353_v9 = vld [vmem:[%s1181_s26 + $0x240] sm:$0xff] }
  0x1b   : > { %v355_v10 = vld [vmem:[%s1181_s26 + $0x280] sm:$0xff]  ;;  %354 = vst [vmem:[%s1186_s27 + $0x48] sm:$0xff] %v353_v9 }
  0x1c   : > { %v357_v11 = vld [vmem:[%s1181_s26 + $0x2c0] sm:$0xff]  ;;  %356 = vst [vmem:[%s1186_s27 + $0x50] sm:$0xff] %v355_v10 }
  0x1d   : > { %358 = vst [vmem:[%s1186_s27 + $0x58] sm:$0xff] %v357_v11  ;;  %v359_v12 = vld [vmem:[%s1181_s26 + $0x300] sm:$0xff] }
  0x1e   : > { %v361_v13 = vld [vmem:[%s1181_s26 + $0x340] sm:$0xff]  ;;  %360 = vst [vmem:[%s1186_s27 + $0x60] sm:$0xff] %v359_v12 }
  0x1f   : > { %v363_v14 = vld [vmem:[%s1181_s26 + $0x380] sm:$0xff]  ;;  %362 = vst [vmem:[%s1186_s27 + $0x68] sm:$0xff] %v361_v13 }
  0x20   : > { %364 = vst [vmem:[%s1186_s27 + $0x70] sm:$0xff] %v363_v14  ;;  %v365_v15 = vld [vmem:[%s1181_s26 + $0x3c0] sm:$0xff] }
  0x21   : > { %v367_v16 = vld [vmem:[%s1181_s26 + $0x400] sm:$0xff]  ;;  %366 = vst [vmem:[%s1186_s27 + $0x78] sm:$0xff] %v365_v15 }
  0x22   : > { %v369_v17 = vld [vmem:[%s1181_s26 + $0x440] sm:$0xff]  ;;  %368 = vst [vmem:[%s1186_s27 + $0x80] sm:$0xff] %v367_v16 }
  0x23   : > { %370 = vst [vmem:[%s1186_s27 + $0x88] sm:$0xff] %v369_v17  ;;  %v371_v18 = vld [vmem:[%s1181_s26 + $0x480] sm:$0xff] }
  0x24   : > { %v373_v19 = vld [vmem:[%s1181_s26 + $0x4c0] sm:$0xff]  ;;  %372 = vst [vmem:[%s1186_s27 + $0x90] sm:$0xff] %v371_v18 }
  0x25   : > { %v375_v20 = vld [vmem:[%s1181_s26 + $0x500] sm:$0xff]  ;;  %374 = vst [vmem:[%s1186_s27 + $0x98] sm:$0xff] %v373_v19 }
  0x26   : > { %376 = vst [vmem:[%s1186_s27 + $0xa0] sm:$0xff] %v375_v20  ;;  %v377_v21 = vld [vmem:[%s1181_s26 + $0x540] sm:$0xff] }
  0x27   : > { %v379_v22 = vld [vmem:[%s1181_s26 + $0x580] sm:$0xff]  ;;  %378 = vst [vmem:[%s1186_s27 + $0xa8] sm:$0xff] %v377_v21 }
  0x28   : > { %v381_v23 = vld [vmem:[%s1181_s26 + $0x5c0] sm:$0xff]  ;;  %380 = vst [vmem:[%s1186_s27 + $0xb0] sm:$0xff] %v379_v22 }
  0x29   : > { %382 = vst [vmem:[%s1186_s27 + $0xb8] sm:$0xff] %v381_v23  ;;  %v383_v24 = vld [vmem:[%s1181_s26 + $0x600] sm:$0xff] }
  0x2a   : > { %v385_v25 = vld [vmem:[%s1181_s26 + $0x640] sm:$0xff]  ;;  %384 = vst [vmem:[%s1186_s27 + $0xc0] sm:$0xff] %v383_v24 }
  0x2b   : > { %v387_v26 = vld [vmem:[%s1181_s26 + $0x680] sm:$0xff]  ;;  %386 = vst [vmem:[%s1186_s27 + $0xc8] sm:$0xff] %v385_v25 }
  0x2c   : > { %388 = vst [vmem:[%s1186_s27 + $0xd0] sm:$0xff] %v387_v26  ;;  %v389_v27 = vld [vmem:[%s1181_s26 + $0x6c0] sm:$0xff] }
  0x2d   : > { %v391_v28 = vld [vmem:[%s1181_s26 + $0x700] sm:$0xff]  ;;  %390 = vst [vmem:[%s1186_s27 + $0xd8] sm:$0xff] %v389_v27 }
  0x2e   : > { %v393_v29 = vld [vmem:[%s1181_s26 + $0x740] sm:$0xff]  ;;  %392 = vst [vmem:[%s1186_s27 + $0xe0] sm:$0xff] %v391_v28 }
  0x2f   : > { %394 = vst [vmem:[%s1186_s27 + $0xe8] sm:$0xff] %v393_v29  ;;  %v395_v30 = vld [vmem:[%s1181_s26 + $0x780] sm:$0xff] }
  0x30   : > { %v397_v31 = vld [vmem:[%s1181_s26 + $0x7c0] sm:$0xff]  ;;  %396 = vst [vmem:[%s1186_s27 + $0xf0] sm:$0xff] %v395_v30 }
  0x31   : > { %v399_v32 = vld [vmem:[%s1181_s26 + $0x800] sm:$0xff]  ;;  %398 = vst [vmem:[%s1186_s27 + $0xf8] sm:$0xff] %v397_v31 }
  0x32   : > { %400 = vst [vmem:[%s1186_s27 + $0x100] sm:$0xff] %v399_v32  ;;  %v401_v33 = vld [vmem:[%s1181_s26 + $0x840] sm:$0xff] }
  0x33   : > { %v403_v34 = vld [vmem:[%s1181_s26 + $0x880] sm:$0xff]  ;;  %402 = vst [vmem:[%s1186_s27 + $0x108] sm:$0xff] %v401_v33 }
  0x34   : > { %v405_v35 = vld [vmem:[%s1181_s26 + $0x8c0] sm:$0xff]  ;;  %404 = vst [vmem:[%s1186_s27 + $0x110] sm:$0xff] %v403_v34 }
  0x35   : > { %406 = vst [vmem:[%s1186_s27 + $0x118] sm:$0xff] %v405_v35  ;;  %v407_v36 = vld [vmem:[%s1181_s26 + $0x900] sm:$0xff] }
  0x36   : > { %v409_v37 = vld [vmem:[%s1181_s26 + $0x940] sm:$0xff]  ;;  %408 = vst [vmem:[%s1186_s27 + $0x120] sm:$0xff] %v407_v36 }
  0x37   : > { %v411_v38 = vld [vmem:[%s1181_s26 + $0x980] sm:$0xff]  ;;  %410 = vst [vmem:[%s1186_s27 + $0x128] sm:$0xff] %v409_v37 }
  0x38   : > { %412 = vst [vmem:[%s1186_s27 + $0x130] sm:$0xff] %v411_v38  ;;  %v413_v39 = vld [vmem:[%s1181_s26 + $0x9c0] sm:$0xff] }
  0x39   : > { %v415_v40 = vld [vmem:[%s1181_s26 + $0xa00] sm:$0xff]  ;;  %414 = vst [vmem:[%s1186_s27 + $0x138] sm:$0xff] %v413_v39 }
  0x3a   : > { %v417_v41 = vld [vmem:[%s1181_s26 + $0xa40] sm:$0xff]  ;;  %416 = vst [vmem:[%s1186_s27 + $0x140] sm:$0xff] %v415_v40 }
  0x3b   : > { %418 = vst [vmem:[%s1186_s27 + $0x148] sm:$0xff] %v417_v41  ;;  %v419_v42 = vld [vmem:[%s1181_s26 + $0xa80] sm:$0xff] }
  0x3c   : > { %v421_v43 = vld [vmem:[%s1181_s26 + $0xac0] sm:$0xff]  ;;  %420 = vst [vmem:[%s1186_s27 + $0x150] sm:$0xff] %v419_v42 }
  0x3d   : > { %v423_v44 = vld [vmem:[%s1181_s26 + $0xb00] sm:$0xff]  ;;  %422 = vst [vmem:[%s1186_s27 + $0x158] sm:$0xff] %v421_v43 }
  0x3e   : > { %424 = vst [vmem:[%s1186_s27 + $0x160] sm:$0xff] %v423_v44  ;;  %v425_v45 = vld [vmem:[%s1181_s26 + $0xb40] sm:$0xff] }
  0x3f   : > { %v427_v46 = vld [vmem:[%s1181_s26 + $0xb80] sm:$0xff]  ;;  %426 = vst [vmem:[%s1186_s27 + $0x168] sm:$0xff] %v425_v45 }
  0x40   : > { %v429_v47 = vld [vmem:[%s1181_s26 + $0xbc0] sm:$0xff]  ;;  %428 = vst [vmem:[%s1186_s27 + $0x170] sm:$0xff] %v427_v46 }
  0x41   : > { %430 = vst [vmem:[%s1186_s27 + $0x178] sm:$0xff] %v429_v47  ;;  %v431_v48 = vld [vmem:[%s1181_s26 + $0xc00] sm:$0xff] }
  0x42   : > { %v433_v49 = vld [vmem:[%s1181_s26 + $0xc40] sm:$0xff]  ;;  %432 = vst [vmem:[%s1186_s27 + $0x180] sm:$0xff] %v431_v48 }
  0x43   : > { %v435_v50 = vld [vmem:[%s1181_s26 + $0xc80] sm:$0xff]  ;;  %434 = vst [vmem:[%s1186_s27 + $0x188] sm:$0xff] %v433_v49 }
  0x44   : > { %436 = vst [vmem:[%s1186_s27 + $0x190] sm:$0xff] %v435_v50  ;;  %v437_v51 = vld [vmem:[%s1181_s26 + $0xcc0] sm:$0xff] }
  0x45   : > { %v439_v52 = vld [vmem:[%s1181_s26 + $0xd00] sm:$0xff]  ;;  %438 = vst [vmem:[%s1186_s27 + $0x198] sm:$0xff] %v437_v51 }
  0x46   : > { %v441_v53 = vld [vmem:[%s1181_s26 + $0xd40] sm:$0xff]  ;;  %440 = vst [vmem:[%s1186_s27 + $0x1a0] sm:$0xff] %v439_v52 }
  0x47   : > { %442 = vst [vmem:[%s1186_s27 + $0x1a8] sm:$0xff] %v441_v53  ;;  %v443_v54 = vld [vmem:[%s1181_s26 + $0xd80] sm:$0xff] }
  0x48   : > { %v445_v55 = vld [vmem:[%s1181_s26 + $0xdc0] sm:$0xff]  ;;  %444 = vst [vmem:[%s1186_s27 + $0x1b0] sm:$0xff] %v443_v54 }
  0x49   : > { %v447_v56 = vld [vmem:[%s1181_s26 + $0xe00] sm:$0xff]  ;;  %446 = vst [vmem:[%s1186_s27 + $0x1b8] sm:$0xff] %v445_v55 }
  0x4a   : > { %448 = vst [vmem:[%s1186_s27 + $0x1c0] sm:$0xff] %v447_v56  ;;  %v449_v57 = vld [vmem:[%s1181_s26 + $0xe40] sm:$0xff] }
  0x4b   : > { %v451_v58 = vld [vmem:[%s1181_s26 + $0xe80] sm:$0xff]  ;;  %450 = vst [vmem:[%s1186_s27 + $0x1c8] sm:$0xff] %v449_v57 }
  0x4c   : > { %v453_v59 = vld [vmem:[%s1181_s26 + $0xec0] sm:$0xff]  ;;  %452 = vst [vmem:[%s1186_s27 + $0x1d0] sm:$0xff] %v451_v58 }
  0x4d   : > { %454 = vst [vmem:[%s1186_s27 + $0x1d8] sm:$0xff] %v453_v59  ;;  %v455_v60 = vld [vmem:[%s1181_s26 + $0xf00] sm:$0xff] }
  0x4e   : > { %v457_v61 = vld [vmem:[%s1181_s26 + $0xf40] sm:$0xff]  ;;  %456 = vst [vmem:[%s1186_s27 + $0x1e0] sm:$0xff] %v455_v60 }
  0x4f   : > { %v459_v62 = vld [vmem:[%s1181_s26 + $0xf80] sm:$0xff]  ;;  %458 = vst [vmem:[%s1186_s27 + $0x1e8] sm:$0xff] %v457_v61 }
  0x50   : > { %460 = vst [vmem:[%s1186_s27 + $0x1f0] sm:$0xff] %v459_v62  ;;  %v461_v63 = vld [vmem:[%s1181_s26 + $0xfc0] sm:$0xff] }
  0x51   : > { %462 = vst [vmem:[%s1186_s27 + $0x1f8] sm:$0xff] %v461_v63 }
  0x52 PF: > { %p898_p6 = scmp.ge.s32.totalorder %s1116_s16, 1  ;;  %p473_p7 = scmp.lt.s32.totalorder %s1116_s16, 9 }
  0x54   : > { %p474_p8 = pnand %p898_p6, %p473_p7 }
  0x55   : > { %s480_s28 = sand.u32 (!%p474_p8), 1, %s1100_s12   ;;  %v547_v0 = vld [vmem:[%s1417_s0 + $0x8] sm:$0xff] (!%p474_p8)  ;;  %v549_v1 = vld [vmem:[%s1417_s0 + $0x18] sm:$0xff] (!%p474_p8)  ;;  %p529_p9 = scmp.lt.s32.totalorder (!%p474_p8), %s1108_s14, 7 }
  0x56   : > { %477 = sbr.rel (%p474_p8) target bundleno = 348 (0x15c), region = 66  ;;  %s899_s6 = sshll.u32 (!%p474_p8), %s480_s28, 9  ;;  %678 = vmatprep.mubr.f32.mxu0 (!%p474_p8), %v547_v0  ;;  %748 = vmatprep.mubr.f32.mxu1 (!%p474_p8), %v549_v1 }
  0x57   : > { %s1322_s7 = scalar_lea.vmem (!%p474_p8), [#allocation3], %s899_s6 }
  0x58   : > { %v566_v2 = vld [vmem:[%s1322_s7 + $0x80] sm:$0xff] (!%p474_p8)  ;;  %v567_v3 = vld [vmem:[%s1322_s7 + $0x88] sm:$0xff] (!%p474_p8)  ;;  %v568_v13 = vld [vmem:[%s1322_s7 + $0x90] sm:$0xff] (!%p474_p8) }
  0x59   : > { %v598_v4 = vld [vmem:[%s1322_s7 + $0x180] sm:$0xff] (!%p474_p8)  ;;  %v974_v5 = vpack.c.bf16 (!%p474_p8), %v567_v3, %v566_v2  ;;  %v599_v6 = vld [vmem:[%s1322_s7 + $0x188] sm:$0xff] (!%p474_p8)  ;;  %v569_v15 = vld [vmem:[%s1322_s7 + $0x98] sm:$0xff] (!%p474_p8) }
  0x5a   : > { %v550_v7 = vld [vmem:[%s1322_s7] sm:$0xff] (!%p474_p8)  ;;  %v551_v8 = vld [vmem:[%s1322_s7 + $0x8] sm:$0xff] (!%p474_p8)  ;;  %v1006_v9 = vpack.c.bf16 (!%p474_p8), %v599_v6, %v598_v4  ;;  %v600_v16 = vld [vmem:[%s1322_s7 + $0x190] sm:$0xff] (!%p474_p8)  ;;  %v978_v18 = vpack.c.bf16 (!%p474_p8), %v569_v15, %v568_v13 }
  0x5b   : > { %v976_v10 = vpack.c.bf16 (!%p474_p8), %v551_v8, %v550_v7  ;;  %v582_v11 = vld [vmem:[%s1322_s7 + $0x100] sm:$0xff] (!%p474_p8)  ;;  %v583_v12 = vld [vmem:[%s1322_s7 + $0x108] sm:$0xff] (!%p474_p8)  ;;  %975 = vmatprep.subr.bf16.mxu0 (!%p474_p8), %v974_v5  ;;  %v601_v17 = vld [vmem:[%s1322_s7 + $0x198] sm:$0xff] (!%p474_p8) }
  0x5c   : > { %v1008_v14 = vpack.c.bf16 (!%p474_p8), %v583_v12, %v582_v11  ;;  %1007 = vmatprep.subr.bf16.mxu1 (!%p474_p8), %v1006_v9  ;;  %v1010_v19 = vpack.c.bf16 (!%p474_p8), %v601_v17, %v600_v16  ;;  %v552_v20 = vld [vmem:[%s1322_s7 + $0x10] sm:$0xff] (!%p474_p8)  ;;  %v553_v21 = vld [vmem:[%s1322_s7 + $0x18] sm:$0xff] (!%p474_p8)  ;;  %v570_v25 = vld [vmem:[%s1322_s7 + $0xa0] sm:$0xff] (!%p474_p8) }
  0x5d   : > { %977 = vmatpush3.bf16.msra.mxu0 %v976_v10  ;;  %v584_v22 = vld [vmem:[%s1322_s7 + $0x110] sm:$0xff]  ;;  %v980_v23 = vpack.c.bf16 %v553_v21, %v552_v20  ;;  %v585_v24 = vld [vmem:[%s1322_s7 + $0x118] sm:$0xff]  ;;  %v571_v26 = vld [vmem:[%s1322_s7 + $0xa8] sm:$0xff]  ;;  %s1428_s14 = smov (!%p529_p9, %s1108_s14), 7 }
  0x5e   : > { %1009 = vmatpush3.bf16.msra.mxu1 %v1008_v14  ;;  %979 = vmatprep.subr.bf16.mxu0 %v978_v18  ;;  %v1012_v27 = vpack.c.bf16 %v585_v24, %v584_v22  ;;  %v982_v28 = vpack.c.bf16 %v571_v26, %v570_v25  ;;  %v602_v29 = vld [vmem:[%s1322_s7 + $0x1a0] sm:$0xff]  ;;  %v603_v30 = vld [vmem:[%s1322_s7 + $0x1a8] sm:$0xff]  ;;  %v572_v37 = vld [vmem:[%s1322_s7 + $0xb0] sm:$0xff]  ;;  %s531_s19 = scalar_lea.vmem %s1419_s2, %s1428_s14  ;;  %s900_s21 = sshll.u32 %s1428_s14, 3 }
  0x5f   : > { %1011 = vmatprep.subr.bf16.mxu1 %v1010_v19  ;;  %v554_v31 = vld [vmem:[%s1322_s7 + $0x20] sm:$0xff]  ;;  %v1014_v32 = vpack.c.bf16 %v603_v30, %v602_v29  ;;  %v555_v33 = vld [vmem:[%s1322_s7 + $0x28] sm:$0xff]  ;;  %v573_v38 = vld [vmem:[%s1322_s7 + $0xb8] sm:$0xff]  ;;  %s539_s24 = scalar_lea.vmem %s1420_s3, %s900_s21 }
  0x60   : > { %v586_v34 = vld [vmem:[%s1322_s7 + $0x120] sm:$0xff]  ;;  %v587_v35 = vld [vmem:[%s1322_s7 + $0x128] sm:$0xff]  ;;  %v984_v36 = vpack.c.bf16 %v555_v33, %v554_v31  ;;  %v604_v39 = vld [vmem:[%s1322_s7 + $0x1b0] sm:$0xff]  ;;  %v986_v41 = vpack.c.bf16 %v573_v38, %v572_v37 }
  0x61   : > { %981 = vmatpush3.bf16.msra.mxu0 %v980_v23  ;;  %v1016_v40 = vpack.c.bf16 %v587_v35, %v586_v34  ;;  %v605_v42 = vld [vmem:[%s1322_s7 + $0x1b8] sm:$0xff]  ;;  %v556_v43 = vld [vmem:[%s1322_s7 + $0x30] sm:$0xff]  ;;  %v574_v48 = vld [vmem:[%s1322_s7 + $0xc0] sm:$0xff] }
  0x62   : > { %1013 = vmatpush3.bf16.msra.mxu1 %v1012_v27  ;;  %983 = vmatprep.subr.bf16.mxu0 %v982_v28  ;;  %v557_v44 = vld [vmem:[%s1322_s7 + $0x38] sm:$0xff]  ;;  %v1018_v45 = vpack.c.bf16 %v605_v42, %v604_v39  ;;  %v588_v46 = vld [vmem:[%s1322_s7 + $0x130] sm:$0xff]  ;;  %v575_v49 = vld [vmem:[%s1322_s7 + $0xc8] sm:$0xff] }
  0x63   : > { %1015 = vmatprep.subr.bf16.mxu1 %v1014_v32  ;;  %v589_v47 = vld [vmem:[%s1322_s7 + $0x138] sm:$0xff]  ;;  %v606_v50 = vld [vmem:[%s1322_s7 + $0x1c0] sm:$0xff]  ;;  %v607_v51 = vld [vmem:[%s1322_s7 + $0x1c8] sm:$0xff]  ;;  %v988_v52 = vpack.c.bf16 %v557_v44, %v556_v43  ;;  %v990_v54 = vpack.c.bf16 %v575_v49, %v574_v48 }
  0x64   : > { %v1020_v53 = vpack.c.bf16 %v589_v47, %v588_v46  ;;  %v558_v55 = vld [vmem:[%s1322_s7 + $0x40] sm:$0xff]  ;;  %v559_v56 = vld [vmem:[%s1322_s7 + $0x48] sm:$0xff]  ;;  %v1022_v58 = vpack.c.bf16 %v607_v51, %v606_v50  ;;  %v576_v60 = vld [vmem:[%s1322_s7 + $0xd0] sm:$0xff] }
  0x65   : > { %985 = vmatpush3.bf16.msra.mxu0 %v984_v36  ;;  %v590_v57 = vld [vmem:[%s1322_s7 + $0x140] sm:$0xff]  ;;  %v591_v59 = vld [vmem:[%s1322_s7 + $0x148] sm:$0xff]  ;;  %v577_v61 = vld [vmem:[%s1322_s7 + $0xd8] sm:$0xff]  ;;  %v992_v0 = vpack.c.bf16 %v559_v56, %v558_v55 }
  0x66   : > { %1017 = vmatpush3.bf16.msra.mxu1 %v1016_v40  ;;  %987 = vmatprep.subr.bf16.mxu0 %v986_v41  ;;  %v608_v62 = vld [vmem:[%s1322_s7 + $0x1d0] sm:$0xff]  ;;  %v609_v63 = vld [vmem:[%s1322_s7 + $0x1d8] sm:$0xff]  ;;  %v1024_v1 = vpack.c.bf16 %v591_v59, %v590_v57  ;;  %v994_v2 = vpack.c.bf16 %v577_v61, %v576_v60  ;;  %v578_v8 = vld [vmem:[%s1322_s7 + $0xe0] sm:$0xff] }
  0x67   : > { %1019 = vmatprep.subr.bf16.mxu1 %v1018_v45  ;;  %v560_v3 = vld [vmem:[%s1322_s7 + $0x50] sm:$0xff]  ;;  %v561_v4 = vld [vmem:[%s1322_s7 + $0x58] sm:$0xff]  ;;  %v1026_v6 = vpack.c.bf16 %v609_v63, %v608_v62  ;;  %v579_v9 = vld [vmem:[%s1322_s7 + $0xe8] sm:$0xff] }
  0x68   : > { %v592_v5 = vld [vmem:[%s1322_s7 + $0x150] sm:$0xff]  ;;  %v593_v7 = vld [vmem:[%s1322_s7 + $0x158] sm:$0xff]  ;;  %v610_v10 = vld [vmem:[%s1322_s7 + $0x1e0] sm:$0xff]  ;;  %v996_v12 = vpack.c.bf16 %v561_v4, %v560_v3  ;;  %v998_v14 = vpack.c.bf16 %v579_v9, %v578_v8 }
  0x69   : > { %989 = vmatpush3.bf16.msra.mxu0 %v988_v52  ;;  %v611_v11 = vld [vmem:[%s1322_s7 + $0x1e8] sm:$0xff]  ;;  %v1028_v13 = vpack.c.bf16 %v593_v7, %v592_v5  ;;  %v562_v15 = vld [vmem:[%s1322_s7 + $0x60] sm:$0xff]  ;;  %v580_v20 = vld [vmem:[%s1322_s7 + $0xf0] sm:$0xff] }
  0x6a   : > { %1021 = vmatpush3.bf16.msra.mxu1 %v1020_v53  ;;  %991 = vmatprep.subr.bf16.mxu0 %v990_v54  ;;  %v563_v16 = vld [vmem:[%s1322_s7 + $0x68] sm:$0xff]  ;;  %v594_v17 = vld [vmem:[%s1322_s7 + $0x160] sm:$0xff]  ;;  %v1030_v18 = vpack.c.bf16 %v611_v11, %v610_v10  ;;  %v581_v21 = vld [vmem:[%s1322_s7 + $0xf8] sm:$0xff] }
  0x6b   : > { %1023 = vmatprep.subr.bf16.mxu1 %v1022_v58  ;;  %v595_v19 = vld [vmem:[%s1322_s7 + $0x168] sm:$0xff]  ;;  %v612_v22 = vld [vmem:[%s1322_s7 + $0x1f0] sm:$0xff]  ;;  %v613_v23 = vld [vmem:[%s1322_s7 + $0x1f8] sm:$0xff]  ;;  %v1000_v24 = vpack.c.bf16 %v563_v16, %v562_v15  ;;  %v1002_v26 = vpack.c.bf16 %v581_v21, %v580_v20 }
  0x6c   : > { %v1032_v25 = vpack.c.bf16 %v595_v19, %v594_v17  ;;  %v564_v27 = vld [vmem:[%s1322_s7 + $0x70] sm:$0xff]  ;;  %v565_v28 = vld [vmem:[%s1322_s7 + $0x78] sm:$0xff]  ;;  %v1034_v29 = vpack.c.bf16 %v613_v23, %v612_v22  ;;  %v546_v34 = vld [vmem:[%s1417_s0] sm:$0xff] }
  0x6d   : > { %993 = vmatpush3.bf16.msra.mxu0 %v992_v0  ;;  %v596_v30 = vld [vmem:[%s1322_s7 + $0x170] sm:$0xff]  ;;  %v597_v31 = vld [vmem:[%s1322_s7 + $0x178] sm:$0xff]  ;;  %v1004_v32 = vpack.c.bf16 %v565_v28, %v564_v27  ;;  %v901_v42 = vld [vmem:[%s531_s19] ss:$0 sm:$0xff] }
  0x6e   : > { %1025 = vmatpush3.bf16.msra.mxu1 %v1024_v1  ;;  %995 = vmatprep.subr.bf16.mxu0 %v994_v2  ;;  %v1036_v33 = vpack.c.bf16 %v597_v31, %v596_v30  ;;  %v548_v35 = vld [vmem:[%s1417_s0 + $0x10] sm:$0xff] }
  0x6f   : > { %1027 = vmatprep.subr.bf16.mxu1 %v1026_v6 }
  0x71   : > { %997 = vmatpush3.bf16.msra.mxu0 %v996_v12 }
  0x72   : > { %1029 = vmatpush3.bf16.msra.mxu1 %v1028_v13  ;;  %999 = vmatprep.subr.bf16.mxu0 %v998_v14 }
  0x73   : > { %1031 = vmatprep.subr.bf16.mxu1 %v1030_v18 }
  0x75   : > { %1001 = vmatpush3.bf16.msra.mxu0 %v1000_v24 }
  0x76   : > { %1033 = vmatpush3.bf16.msra.mxu1 %v1032_v25  ;;  %1003 = vmatprep.subr.bf16.mxu0 %v1002_v26 }
  0x77   : > { %1035 = vmatprep.subr.bf16.mxu1 %v1034_v29 }
  0x79   : > { %1005 = vmatpush3.bf16.msra.mxu0 %v1004_v32 }
  0x7a   : > { %1037 = vmatpush3.bf16.msra.mxu1 %v1036_v33 }
  0x7c   : > { %679 = vmatmul.mubr.f32.vlgmr.msra.gmra.mrb[0].mxu0 %v546_v34 }
  0x7d   : > { %749 = vmatmul.mubr.f32.vlgmr.msra.gmra.mrb[0].mxu1 %v548_v35 }
 0x14f   : > { %v936_v36 = vpop.f32.mrb[0].mxu0 }
 0x150   : > { %v971_v37 = vpop.f32.mrb[0].mxu1  ;;  %v937_v38 = vpop.f32.mrb[1].mxu0 }
 0x151   : > { %v938_v39 = vadd.f32 %v937_v38, %v936_v36  ;;  %v972_v40 = vpop.f32.mrb[1].mxu1 }
 0x152   : > { %v973_v41 = vadd.f32 %v972_v40, %v971_v37 }
 0x154   : > { %v751_v43 = vadd.f32 %v973_v41, %v938_v39 }
 0x156   : > { %v767_v44 = vadd.f32 %v901_v42, %v751_v43 }
 0x158   : > { %vm768_vm0 = vcmp.gt.f32.partialorder %v767_v44, 0.0  ;;  %v769_v45 = vmul.f32 0.01, %v767_v44 }
 0x15a   : > { %v770_v46 = vsel %vm768_vm0, %v767_v44, %v769_v45 }
 0x15b   : > { %771 = vst [vmem:[%s539_s24] sm:$0xff] %v770_v46 }
 0x15c PF: > { %s13_s16 = sadd.s32 1, %s1116_s16   ;;  %s1421_s12 = smov %s1104_s13 }
 0x15d   : > { %p10_p10 = scmp.ge.s32.totalorder %s13_s16, 10   ;;  %s1422_s13 = smov %s1173_s20 }
 0x15e   : > { %s1423_s14 = smov %s1112_s15  ;;  %s1424_s15 = smov %s1426_s17 }
 0x15f   :  { %12 = sbr.rel (!%p10_p10) target bundleno = 3 (0x3), region = 119 }

// kernel: actor_forward.12
= control target key start
LH: loop header
LB: loop body
LE: loop exit
PB: predicated region body
PF: predicated region fallthrough
CT: control target
= control target key end

     0   :  { %s1178_s12 = smov 0   ;;  %s1180_s13 = smov 0   ;;  %s1492_s0 = inlined_call_operand.vmem [shape: f32[8,1024], index: 0, kind: input, shape index: {}]   ;;  %s1493_s1 = inlined_call_operand.vmem [shape: f32[1024,512], index: 1, kind: input, shape index: {}]   ;;  %s1494_s2 = inlined_call_operand.vmem [shape: f32[1,512], index: 2, kind: input, shape index: {}]   ;;  %s1495_s3 = inlined_call_operand.vmem [shape: f32[8,512], index: 3, kind: output, shape index: {}]  }
   0x1   :  { %s1182_s14 = smov 0   ;;  %s1184_s15 = smov 0  }
   0x2   :  { %s1186_s16 = smov 0   ;;  %s1188_s17 = smov 0  }
   0x3   :  { %s1190_s18 = smov 0  }
   0x4 LB: > { %s25_s19 = sadd.s32 1, %s1147_s16  ;;  %s28_s20 = sadd.s32 1, %s1151_s17  ;;  %s1155_s18 = sphi %s1190_s18, %s13_s18   ;;  %s1151_s17 = sphi %s1188_s17, %s1501_s17   ;;  %s1147_s16 = sphi %s1186_s16, %s1500_s16   ;;  %s1143_s15 = sphi %s1184_s15, %s1499_s15   ;;  %s1139_s14 = sphi %s1182_s14, %s1498_s14   ;;  %s1135_s13 = sphi %s1180_s13, %s1497_s13   ;;  %s1131_s12 = sphi %s1178_s12, %s1496_s12  }
   0x5   : > { %p26_p0 = scmp.ge.s32.totalorder %s25_s19, 2  ;;  %p76_p1 = scmp.ne.s32.totalorder %s1135_s13, %s1131_s12 }
   0x6   : > { %p77_p2 = scmp.eq.s32.totalorder %s1155_s18, 0  ;;  %s69_s24 = sadd.s32 1, %s1135_s13 }
   0x7   : > { %s1503_s19 = smov (%p26_p0, %s25_s19), 0  ;;  %s1505_s20 = smov (!%p26_p0, %s28_s20), %s1151_s17 }
   0x8   : > { %p78_p3 = por %p77_p2, %p76_p1  ;;  %p30_p4 = scmp.ge.s32.totalorder %s1505_s20, 4 }
   0x9   : > { %s64_s21 = ssub.s32 %s1147_s16, %s1503_s19  ;;  %p894_p6 = scmp.ge.s32.totalorder %s1155_s18, 8 }
   0xa   : > { %s1507_s20 = smov (%p30_p4, %s1505_s20), 0 }
   0xb   : > { %s65_s22 = ssub.s32 %s1151_s17, %s1507_s20  ;;  %156 = sbr.rel (%p894_p6) target bundleno = 88 (0x58), region = 16 }
   0xc   : > { %s66_s23 = sor.u32 %s65_s22, %s64_s21 }
   0xd   : > { %p67_p5 = scmp.eq.s32.totalorder %s66_s23, 0 }
   0xf   : > { %s1229_s25 = scalar_select %p67_p5, %s1135_s13, %s69_s24  }
  0x12   : > { %172 = sbr.rel (!%p78_p3) target bundleno = 88 (0x58), region = 24  ;;  %s174_s26 = sand.u32 (%p78_p3), 1, %s1135_s13  }
  0x13   : > { %s909_s27 = sshll.u32 (%p78_p3), %s1147_s16, 8  ;;  %s895_s28 = sshll.u32 (%p78_p3), %s174_s26, 9 }
  0x14   : > { %s179_s29 = sadd.s32 (%p78_p3), %s1151_s17, %s909_s27  ;;  %s1243_s7 = scalar_lea.vmem (%p78_p3), [#allocation3], %s895_s28 }
  0x15   : > { %s898_s30 = sshll.u32 (%p78_p3), %s179_s29, 3 }
  0x16   : > { %s1238_s6 = scalar_lea.vmem (%p78_p3), %s1493_s1, %s898_s30 }
  0x17   : > { %v335_v0 = vld [vmem:[%s1238_s6] sm:$0xff] (%p78_p3) }
  0x18   : > { %v337_v1 = vld [vmem:[%s1238_s6 + $0x20] sm:$0xff] (%p78_p3)  ;;  %336 = vst [vmem:[%s1243_s7] sm:$0xff] (%p78_p3), %v335_v0 }
  0x19   : > { %v339_v2 = vld [vmem:[%s1238_s6 + $0x40] sm:$0xff]  ;;  %338 = vst [vmem:[%s1243_s7 + $0x8] sm:$0xff] %v337_v1 }
  0x1a   : > { %340 = vst [vmem:[%s1243_s7 + $0x10] sm:$0xff] %v339_v2  ;;  %v341_v3 = vld [vmem:[%s1238_s6 + $0x60] sm:$0xff] }
  0x1b   : > { %v343_v4 = vld [vmem:[%s1238_s6 + $0x80] sm:$0xff]  ;;  %342 = vst [vmem:[%s1243_s7 + $0x18] sm:$0xff] %v341_v3 }
  0x1c   : > { %v345_v5 = vld [vmem:[%s1238_s6 + $0xa0] sm:$0xff]  ;;  %344 = vst [vmem:[%s1243_s7 + $0x20] sm:$0xff] %v343_v4 }
  0x1d   : > { %346 = vst [vmem:[%s1243_s7 + $0x28] sm:$0xff] %v345_v5  ;;  %v347_v6 = vld [vmem:[%s1238_s6 + $0xc0] sm:$0xff] }
  0x1e   : > { %v349_v7 = vld [vmem:[%s1238_s6 + $0xe0] sm:$0xff]  ;;  %348 = vst [vmem:[%s1243_s7 + $0x30] sm:$0xff] %v347_v6 }
  0x1f   : > { %v351_v8 = vld [vmem:[%s1238_s6 + $0x100] sm:$0xff]  ;;  %350 = vst [vmem:[%s1243_s7 + $0x38] sm:$0xff] %v349_v7 }
  0x20   : > { %352 = vst [vmem:[%s1243_s7 + $0x40] sm:$0xff] %v351_v8  ;;  %v353_v9 = vld [vmem:[%s1238_s6 + $0x120] sm:$0xff] }
  0x21   : > { %v355_v10 = vld [vmem:[%s1238_s6 + $0x140] sm:$0xff]  ;;  %354 = vst [vmem:[%s1243_s7 + $0x48] sm:$0xff] %v353_v9 }
  0x22   : > { %v357_v11 = vld [vmem:[%s1238_s6 + $0x160] sm:$0xff]  ;;  %356 = vst [vmem:[%s1243_s7 + $0x50] sm:$0xff] %v355_v10 }
  0x23   : > { %358 = vst [vmem:[%s1243_s7 + $0x58] sm:$0xff] %v357_v11  ;;  %v359_v12 = vld [vmem:[%s1238_s6 + $0x180] sm:$0xff] }
  0x24   : > { %v361_v13 = vld [vmem:[%s1238_s6 + $0x1a0] sm:$0xff]  ;;  %360 = vst [vmem:[%s1243_s7 + $0x60] sm:$0xff] %v359_v12 }
  0x25   : > { %v363_v14 = vld [vmem:[%s1238_s6 + $0x1c0] sm:$0xff]  ;;  %362 = vst [vmem:[%s1243_s7 + $0x68] sm:$0xff] %v361_v13 }
  0x26   : > { %364 = vst [vmem:[%s1243_s7 + $0x70] sm:$0xff] %v363_v14  ;;  %v365_v15 = vld [vmem:[%s1238_s6 + $0x1e0] sm:$0xff] }
  0x27   : > { %v367_v16 = vld [vmem:[%s1238_s6 + $0x200] sm:$0xff]  ;;  %366 = vst [vmem:[%s1243_s7 + $0x78] sm:$0xff] %v365_v15 }
  0x28   : > { %v369_v17 = vld [vmem:[%s1238_s6 + $0x220] sm:$0xff]  ;;  %368 = vst [vmem:[%s1243_s7 + $0x80] sm:$0xff] %v367_v16 }
  0x29   : > { %370 = vst [vmem:[%s1243_s7 + $0x88] sm:$0xff] %v369_v17  ;;  %v371_v18 = vld [vmem:[%s1238_s6 + $0x240] sm:$0xff] }
  0x2a   : > { %v373_v19 = vld [vmem:[%s1238_s6 + $0x260] sm:$0xff]  ;;  %372 = vst [vmem:[%s1243_s7 + $0x90] sm:$0xff] %v371_v18 }
  0x2b   : > { %v375_v20 = vld [vmem:[%s1238_s6 + $0x280] sm:$0xff]  ;;  %374 = vst [vmem:[%s1243_s7 + $0x98] sm:$0xff] %v373_v19 }
  0x2c   : > { %376 = vst [vmem:[%s1243_s7 + $0xa0] sm:$0xff] %v375_v20  ;;  %v377_v21 = vld [vmem:[%s1238_s6 + $0x2a0] sm:$0xff] }
  0x2d   : > { %v379_v22 = vld [vmem:[%s1238_s6 + $0x2c0] sm:$0xff]  ;;  %378 = vst [vmem:[%s1243_s7 + $0xa8] sm:$0xff] %v377_v21 }
  0x2e   : > { %v381_v23 = vld [vmem:[%s1238_s6 + $0x2e0] sm:$0xff]  ;;  %380 = vst [vmem:[%s1243_s7 + $0xb0] sm:$0xff] %v379_v22 }
  0x2f   : > { %382 = vst [vmem:[%s1243_s7 + $0xb8] sm:$0xff] %v381_v23  ;;  %v383_v24 = vld [vmem:[%s1238_s6 + $0x300] sm:$0xff] }
  0x30   : > { %v385_v25 = vld [vmem:[%s1238_s6 + $0x320] sm:$0xff]  ;;  %384 = vst [vmem:[%s1243_s7 + $0xc0] sm:$0xff] %v383_v24 }
  0x31   : > { %v387_v26 = vld [vmem:[%s1238_s6 + $0x340] sm:$0xff]  ;;  %386 = vst [vmem:[%s1243_s7 + $0xc8] sm:$0xff] %v385_v25 }
  0x32   : > { %388 = vst [vmem:[%s1243_s7 + $0xd0] sm:$0xff] %v387_v26  ;;  %v389_v27 = vld [vmem:[%s1238_s6 + $0x360] sm:$0xff] }
  0x33   : > { %v391_v28 = vld [vmem:[%s1238_s6 + $0x380] sm:$0xff]  ;;  %390 = vst [vmem:[%s1243_s7 + $0xd8] sm:$0xff] %v389_v27 }
  0x34   : > { %v393_v29 = vld [vmem:[%s1238_s6 + $0x3a0] sm:$0xff]  ;;  %392 = vst [vmem:[%s1243_s7 + $0xe0] sm:$0xff] %v391_v28 }
  0x35   : > { %394 = vst [vmem:[%s1243_s7 + $0xe8] sm:$0xff] %v393_v29  ;;  %v395_v30 = vld [vmem:[%s1238_s6 + $0x3c0] sm:$0xff] }
  0x36   : > { %v397_v31 = vld [vmem:[%s1238_s6 + $0x3e0] sm:$0xff]  ;;  %396 = vst [vmem:[%s1243_s7 + $0xf0] sm:$0xff] %v395_v30 }
  0x37   : > { %v399_v32 = vld [vmem:[%s1238_s6 + $0x400] sm:$0xff]  ;;  %398 = vst [vmem:[%s1243_s7 + $0xf8] sm:$0xff] %v397_v31 }
  0x38   : > { %400 = vst [vmem:[%s1243_s7 + $0x100] sm:$0xff] %v399_v32  ;;  %v401_v33 = vld [vmem:[%s1238_s6 + $0x420] sm:$0xff] }
  0x39   : > { %v403_v34 = vld [vmem:[%s1238_s6 + $0x440] sm:$0xff]  ;;  %402 = vst [vmem:[%s1243_s7 + $0x108] sm:$0xff] %v401_v33 }
  0x3a   : > { %v405_v35 = vld [vmem:[%s1238_s6 + $0x460] sm:$0xff]  ;;  %404 = vst [vmem:[%s1243_s7 + $0x110] sm:$0xff] %v403_v34 }
  0x3b   : > { %406 = vst [vmem:[%s1243_s7 + $0x118] sm:$0xff] %v405_v35  ;;  %v407_v36 = vld [vmem:[%s1238_s6 + $0x480] sm:$0xff] }
  0x3c   : > { %v409_v37 = vld [vmem:[%s1238_s6 + $0x4a0] sm:$0xff]  ;;  %408 = vst [vmem:[%s1243_s7 + $0x120] sm:$0xff] %v407_v36 }
  0x3d   : > { %v411_v38 = vld [vmem:[%s1238_s6 + $0x4c0] sm:$0xff]  ;;  %410 = vst [vmem:[%s1243_s7 + $0x128] sm:$0xff] %v409_v37 }
  0x3e   : > { %412 = vst [vmem:[%s1243_s7 + $0x130] sm:$0xff] %v411_v38  ;;  %v413_v39 = vld [vmem:[%s1238_s6 + $0x4e0] sm:$0xff] }
  0x3f   : > { %v415_v40 = vld [vmem:[%s1238_s6 + $0x500] sm:$0xff]  ;;  %414 = vst [vmem:[%s1243_s7 + $0x138] sm:$0xff] %v413_v39 }
  0x40   : > { %v417_v41 = vld [vmem:[%s1238_s6 + $0x520] sm:$0xff]  ;;  %416 = vst [vmem:[%s1243_s7 + $0x140] sm:$0xff] %v415_v40 }
  0x41   : > { %418 = vst [vmem:[%s1243_s7 + $0x148] sm:$0xff] %v417_v41  ;;  %v419_v42 = vld [vmem:[%s1238_s6 + $0x540] sm:$0xff] }
  0x42   : > { %v421_v43 = vld [vmem:[%s1238_s6 + $0x560] sm:$0xff]  ;;  %420 = vst [vmem:[%s1243_s7 + $0x150] sm:$0xff] %v419_v42 }
  0x43   : > { %v423_v44 = vld [vmem:[%s1238_s6 + $0x580] sm:$0xff]  ;;  %422 = vst [vmem:[%s1243_s7 + $0x158] sm:$0xff] %v421_v43 }
  0x44   : > { %424 = vst [vmem:[%s1243_s7 + $0x160] sm:$0xff] %v423_v44  ;;  %v425_v45 = vld [vmem:[%s1238_s6 + $0x5a0] sm:$0xff] }
  0x45   : > { %v427_v46 = vld [vmem:[%s1238_s6 + $0x5c0] sm:$0xff]  ;;  %426 = vst [vmem:[%s1243_s7 + $0x168] sm:$0xff] %v425_v45 }
  0x46   : > { %v429_v47 = vld [vmem:[%s1238_s6 + $0x5e0] sm:$0xff]  ;;  %428 = vst [vmem:[%s1243_s7 + $0x170] sm:$0xff] %v427_v46 }
  0x47   : > { %430 = vst [vmem:[%s1243_s7 + $0x178] sm:$0xff] %v429_v47  ;;  %v431_v48 = vld [vmem:[%s1238_s6 + $0x600] sm:$0xff] }
  0x48   : > { %v433_v49 = vld [vmem:[%s1238_s6 + $0x620] sm:$0xff]  ;;  %432 = vst [vmem:[%s1243_s7 + $0x180] sm:$0xff] %v431_v48 }
  0x49   : > { %v435_v50 = vld [vmem:[%s1238_s6 + $0x640] sm:$0xff]  ;;  %434 = vst [vmem:[%s1243_s7 + $0x188] sm:$0xff] %v433_v49 }
  0x4a   : > { %436 = vst [vmem:[%s1243_s7 + $0x190] sm:$0xff] %v435_v50  ;;  %v437_v51 = vld [vmem:[%s1238_s6 + $0x660] sm:$0xff] }
  0x4b   : > { %v439_v52 = vld [vmem:[%s1238_s6 + $0x680] sm:$0xff]  ;;  %438 = vst [vmem:[%s1243_s7 + $0x198] sm:$0xff] %v437_v51 }
  0x4c   : > { %v441_v53 = vld [vmem:[%s1238_s6 + $0x6a0] sm:$0xff]  ;;  %440 = vst [vmem:[%s1243_s7 + $0x1a0] sm:$0xff] %v439_v52 }
  0x4d   : > { %442 = vst [vmem:[%s1243_s7 + $0x1a8] sm:$0xff] %v441_v53  ;;  %v443_v54 = vld [vmem:[%s1238_s6 + $0x6c0] sm:$0xff] }
  0x4e   : > { %v445_v55 = vld [vmem:[%s1238_s6 + $0x6e0] sm:$0xff]  ;;  %444 = vst [vmem:[%s1243_s7 + $0x1b0] sm:$0xff] %v443_v54 }
  0x4f   : > { %v447_v56 = vld [vmem:[%s1238_s6 + $0x700] sm:$0xff]  ;;  %446 = vst [vmem:[%s1243_s7 + $0x1b8] sm:$0xff] %v445_v55 }
  0x50   : > { %448 = vst [vmem:[%s1243_s7 + $0x1c0] sm:$0xff] %v447_v56  ;;  %v449_v57 = vld [vmem:[%s1238_s6 + $0x720] sm:$0xff] }
  0x51   : > { %v451_v58 = vld [vmem:[%s1238_s6 + $0x740] sm:$0xff]  ;;  %450 = vst [vmem:[%s1243_s7 + $0x1c8] sm:$0xff] %v449_v57 }
  0x52   : > { %v453_v59 = vld [vmem:[%s1238_s6 + $0x760] sm:$0xff]  ;;  %452 = vst [vmem:[%s1243_s7 + $0x1d0] sm:$0xff] %v451_v58 }
  0x53   : > { %454 = vst [vmem:[%s1243_s7 + $0x1d8] sm:$0xff] %v453_v59  ;;  %v455_v60 = vld [vmem:[%s1238_s6 + $0x780] sm:$0xff] }
  0x54   : > { %v457_v61 = vld [vmem:[%s1238_s6 + $0x7a0] sm:$0xff]  ;;  %456 = vst [vmem:[%s1243_s7 + $0x1e0] sm:$0xff] %v455_v60 }
  0x55   : > { %v459_v62 = vld [vmem:[%s1238_s6 + $0x7c0] sm:$0xff]  ;;  %458 = vst [vmem:[%s1243_s7 + $0x1e8] sm:$0xff] %v457_v61 }
  0x56   : > { %460 = vst [vmem:[%s1243_s7 + $0x1f0] sm:$0xff] %v459_v62  ;;  %v461_v63 = vld [vmem:[%s1238_s6 + $0x7e0] sm:$0xff] }
  0x57   : > { %462 = vst [vmem:[%s1243_s7 + $0x1f8] sm:$0xff] %v461_v63 }
  0x58 PF: > { %p899_p7 = scmp.ge.s32.totalorder %s1155_s18, 1  ;;  %p473_p8 = scmp.lt.s32.totalorder %s1155_s18, 9 }
  0x5a   : > { %p474_p9 = pnand %p899_p7, %p473_p8 }
  0x5b   : > { %s480_s8 = sand.u32 (!%p474_p9), 1, %s1131_s12   ;;  %s901_s9 = sshll.u32 (!%p474_p9), %s1139_s14, 2 }
  0x5c   : > { %477 = sbr.rel (%p474_p9) target bundleno = 379 (0x17b), region = 66  ;;  %s900_s10 = sshll.u32 (!%p474_p9), %s480_s8, 9 }
  0x5d   : > { %p521_p10 = scmp.lt.s32.totalorder (!%p474_p9), %s901_s9, 7  ;;  %p529_p11 = scmp.lt.s32.totalorder (!%p474_p9), %s1143_s15, 3 }
  0x5e   : > { %s1393_s4 = scalar_lea.vmem (!%p474_p9), [#allocation3], %s900_s10  ;;  %p904_p12 = scmp.ne.s32.totalorder (!%p474_p9), %s1139_s14, 0 }
  0x63   : > { %s1509_s9 = smov (!%p521_p10, %s901_s9), 7  ;;  %s1511_s15 = smov (!%p529_p11, %s1143_s15), 3 }
  0x64   : > { %s902_s11 = sshll.u32 %s1509_s9, 3  ;;  %s531_s27 = scalar_lea.vmem %s1494_s2, %s1511_s15  ;;  %v1157_v0 = vmov (!%p904_p12), 0.0  }
  0x65   : > { %s1381_s23 = scalar_lea.vmem %s1492_s0, %s902_s11  ;;  %s903_s12 = sshll.u32 %s1511_s15, 3  ;;  %544 = vst [vmem:[#allocation2] sm:$0xff] (!%p904_p12), %v1157_v0 }
  0x66   : > { %s1391_s30 = scalar_lea.vmem %s1495_s3, %s903_s12  ;;  %543 = sbr.rel (%p904_p12) target bundleno = 109 (0x6d), region = 74 }
  0x6d PF: > { %v566_v1 = vld [vmem:[%s1393_s4 + $0x80] sm:$0xff]  ;;  %v567_v2 = vld [vmem:[%s1393_s4 + $0x88] sm:$0xff]  ;;  %v568_v12 = vld [vmem:[%s1393_s4 + $0x90] sm:$0xff]  ;;  %p905_p13 = scmp.ne.s32.totalorder %s1139_s14, 1 }
  0x6e   : > { %v598_v3 = vld [vmem:[%s1393_s4 + $0x180] sm:$0xff]  ;;  %v980_v4 = vpack.c.bf16 %v567_v2, %v566_v1  ;;  %v599_v5 = vld [vmem:[%s1393_s4 + $0x188] sm:$0xff]  ;;  %v569_v14 = vld [vmem:[%s1393_s4 + $0x98] sm:$0xff] }
  0x6f   : > { %v550_v6 = vld [vmem:[%s1393_s4] sm:$0xff]  ;;  %v551_v7 = vld [vmem:[%s1393_s4 + $0x8] sm:$0xff]  ;;  %v1012_v8 = vpack.c.bf16 %v599_v5, %v598_v3  ;;  %v600_v15 = vld [vmem:[%s1393_s4 + $0x190] sm:$0xff]  ;;  %v984_v17 = vpack.c.bf16 %v569_v14, %v568_v12 }
  0x70   : > { %v982_v9 = vpack.c.bf16 %v551_v7, %v550_v6  ;;  %v582_v10 = vld [vmem:[%s1393_s4 + $0x100] sm:$0xff]  ;;  %v583_v11 = vld [vmem:[%s1393_s4 + $0x108] sm:$0xff]  ;;  %981 = vmatprep.subr.bf16.mxu0 %v980_v4  ;;  %v601_v16 = vld [vmem:[%s1393_s4 + $0x198] sm:$0xff] }
  0x71   : > { %v1014_v13 = vpack.c.bf16 %v583_v11, %v582_v10  ;;  %1013 = vmatprep.subr.bf16.mxu1 %v1012_v8  ;;  %v1016_v18 = vpack.c.bf16 %v601_v16, %v600_v15  ;;  %v552_v19 = vld [vmem:[%s1393_s4 + $0x10] sm:$0xff]  ;;  %v553_v20 = vld [vmem:[%s1393_s4 + $0x18] sm:$0xff]  ;;  %v570_v24 = vld [vmem:[%s1393_s4 + $0xa0] sm:$0xff] }
  0x72   : > { %983 = vmatpush3.bf16.msra.mxu0 %v982_v9  ;;  %v584_v21 = vld [vmem:[%s1393_s4 + $0x110] sm:$0xff]  ;;  %v986_v22 = vpack.c.bf16 %v553_v20, %v552_v19  ;;  %v585_v23 = vld [vmem:[%s1393_s4 + $0x118] sm:$0xff]  ;;  %v571_v25 = vld [vmem:[%s1393_s4 + $0xa8] sm:$0xff] }
  0x73   : > { %1015 = vmatpush3.bf16.msra.mxu1 %v1014_v13  ;;  %985 = vmatprep.subr.bf16.mxu0 %v984_v17  ;;  %v1018_v26 = vpack.c.bf16 %v585_v23, %v584_v21  ;;  %v988_v27 = vpack.c.bf16 %v571_v25, %v570_v24  ;;  %v602_v28 = vld [vmem:[%s1393_s4 + $0x1a0] sm:$0xff]  ;;  %v603_v29 = vld [vmem:[%s1393_s4 + $0x1a8] sm:$0xff]  ;;  %v572_v36 = vld [vmem:[%s1393_s4 + $0xb0] sm:$0xff] }
  0x74   : > { %1017 = vmatprep.subr.bf16.mxu1 %v1016_v18  ;;  %v554_v30 = vld [vmem:[%s1393_s4 + $0x20] sm:$0xff]  ;;  %v1020_v31 = vpack.c.bf16 %v603_v29, %v602_v28  ;;  %v555_v32 = vld [vmem:[%s1393_s4 + $0x28] sm:$0xff]  ;;  %v573_v37 = vld [vmem:[%s1393_s4 + $0xb8] sm:$0xff] }
  0x75   : > { %v586_v33 = vld [vmem:[%s1393_s4 + $0x120] sm:$0xff]  ;;  %v587_v34 = vld [vmem:[%s1393_s4 + $0x128] sm:$0xff]  ;;  %v990_v35 = vpack.c.bf16 %v555_v32, %v554_v30  ;;  %v604_v38 = vld [vmem:[%s1393_s4 + $0x1b0] sm:$0xff]  ;;  %v992_v40 = vpack.c.bf16 %v573_v37, %v572_v36 }
  0x76   : > { %987 = vmatpush3.bf16.msra.mxu0 %v986_v22  ;;  %v1022_v39 = vpack.c.bf16 %v587_v34, %v586_v33  ;;  %v605_v41 = vld [vmem:[%s1393_s4 + $0x1b8] sm:$0xff]  ;;  %v556_v42 = vld [vmem:[%s1393_s4 + $0x30] sm:$0xff]  ;;  %v574_v47 = vld [vmem:[%s1393_s4 + $0xc0] sm:$0xff] }
  0x77   : > { %1019 = vmatpush3.bf16.msra.mxu1 %v1018_v26  ;;  %989 = vmatprep.subr.bf16.mxu0 %v988_v27  ;;  %v557_v43 = vld [vmem:[%s1393_s4 + $0x38] sm:$0xff]  ;;  %v1024_v44 = vpack.c.bf16 %v605_v41, %v604_v38  ;;  %v588_v45 = vld [vmem:[%s1393_s4 + $0x130] sm:$0xff]  ;;  %v575_v48 = vld [vmem:[%s1393_s4 + $0xc8] sm:$0xff] }
  0x78   : > { %1021 = vmatprep.subr.bf16.mxu1 %v1020_v31  ;;  %v589_v46 = vld [vmem:[%s1393_s4 + $0x138] sm:$0xff]  ;;  %v606_v49 = vld [vmem:[%s1393_s4 + $0x1c0] sm:$0xff]  ;;  %v607_v50 = vld [vmem:[%s1393_s4 + $0x1c8] sm:$0xff]  ;;  %v994_v51 = vpack.c.bf16 %v557_v43, %v556_v42  ;;  %v996_v53 = vpack.c.bf16 %v575_v48, %v574_v47 }
  0x79   : > { %v1026_v52 = vpack.c.bf16 %v589_v46, %v588_v45  ;;  %v558_v54 = vld [vmem:[%s1393_s4 + $0x40] sm:$0xff]  ;;  %v559_v55 = vld [vmem:[%s1393_s4 + $0x48] sm:$0xff]  ;;  %v1028_v57 = vpack.c.bf16 %v607_v50, %v606_v49  ;;  %v576_v59 = vld [vmem:[%s1393_s4 + $0xd0] sm:$0xff] }
  0x7a   : > { %991 = vmatpush3.bf16.msra.mxu0 %v990_v35  ;;  %v590_v56 = vld [vmem:[%s1393_s4 + $0x140] sm:$0xff]  ;;  %v591_v58 = vld [vmem:[%s1393_s4 + $0x148] sm:$0xff]  ;;  %v577_v60 = vld [vmem:[%s1393_s4 + $0xd8] sm:$0xff]  ;;  %v998_v63 = vpack.c.bf16 %v559_v55, %v558_v54 }
  0x7b   : > { %1023 = vmatpush3.bf16.msra.mxu1 %v1022_v39  ;;  %993 = vmatprep.subr.bf16.mxu0 %v992_v40  ;;  %v608_v61 = vld [vmem:[%s1393_s4 + $0x1d0] sm:$0xff]  ;;  %v609_v62 = vld [vmem:[%s1393_s4 + $0x1d8] sm:$0xff]  ;;  %v1030_v0 = vpack.c.bf16 %v591_v58, %v590_v56  ;;  %v1000_v1 = vpack.c.bf16 %v577_v60, %v576_v59  ;;  %v578_v7 = vld [vmem:[%s1393_s4 + $0xe0] sm:$0xff] }
  0x7c   : > { %1025 = vmatprep.subr.bf16.mxu1 %v1024_v44  ;;  %v560_v2 = vld [vmem:[%s1393_s4 + $0x50] sm:$0xff]  ;;  %v561_v3 = vld [vmem:[%s1393_s4 + $0x58] sm:$0xff]  ;;  %v1032_v5 = vpack.c.bf16 %v609_v62, %v608_v61  ;;  %v579_v8 = vld [vmem:[%s1393_s4 + $0xe8] sm:$0xff] }
  0x7d   : > { %v592_v4 = vld [vmem:[%s1393_s4 + $0x150] sm:$0xff]  ;;  %v593_v6 = vld [vmem:[%s1393_s4 + $0x158] sm:$0xff]  ;;  %v610_v9 = vld [vmem:[%s1393_s4 + $0x1e0] sm:$0xff]  ;;  %v1002_v11 = vpack.c.bf16 %v561_v3, %v560_v2  ;;  %v1004_v15 = vpack.c.bf16 %v579_v8, %v578_v7 }
  0x7e   : > { %995 = vmatpush3.bf16.msra.mxu0 %v994_v51  ;;  %v611_v10 = vld [vmem:[%s1393_s4 + $0x1e8] sm:$0xff]  ;;  %v562_v12 = vld [vmem:[%s1393_s4 + $0x60] sm:$0xff]  ;;  %v1034_v14 = vpack.c.bf16 %v593_v6, %v592_v4  ;;  %v549_v18 = vld [vmem:[%s1381_s23 + $0x18] sm:$0xff] }
  0x7f   : > { %1027 = vmatpush3.bf16.msra.mxu1 %v1026_v52  ;;  %997 = vmatprep.subr.bf16.mxu0 %v996_v53  ;;  %v563_v13 = vld [vmem:[%s1393_s4 + $0x68] sm:$0xff]  ;;  %v594_v16 = vld [vmem:[%s1393_s4 + $0x160] sm:$0xff]  ;;  %v1036_v19 = vpack.c.bf16 %v611_v10, %v610_v9  ;;  %v580_v21 = vld [vmem:[%s1393_s4 + $0xf0] sm:$0xff] }
  0x80   : > { %1029 = vmatprep.subr.bf16.mxu1 %v1028_v57  ;;  %v547_v17 = vld [vmem:[%s1381_s23 + $0x8] sm:$0xff]  ;;  %v595_v20 = vld [vmem:[%s1393_s4 + $0x168] sm:$0xff]  ;;  %v581_v22 = vld [vmem:[%s1393_s4 + $0xf8] sm:$0xff]  ;;  %748 = vmatprep.mubr.f32.mxu1 %v549_v18  ;;  %v1006_v25 = vpack.c.bf16 %v563_v13, %v562_v12 }
  0x81   : > { %678 = vmatprep.mubr.f32.mxu0 %v547_v17  ;;  %v612_v23 = vld [vmem:[%s1393_s4 + $0x1f0] sm:$0xff]  ;;  %v613_v24 = vld [vmem:[%s1393_s4 + $0x1f8] sm:$0xff]  ;;  %v1038_v26 = vpack.c.bf16 %v595_v20, %v594_v16  ;;  %v1008_v27 = vpack.c.bf16 %v581_v22, %v580_v21  ;;  %v548_v36 = vld [vmem:[%s1381_s23 + $0x10] sm:$0xff] }
  0x82   : > { %999 = vmatpush3.bf16.msra.mxu0 %v998_v63  ;;  %v564_v28 = vld [vmem:[%s1393_s4 + $0x70] sm:$0xff]  ;;  %v565_v29 = vld [vmem:[%s1393_s4 + $0x78] sm:$0xff]  ;;  %v1040_v30 = vpack.c.bf16 %v613_v24, %v612_v23 }
  0x83   : > { %1031 = vmatpush3.bf16.msra.mxu1 %v1030_v0  ;;  %1001 = vmatprep.subr.bf16.mxu0 %v1000_v1  ;;  %v596_v31 = vld [vmem:[%s1393_s4 + $0x170] sm:$0xff]  ;;  %v597_v32 = vld [vmem:[%s1393_s4 + $0x178] sm:$0xff]  ;;  %v1010_v33 = vpack.c.bf16 %v565_v29, %v564_v28 }
  0x84   : > { %1033 = vmatprep.subr.bf16.mxu1 %v1032_v5  ;;  %v1042_v34 = vpack.c.bf16 %v597_v32, %v596_v31  ;;  %v546_v35 = vld [vmem:[%s1381_s23] sm:$0xff] }
  0x85   : > { %v545_v43 = vld [vmem:[#allocation2] sm:$0xff] }
  0x86   : > { %1003 = vmatpush3.bf16.msra.mxu0 %v1002_v11  ;;  %v906_v47 = vld [vmem:[%s531_s27] ss:$0 sm:$0xff] (!%p905_p13) }
  0x87   : > { %1035 = vmatpush3.bf16.msra.mxu1 %v1034_v14  ;;  %1005 = vmatprep.subr.bf16.mxu0 %v1004_v15 }
  0x88   : > { %1037 = vmatprep.subr.bf16.mxu1 %v1036_v19 }
  0x8a   : > { %1007 = vmatpush3.bf16.msra.mxu0 %v1006_v25 }
  0x8b   : > { %1039 = vmatpush3.bf16.msra.mxu1 %v1038_v26  ;;  %1009 = vmatprep.subr.bf16.mxu0 %v1008_v27 }
  0x8c   : > { %1041 = vmatprep.subr.bf16.mxu1 %v1040_v30 }
  0x8e   : > { %1011 = vmatpush3.bf16.msra.mxu0 %v1010_v33 }
  0x8f   : > { %1043 = vmatpush3.bf16.msra.mxu1 %v1042_v34 }
  0x91   : > { %679 = vmatmul.mubr.f32.vlgmr.msra.gmra.mrb[0].mxu0 %v546_v35 }
  0x92   : > { %749 = vmatmul.mubr.f32.vlgmr.msra.gmra.mrb[0].mxu1 %v548_v36 }
 0x164   : > { %v942_v37 = vpop.f32.mrb[0].mxu0 }
 0x165   : > { %v977_v38 = vpop.f32.mrb[0].mxu1  ;;  %v943_v39 = vpop.f32.mrb[1].mxu0 }
 0x166   : > { %v944_v40 = vadd.f32 %v943_v39, %v942_v37  ;;  %v978_v41 = vpop.f32.mrb[1].mxu1 }
 0x167   : > { %v979_v42 = vadd.f32 %v978_v41, %v977_v38  ;;  %759 = sbr.rel (%p905_p13) target bundleno = 379 (0x17b), region = 78 }
 0x169   : > { %v751_v44 = vadd.f32 %v979_v42, %v944_v40 }
 0x16b   : > { %v754_v45 = vadd.f32 %v751_v44, %v545_v43 }
 0x16d   : > { %755 = vst [vmem:[#allocation2] sm:$0xff] %v754_v45 }
 0x174   : > { %v760_v46 = vld [vmem:[#allocation2] sm:$0xff] }
 0x175   : > { %v768_v48 = vadd.f32 %v906_v47, %v760_v46 }
 0x177   : > { %vm769_vm0 = vcmp.gt.f32.partialorder %v768_v48, 0.0  ;;  %v770_v49 = vmul.f32 0.01, %v768_v48 }
 0x179   : > { %v771_v50 = vsel %vm769_vm0, %v768_v48, %v770_v49 }
 0x17a   : > { %772 = vst [vmem:[%s1391_s30] sm:$0xff] %v771_v50 }
 0x17b PF: > { %s13_s18 = sadd.s32 1, %s1155_s18   ;;  %s1496_s12 = smov %s1135_s13 }
 0x17c   : > { %p10_p0 = scmp.ge.s32.totalorder %s13_s18, 10   ;;  %s1497_s13 = smov %s1229_s25 }
 0x17d   : > { %s1498_s14 = smov %s1147_s16  ;;  %s1499_s15 = smov %s1151_s17 }
 0x17e   : > { %s1500_s16 = smov %s1503_s19  ;;  %s1501_s17 = smov %s1507_s20 }
 0x17f   :  { %12 = sbr.rel (!%p10_p0) target bundleno = 4 (0x4), region = 119 }

// kernel: actor_forward.14
= control target key start
LH: loop header
LB: loop body
LE: loop exit
PB: predicated region body
PF: predicated region fallthrough
CT: control target
= control target key end

     0   :  { %s807_s12 = smov 0   ;;  %s809_s13 = smov 0   ;;  %s957_s0 = inlined_call_operand.vmem [shape: f32[8,640], index: 0, kind: input, shape index: {}]   ;;  %s958_s1 = inlined_call_operand.vmem [shape: f32[640,256], index: 1, kind: input, shape index: {}]   ;;  %s959_s2 = inlined_call_operand.vmem [shape: f32[1,256], index: 2, kind: input, shape index: {}]   ;;  %s960_s3 = inlined_call_operand.vmem [shape: f32[8,256], index: 3, kind: output, shape index: {}]  }
   0x1   :  { %s811_s14 = smov 0   ;;  %s813_s15 = smov 0  }
   0x2   :  { %s815_s16 = smov 0   ;;  %s817_s17 = smov 0  }
   0x3   :  { %s819_s18 = smov 0  }
   0x4 LB: > { %s25_s19 = sadd.s32 1, %s773_s16  ;;  %s28_s20 = sadd.s32 1, %s777_s17  ;;  %s781_s18 = sphi %s819_s18, %s13_s18   ;;  %s777_s17 = sphi %s817_s17, %s966_s17   ;;  %s773_s16 = sphi %s815_s16, %s965_s16   ;;  %s769_s15 = sphi %s813_s15, %s964_s15   ;;  %s765_s14 = sphi %s811_s14, %s963_s14   ;;  %s761_s13 = sphi %s809_s13, %s962_s13   ;;  %s757_s12 = sphi %s807_s12, %s961_s12  }
   0x5   : > { %p26_p0 = scmp.ge.s32.totalorder %s25_s19, 5  ;;  %p76_p1 = scmp.ne.s32.totalorder %s761_s13, %s757_s12 }
   0x6   : > { %p77_p2 = scmp.eq.s32.totalorder %s781_s18, 0  ;;  %s69_s24 = sadd.s32 1, %s761_s13 }
   0x7   : > { %s968_s19 = smov (%p26_p0, %s25_s19), 0  ;;  %s970_s20 = smov (!%p26_p0, %s28_s20), %s777_s17 }
   0x8   : > { %p78_p3 = por %p77_p2, %p76_p1  ;;  %p30_p4 = scmp.ge.s32.totalorder %s970_s20, 2 }
   0x9   : > { %s64_s21 = ssub.s32 %s773_s16, %s968_s19  ;;  %p576_p6 = scmp.ge.s32.totalorder %s781_s18, 10 }
   0xa   : > { %s972_s20 = smov (%p30_p4, %s970_s20), 0 }
   0xb   : > { %s65_s22 = ssub.s32 %s777_s17, %s972_s20  ;;  %156 = sbr.rel (%p576_p6) target bundleno = 32 (0x20), region = 16 }
   0xc   : > { %s66_s23 = sor.u32 %s65_s22, %s64_s21 }
   0xd   : > { %p67_p5 = scmp.eq.s32.totalorder %s66_s23, 0 }
   0xf   : > { %s858_s25 = scalar_select %p67_p5, %s761_s13, %s69_s24  }
  0x12   : > { %170 = sbr.rel (!%p78_p3) target bundleno = 32 (0x20), region = 24  ;;  %s172_s26 = sand.u32 (%p78_p3), 1, %s761_s13  }
  0x13   : > { %s590_s27 = sshll.u32 (%p78_p3), %s773_s16, 5  ;;  %s577_s28 = sshll.u32 (%p78_p3), %s172_s26, 7 }
  0x14   : > { %s177_s29 = sadd.s32 (%p78_p3), %s777_s17, %s590_s27  ;;  %s174_s7 = scalar_lea.vmem (%p78_p3), [#allocation3], %s577_s28 }
  0x15   : > { %s580_s30 = sshll.u32 (%p78_p3), %s177_s29, 3 }
  0x16   : > { %s867_s6 = scalar_lea.vmem (%p78_p3), %s958_s1, %s580_s30 }
  0x17   : > { %v237_v0 = vld [vmem:[%s867_s6] sm:$0xff] (%p78_p3)  ;;  %v239_v1 = vld [vmem:[%s867_s6 + $0x10] sm:$0xff] (%p78_p3) }
  0x18   : > { %v241_v2 = vld [vmem:[%s867_s6 + $0x20] sm:$0xff] (%p78_p3)  ;;  %238 = vst [vmem:[%s174_s7] sm:$0xff] (%p78_p3), %v237_v0  ;;  %240 = vst [vmem:[%s174_s7 + $0x8] sm:$0xff] (%p78_p3), %v239_v1  ;;  %v243_v3 = vld [vmem:[%s867_s6 + $0x30] sm:$0xff] (%p78_p3) }
  0x19   : > { %242 = vst [vmem:[%s174_s7 + $0x10] sm:$0xff] %v241_v2  ;;  %v245_v4 = vld [vmem:[%s867_s6 + $0x40] sm:$0xff]  ;;  %v247_v5 = vld [vmem:[%s867_s6 + $0x50] sm:$0xff]  ;;  %244 = vst [vmem:[%s174_s7 + $0x18] sm:$0xff] %v243_v3 }
  0x1a   : > { %246 = vst [vmem:[%s174_s7 + $0x20] sm:$0xff] %v245_v4  ;;  %248 = vst [vmem:[%s174_s7 + $0x28] sm:$0xff] %v247_v5  ;;  %v249_v6 = vld [vmem:[%s867_s6 + $0x60] sm:$0xff]  ;;  %v251_v7 = vld [vmem:[%s867_s6 + $0x70] sm:$0xff] }
  0x1b   : > { %v253_v8 = vld [vmem:[%s867_s6 + $0x80] sm:$0xff]  ;;  %250 = vst [vmem:[%s174_s7 + $0x30] sm:$0xff] %v249_v6  ;;  %252 = vst [vmem:[%s174_s7 + $0x38] sm:$0xff] %v251_v7  ;;  %v255_v9 = vld [vmem:[%s867_s6 + $0x90] sm:$0xff] }
  0x1c   : > { %254 = vst [vmem:[%s174_s7 + $0x40] sm:$0xff] %v253_v8  ;;  %v257_v10 = vld [vmem:[%s867_s6 + $0xa0] sm:$0xff]  ;;  %v259_v11 = vld [vmem:[%s867_s6 + $0xb0] sm:$0xff]  ;;  %256 = vst [vmem:[%s174_s7 + $0x48] sm:$0xff] %v255_v9 }
  0x1d   : > { %258 = vst [vmem:[%s174_s7 + $0x50] sm:$0xff] %v257_v10  ;;  %260 = vst [vmem:[%s174_s7 + $0x58] sm:$0xff] %v259_v11  ;;  %v261_v12 = vld [vmem:[%s867_s6 + $0xc0] sm:$0xff]  ;;  %v263_v13 = vld [vmem:[%s867_s6 + $0xd0] sm:$0xff] }
  0x1e   : > { %v265_v14 = vld [vmem:[%s867_s6 + $0xe0] sm:$0xff]  ;;  %262 = vst [vmem:[%s174_s7 + $0x60] sm:$0xff] %v261_v12  ;;  %264 = vst [vmem:[%s174_s7 + $0x68] sm:$0xff] %v263_v13  ;;  %v267_v15 = vld [vmem:[%s867_s6 + $0xf0] sm:$0xff] }
  0x1f   : > { %266 = vst [vmem:[%s174_s7 + $0x70] sm:$0xff] %v265_v14  ;;  %268 = vst [vmem:[%s174_s7 + $0x78] sm:$0xff] %v267_v15 }
  0x20 PF: > { %p581_p7 = scmp.ge.s32.totalorder %s781_s18, 1  ;;  %p279_p8 = scmp.lt.s32.totalorder %s781_s18, 11 }
  0x22   : > { %p280_p9 = pnand %p581_p7, %p279_p8 }
  0x23   : > { %s286_s8 = sand.u32 (!%p280_p9), 1, %s757_s12   ;;  %p325_p10 = scmp.lt.s32.totalorder (!%p280_p9), %s765_s14, 4 }
  0x24   : > { %283 = sbr.rel (%p280_p9) target bundleno = 313 (0x139), region = 66  ;;  %s582_s9 = sshll.u32 (!%p280_p9), %s286_s8, 7 }
  0x25   : > { %p332_p11 = scmp.lt.s32.totalorder (!%p280_p9), %s769_s15, 1  ;;  %s909_s4 = scalar_lea.vmem (!%p280_p9), [#allocation3], %s582_s9 }
  0x26   : > { %p585_p12 = scmp.ne.s32.totalorder (!%p280_p9), %s765_s14, 0 }
  0x2b   : > { %s326_s10 = scalar_select %p325_p10, %s765_s14, 4 }
  0x2c   : > { %s974_s15 = smov (!%p332_p11, %s769_s15), 1  ;;  %346 = sbr.rel (%p585_p12) target bundleno = 51 (0x33), region = 74 }
  0x2d   : > { %s583_s11 = sshll.u32 %s326_s10, 3  ;;  %s334_s27 = scalar_lea.vmem %s959_s2, %s974_s15  ;;  %v783_v16 = vmov (!%p585_p12), 0.0  }
  0x2e   : > { %s897_s23 = scalar_lea.vmem %s957_s0, %s583_s11  ;;  %s584_s28 = sshll.u32 %s974_s15, 3  ;;  %347 = vst [vmem:[#allocation2] sm:$0xff] (!%p585_p12), %v783_v16 }
  0x2f   : > { %s907_s30 = scalar_lea.vmem %s960_s3, %s584_s28 }
  0x33 PF: > { %v350_v17 = vld [vmem:[%s909_s4] sm:$0xff]  ;;  %v351_v18 = vld [vmem:[%s909_s4 + $0x8] sm:$0xff]  ;;  %v352_v19 = vld [vmem:[%s909_s4 + $0x10] sm:$0xff]  ;;  %v784_v20 = vmov 0.0|0.0   ;;  %vm785_vm0 = vmmov 0   ;;  %v786_v23 = vmov 0.0  }
  0x34   : > { %643 = vmatprep.subr.bf16.mxu0 %v784_v20  ;;  %v644_v21 = vpack.c.bf16 %v351_v18, %v350_v17  ;;  %v353_v22 = vld [vmem:[%s909_s4 + $0x18] sm:$0xff]  ;;  %640 = vmatprep.mubr.msk.f32.mxu0 %vm785_vm0, %v786_v23  ;;  %v354_v25 = vld [vmem:[%s909_s4 + $0x20] sm:$0xff]  ;;  %v355_v26 = vld [vmem:[%s909_s4 + $0x28] sm:$0xff]  ;;  %p586_p13 = scmp.ne.s32.totalorder %s765_s14, 4 }
  0x35   : > { %v647_v24 = vpack.c.bf16 %v353_v22, %v352_v19  ;;  %v650_v27 = vpack.c.bf16 %v355_v26, %v354_v25  ;;  %v356_v28 = vld [vmem:[%s909_s4 + $0x30] sm:$0xff]  ;;  %v357_v29 = vld [vmem:[%s909_s4 + $0x38] sm:$0xff]  ;;  %v358_v31 = vld [vmem:[%s909_s4 + $0x40] sm:$0xff] }
  0x36   : > { %645 = vmatpush3.bf16.msra.mxu0 %v644_v21  ;;  %v653_v30 = vpack.c.bf16 %v357_v29, %v356_v28  ;;  %v359_v32 = vld [vmem:[%s909_s4 + $0x48] sm:$0xff]  ;;  %v360_v34 = vld [vmem:[%s909_s4 + $0x50] sm:$0xff]  ;;  %v361_v35 = vld [vmem:[%s909_s4 + $0x58] sm:$0xff] }
  0x37   : > { %646 = vmatprep.subr.bf16.mxu0 %v784_v20  ;;  %v656_v33 = vpack.c.bf16 %v359_v32, %v358_v31  ;;  %v659_v36 = vpack.c.bf16 %v361_v35, %v360_v34  ;;  %v362_v37 = vld [vmem:[%s909_s4 + $0x60] sm:$0xff]  ;;  %v363_v38 = vld [vmem:[%s909_s4 + $0x68] sm:$0xff]  ;;  %v364_v40 = vld [vmem:[%s909_s4 + $0x70] sm:$0xff] }
  0x38   : > { %v662_v39 = vpack.c.bf16 %v363_v38, %v362_v37  ;;  %v365_v41 = vld [vmem:[%s909_s4 + $0x78] sm:$0xff] }
  0x39   : > { %v665_v42 = vpack.c.bf16 %v365_v41, %v364_v40  ;;  %v349_v43 = vld [vmem:[%s897_s23] sm:$0xff] }
  0x3a   : > { %648 = vmatpush3.bf16.msra.mxu0 %v647_v24  ;;  %v348_v44 = vld [vmem:[#allocation2] sm:$0xff] }
  0x3b   : > { %649 = vmatprep.subr.bf16.mxu0 %v784_v20  ;;  %v587_v49 = vld [vmem:[%s334_s27] ss:$0 sm:$0xff] (!%p586_p13) }
  0x3e   : > { %651 = vmatpush3.bf16.msra.mxu0 %v650_v27 }
  0x3f   : > { %652 = vmatprep.subr.bf16.mxu0 %v784_v20 }
  0x42   : > { %654 = vmatpush3.bf16.msra.mxu0 %v653_v30 }
  0x43   : > { %655 = vmatprep.subr.bf16.mxu0 %v784_v20 }
  0x46   : > { %657 = vmatpush3.bf16.msra.mxu0 %v656_v33 }
  0x47   : > { %658 = vmatprep.subr.bf16.mxu0 %v784_v20 }
  0x4a   : > { %660 = vmatpush3.bf16.msra.mxu0 %v659_v36 }
  0x4b   : > { %661 = vmatprep.subr.bf16.mxu0 %v784_v20 }
  0x4e   : > { %663 = vmatpush3.bf16.msra.mxu0 %v662_v39 }
  0x4f   : > { %664 = vmatprep.subr.bf16.mxu0 %v784_v20 }
  0x52   : > { %666 = vmatpush3.bf16.msra.mxu0 %v665_v42 }
  0x55   : > { %641 = vmatmul.mubr.f32.vlgmr.msra.gmra.mrb[0].mxu0 %v349_v43 }
 0x125   : > { %441 = sbr.rel (%p586_p13) target bundleno = 313 (0x139), region = 78 }
 0x128   : > { %v432_v45 = vpop.f32.mrb[0].mxu0 }
 0x129   : > { %v436_v46 = vadd.f32 %v432_v45, %v348_v44  ;;  %v642_v47 = vpop.f32.mrb[1].mxu0 }
 0x12b   : > { %437 = vst [vmem:[#allocation2] sm:$0xff] %v436_v46 }
 0x132   : > { %v442_v48 = vld [vmem:[#allocation2] sm:$0xff] }
 0x133   : > { %v450_v50 = vadd.f32 %v587_v49, %v442_v48 }
 0x135   : > { %vm451_vm1 = vcmp.gt.f32.partialorder %v450_v50, 0.0  ;;  %v452_v51 = vmul.f32 0.01, %v450_v50 }
 0x137   : > { %v453_v52 = vsel %vm451_vm1, %v450_v50, %v452_v51 }
 0x138   : > { %454 = vst [vmem:[%s907_s30] sm:$0xff] %v453_v52 }
 0x139 PF: > { %s13_s18 = sadd.s32 1, %s781_s18   ;;  %s961_s12 = smov %s761_s13 }
 0x13a   : > { %p10_p0 = scmp.ge.s32.totalorder %s13_s18, 12   ;;  %s962_s13 = smov %s858_s25 }
 0x13b   : > { %s963_s14 = smov %s773_s16  ;;  %s964_s15 = smov %s777_s17 }
 0x13c   : > { %s965_s16 = smov %s968_s19  ;;  %s966_s17 = smov %s972_s20 }
 0x13d   :  { %12 = sbr.rel (!%p10_p0) target bundleno = 4 (0x4), region = 119 }

// kernel: actor_forward.13
= control target key start
LH: loop header
LB: loop body
LE: loop exit
PB: predicated region body
PF: predicated region fallthrough
CT: control target
= control target key end

     0   :  { %v209_v0 = vmov 0.0|0.0   ;;  %vm210_vm0 = vmmov 0   ;;  %v211_v4 = vmov 0.0   ;;  %s289_s1 = inlined_call_operand.vmem [shape: f32[128,128], index: 1, kind: input, shape index: {}]   ;;  %s290_s0 = inlined_call_operand.vmem [shape: f32[8,128], index: 0, kind: input, shape index: {}]   ;;  %s291_s2 = inlined_call_operand.vmem [shape: f32[1,128], index: 2, kind: input, shape index: {}]   ;;  %s292_s3 = inlined_call_operand.vmem [shape: f32[8,128], index: 3, kind: output, shape index: {}]  }
   0x1   :  { %182 = vmatprep.subr.bf16.mxu0 %v209_v0  ;;  %v21_v1 = vld [vmem:[%s289_s1] sm:$0xff]  ;;  %v22_v2 = vld [vmem:[%s289_s1 + $0x8] sm:$0xff]  ;;  %v23_v3 = vld [vmem:[%s289_s1 + $0x10] sm:$0xff]  ;;  %179 = vmatprep.mubr.msk.f32.mxu0 %vm210_vm0, %v211_v4 }
   0x2   :  { %v183_v5 = vpack.c.bf16 %v22_v2, %v21_v1  ;;  %v24_v6 = vld [vmem:[%s289_s1 + $0x18] sm:$0xff]  ;;  %v25_v8 = vld [vmem:[%s289_s1 + $0x20] sm:$0xff]  ;;  %v26_v9 = vld [vmem:[%s289_s1 + $0x28] sm:$0xff] }
   0x3   :  { %v186_v7 = vpack.c.bf16 %v24_v6, %v23_v3  ;;  %v189_v10 = vpack.c.bf16 %v26_v9, %v25_v8  ;;  %v27_v11 = vld [vmem:[%s289_s1 + $0x30] sm:$0xff]  ;;  %v28_v12 = vld [vmem:[%s289_s1 + $0x38] sm:$0xff]  ;;  %v29_v14 = vld [vmem:[%s289_s1 + $0x40] sm:$0xff] }
   0x4   :  { %184 = vmatpush3.bf16.msra.mxu0 %v183_v5  ;;  %v192_v13 = vpack.c.bf16 %v28_v12, %v27_v11  ;;  %v30_v15 = vld [vmem:[%s289_s1 + $0x48] sm:$0xff]  ;;  %v31_v17 = vld [vmem:[%s289_s1 + $0x50] sm:$0xff]  ;;  %v32_v18 = vld [vmem:[%s289_s1 + $0x58] sm:$0xff] }
   0x5   :  { %185 = vmatprep.subr.bf16.mxu0 %v209_v0  ;;  %v195_v16 = vpack.c.bf16 %v30_v15, %v29_v14  ;;  %v198_v19 = vpack.c.bf16 %v32_v18, %v31_v17  ;;  %v33_v20 = vld [vmem:[%s289_s1 + $0x60] sm:$0xff]  ;;  %v34_v21 = vld [vmem:[%s289_s1 + $0x68] sm:$0xff]  ;;  %v35_v23 = vld [vmem:[%s289_s1 + $0x70] sm:$0xff] }
   0x6   :  { %v201_v22 = vpack.c.bf16 %v34_v21, %v33_v20  ;;  %v36_v24 = vld [vmem:[%s289_s1 + $0x78] sm:$0xff]  ;;  %v20_v26 = vld [vmem:[%s290_s0] sm:$0xff] }
   0x7   :  { %v204_v25 = vpack.c.bf16 %v36_v24, %v35_v23  ;;  %v129_v27 = vld [vmem:[%s291_s2] ss:$0 sm:$0xff] }
   0x8   :  { %187 = vmatpush3.bf16.msra.mxu0 %v186_v7 }
   0x9   :  { %188 = vmatprep.subr.bf16.mxu0 %v209_v0 }
   0xc   :  { %190 = vmatpush3.bf16.msra.mxu0 %v189_v10 }
   0xd   :  { %191 = vmatprep.subr.bf16.mxu0 %v209_v0 }
  0x10   :  { %193 = vmatpush3.bf16.msra.mxu0 %v192_v13 }
  0x11   :  { %194 = vmatprep.subr.bf16.mxu0 %v209_v0 }
  0x14   :  { %196 = vmatpush3.bf16.msra.mxu0 %v195_v16 }
  0x15   :  { %197 = vmatprep.subr.bf16.mxu0 %v209_v0 }
  0x18   :  { %199 = vmatpush3.bf16.msra.mxu0 %v198_v19 }
  0x19   :  { %200 = vmatprep.subr.bf16.mxu0 %v209_v0 }
  0x1c   :  { %202 = vmatpush3.bf16.msra.mxu0 %v201_v22 }
  0x1d   :  { %203 = vmatprep.subr.bf16.mxu0 %v209_v0 }
  0x20   :  { %205 = vmatpush3.bf16.msra.mxu0 %v204_v25 }
  0x23   :  { %180 = vmatmul.mubr.f32.vlgmr.msra.gmra.mrb[0].mxu0 %v20_v26 }
  0xf6   :  { %v103_v28 = vpop.f32.mrb[0].mxu0 }
  0xf7   :  { %v120_v29 = vadd.f32 %v129_v27, %v103_v28  ;;  %v181_v30 = vpop.f32.mrb[1].mxu0 }
  0xf9   :  { %vm121_vm1 = vcmp.gt.f32.partialorder %v120_v29, 0.0  ;;  %v122_v31 = vmul.f32 0.01, %v120_v29 }
  0xfb   :  { %v123_v32 = vsel %vm121_vm1, %v120_v29, %v122_v31 }
  0xfc   :  { %124 = vst [vmem:[%s292_s3] sm:$0xff] %v123_v32 }

// kernel: actor_forward.15
= control target key start
LH: loop header
LB: loop body
LE: loop exit
PB: predicated region body
PF: predicated region fallthrough
CT: control target
= control target key end

     0   :  { %s342_s1 = inlined_call_operand.vmem [shape: f32[256,128], index: 1, kind: input, shape index: {}]   ;;  %s343_s0 = inlined_call_operand.vmem [shape: f32[8,256], index: 0, kind: input, shape index: {}]   ;;  %s344_s2 = inlined_call_operand.vmem [shape: f32[1,128], index: 2, kind: input, shape index: {}]   ;;  %s345_s3 = inlined_call_operand.vmem [shape: f32[8,128], index: 3, kind: output, shape index: {}]  }
   0x1   :  { %v38_v0 = vld [vmem:[%s342_s1 + $0x80] sm:$0xff]  ;;  %v39_v1 = vld [vmem:[%s342_s1 + $0x88] sm:$0xff]  ;;  %v40_v5 = vld [vmem:[%s342_s1 + $0x90] sm:$0xff] }
   0x2   :  { %v22_v2 = vld [vmem:[%s342_s1] sm:$0xff]  ;;  %v182_v3 = vpack.c.bf16 %v39_v1, %v38_v0  ;;  %v23_v4 = vld [vmem:[%s342_s1 + $0x8] sm:$0xff]  ;;  %v41_v6 = vld [vmem:[%s342_s1 + $0x98] sm:$0xff] }
   0x3   :  { %v184_v7 = vpack.c.bf16 %v23_v4, %v22_v2  ;;  %v186_v8 = vpack.c.bf16 %v41_v6, %v40_v5  ;;  %v24_v9 = vld [vmem:[%s342_s1 + $0x10] sm:$0xff]  ;;  %v25_v10 = vld [vmem:[%s342_s1 + $0x18] sm:$0xff]  ;;  %v42_v11 = vld [vmem:[%s342_s1 + $0xa0] sm:$0xff] }
   0x4   :  { %183 = vmatprep.subr.bf16.mxu0 %v182_v3  ;;  %v43_v12 = vld [vmem:[%s342_s1 + $0xa8] sm:$0xff]  ;;  %v188_v13 = vpack.c.bf16 %v25_v10, %v24_v9  ;;  %v26_v15 = vld [vmem:[%s342_s1 + $0x20] sm:$0xff]  ;;  %v44_v17 = vld [vmem:[%s342_s1 + $0xb0] sm:$0xff] }
   0x5   :  { %185 = vmatpush3.bf16.msra.mxu0 %v184_v7  ;;  %v190_v14 = vpack.c.bf16 %v43_v12, %v42_v11  ;;  %v27_v16 = vld [vmem:[%s342_s1 + $0x28] sm:$0xff]  ;;  %v45_v18 = vld [vmem:[%s342_s1 + $0xb8] sm:$0xff]  ;;  %v28_v21 = vld [vmem:[%s342_s1 + $0x30] sm:$0xff] }
   0x6   :  { %187 = vmatprep.subr.bf16.mxu0 %v186_v8  ;;  %v192_v19 = vpack.c.bf16 %v27_v16, %v26_v15  ;;  %v194_v20 = vpack.c.bf16 %v45_v18, %v44_v17  ;;  %v29_v22 = vld [vmem:[%s342_s1 + $0x38] sm:$0xff]  ;;  %v46_v23 = vld [vmem:[%s342_s1 + $0xc0] sm:$0xff]  ;;  %v47_v24 = vld [vmem:[%s342_s1 + $0xc8] sm:$0xff] }
   0x7   :  { %v21_v25 = vld [vmem:[%s343_s0 + $0x8] sm:$0xff]  ;;  %v196_v26 = vpack.c.bf16 %v29_v22, %v28_v21  ;;  %v198_v27 = vpack.c.bf16 %v47_v24, %v46_v23  ;;  %v30_v28 = vld [vmem:[%s342_s1 + $0x40] sm:$0xff]  ;;  %v48_v30 = vld [vmem:[%s342_s1 + $0xd0] sm:$0xff] }
   0x8   :  { %118 = vmatprep.mubr.f32.mxu0 %v21_v25  ;;  %v31_v29 = vld [vmem:[%s342_s1 + $0x48] sm:$0xff]  ;;  %v49_v31 = vld [vmem:[%s342_s1 + $0xd8] sm:$0xff]  ;;  %v32_v34 = vld [vmem:[%s342_s1 + $0x50] sm:$0xff] }
   0x9   :  { %189 = vmatpush3.bf16.msra.mxu0 %v188_v13  ;;  %v200_v32 = vpack.c.bf16 %v31_v29, %v30_v28  ;;  %v202_v33 = vpack.c.bf16 %v49_v31, %v48_v30  ;;  %v33_v35 = vld [vmem:[%s342_s1 + $0x58] sm:$0xff]  ;;  %v50_v36 = vld [vmem:[%s342_s1 + $0xe0] sm:$0xff]  ;;  %v51_v37 = vld [vmem:[%s342_s1 + $0xe8] sm:$0xff] }
   0xa   :  { %191 = vmatprep.subr.bf16.mxu0 %v190_v14  ;;  %v204_v38 = vpack.c.bf16 %v33_v35, %v32_v34  ;;  %v206_v39 = vpack.c.bf16 %v51_v37, %v50_v36  ;;  %v34_v40 = vld [vmem:[%s342_s1 + $0x60] sm:$0xff]  ;;  %v35_v41 = vld [vmem:[%s342_s1 + $0x68] sm:$0xff]  ;;  %v52_v42 = vld [vmem:[%s342_s1 + $0xf0] sm:$0xff] }
   0xb   :  { %v53_v43 = vld [vmem:[%s342_s1 + $0xf8] sm:$0xff]  ;;  %v208_v44 = vpack.c.bf16 %v35_v41, %v34_v40  ;;  %v36_v46 = vld [vmem:[%s342_s1 + $0x70] sm:$0xff]  ;;  %v20_v49 = vld [vmem:[%s343_s0] sm:$0xff] }
   0xc   :  { %v210_v45 = vpack.c.bf16 %v53_v43, %v52_v42  ;;  %v37_v47 = vld [vmem:[%s342_s1 + $0x78] sm:$0xff]  ;;  %v146_v52 = vld [vmem:[%s344_s2] ss:$0 sm:$0xff] }
   0xd   :  { %193 = vmatpush3.bf16.msra.mxu0 %v192_v19  ;;  %v212_v48 = vpack.c.bf16 %v37_v47, %v36_v46 }
   0xe   :  { %195 = vmatprep.subr.bf16.mxu0 %v194_v20 }
  0x11   :  { %197 = vmatpush3.bf16.msra.mxu0 %v196_v26 }
  0x12   :  { %199 = vmatprep.subr.bf16.mxu0 %v198_v27 }
  0x15   :  { %201 = vmatpush3.bf16.msra.mxu0 %v200_v32 }
  0x16   :  { %203 = vmatprep.subr.bf16.mxu0 %v202_v33 }
  0x19   :  { %205 = vmatpush3.bf16.msra.mxu0 %v204_v38 }
  0x1a   :  { %207 = vmatprep.subr.bf16.mxu0 %v206_v39 }
  0x1d   :  { %209 = vmatpush3.bf16.msra.mxu0 %v208_v44 }
  0x1e   :  { %211 = vmatprep.subr.bf16.mxu0 %v210_v45 }
  0x21   :  { %213 = vmatpush3.bf16.msra.mxu0 %v212_v48 }
  0x24   :  { %119 = vmatmul.mubr.f32.vlgmr.msra.gmra.mrb[0].mxu0 %v20_v49 }
  0xf7   :  { %v179_v50 = vpop.f32.mrb[0].mxu0 }
  0xf8   :  { %v180_v51 = vpop.f32.mrb[1].mxu0 }
  0xf9   :  { %v181_v53 = vadd.f32 %v180_v51, %v179_v50 }
  0xfb   :  { %v137_v54 = vadd.f32 %v181_v53, %v146_v52 }
  0xfd   :  { %vm138_vm0 = vcmp.gt.f32.partialorder %v137_v54, 0.0  ;;  %v139_v55 = vmul.f32 0.01, %v137_v54 }
  0xff   :  { %v140_v56 = vsel %vm138_vm0, %v137_v54, %v139_v55 }
 0x100   :  { %141 = vst [vmem:[%s345_s3] sm:$0xff] %v140_v56 }

// kernel: actor_forward.17
= control target key start
LH: loop header
LB: loop body
LE: loop exit
PB: predicated region body
PF: predicated region fallthrough
CT: control target
= control target key end

     0   :  { %v211_v0 = vmov 0.0|0.0   ;;  %vm212_vm0 = vmmov 0   ;;  %v213_v4 = vmov 0.0   ;;  %s291_s1 = inlined_call_operand.vmem [shape: f32[128,128], index: 1, kind: input, shape index: {}]   ;;  %s292_s0 = inlined_call_operand.vmem [shape: f32[8,128], index: 0, kind: input, shape index: {}]   ;;  %s293_s2 = inlined_call_operand.vmem [shape: f32[1,128], index: 2, kind: input, shape index: {}]   ;;  %s294_s3 = inlined_call_operand.vmem [shape: f32[8,128], index: 3, kind: output, shape index: {}]  }
   0x1   :  { %182 = vmatprep.subr.bf16.mxu0 %v211_v0  ;;  %v21_v1 = vld [vmem:[%s291_s1] sm:$0xff]  ;;  %v22_v2 = vld [vmem:[%s291_s1 + $0x8] sm:$0xff]  ;;  %v23_v3 = vld [vmem:[%s291_s1 + $0x10] sm:$0xff]  ;;  %179 = vmatprep.mubr.msk.f32.mxu0 %vm212_vm0, %v213_v4 }
   0x2   :  { %v183_v5 = vpack.c.bf16 %v22_v2, %v21_v1  ;;  %v24_v6 = vld [vmem:[%s291_s1 + $0x18] sm:$0xff]  ;;  %v25_v8 = vld [vmem:[%s291_s1 + $0x20] sm:$0xff]  ;;  %v26_v9 = vld [vmem:[%s291_s1 + $0x28] sm:$0xff] }
   0x3   :  { %v186_v7 = vpack.c.bf16 %v24_v6, %v23_v3  ;;  %v189_v10 = vpack.c.bf16 %v26_v9, %v25_v8  ;;  %v27_v11 = vld [vmem:[%s291_s1 + $0x30] sm:$0xff]  ;;  %v28_v12 = vld [vmem:[%s291_s1 + $0x38] sm:$0xff]  ;;  %v29_v14 = vld [vmem:[%s291_s1 + $0x40] sm:$0xff] }
   0x4   :  { %184 = vmatpush3.bf16.msra.mxu0 %v183_v5  ;;  %v192_v13 = vpack.c.bf16 %v28_v12, %v27_v11  ;;  %v30_v15 = vld [vmem:[%s291_s1 + $0x48] sm:$0xff]  ;;  %v31_v17 = vld [vmem:[%s291_s1 + $0x50] sm:$0xff]  ;;  %v32_v18 = vld [vmem:[%s291_s1 + $0x58] sm:$0xff] }
   0x5   :  { %185 = vmatprep.subr.bf16.mxu0 %v211_v0  ;;  %v195_v16 = vpack.c.bf16 %v30_v15, %v29_v14  ;;  %v198_v19 = vpack.c.bf16 %v32_v18, %v31_v17  ;;  %v33_v20 = vld [vmem:[%s291_s1 + $0x60] sm:$0xff]  ;;  %v34_v21 = vld [vmem:[%s291_s1 + $0x68] sm:$0xff]  ;;  %v35_v23 = vld [vmem:[%s291_s1 + $0x70] sm:$0xff] }
   0x6   :  { %v201_v22 = vpack.c.bf16 %v34_v21, %v33_v20  ;;  %v36_v24 = vld [vmem:[%s291_s1 + $0x78] sm:$0xff]  ;;  %v20_v26 = vld [vmem:[%s292_s0] sm:$0xff] }
   0x7   :  { %v204_v25 = vpack.c.bf16 %v36_v24, %v35_v23  ;;  %v129_v27 = vld [vmem:[%s293_s2] ss:$0 sm:$0xff] }
   0x8   :  { %187 = vmatpush3.bf16.msra.mxu0 %v186_v7 }
   0x9   :  { %188 = vmatprep.subr.bf16.mxu0 %v211_v0 }
   0xc   :  { %190 = vmatpush3.bf16.msra.mxu0 %v189_v10 }
   0xd   :  { %191 = vmatprep.subr.bf16.mxu0 %v211_v0 }
  0x10   :  { %193 = vmatpush3.bf16.msra.mxu0 %v192_v13 }
  0x11   :  { %194 = vmatprep.subr.bf16.mxu0 %v211_v0 }
  0x14   :  { %196 = vmatpush3.bf16.msra.mxu0 %v195_v16 }
  0x15   :  { %197 = vmatprep.subr.bf16.mxu0 %v211_v0 }
  0x18   :  { %199 = vmatpush3.bf16.msra.mxu0 %v198_v19 }
  0x19   :  { %200 = vmatprep.subr.bf16.mxu0 %v211_v0 }
  0x1c   :  { %202 = vmatpush3.bf16.msra.mxu0 %v201_v22 }
  0x1d   :  { %203 = vmatprep.subr.bf16.mxu0 %v211_v0 }
  0x20   :  { %205 = vmatpush3.bf16.msra.mxu0 %v204_v25 }
  0x23   :  { %180 = vmatmul.mubr.f32.vlgmr.msra.gmra.mrb[0].mxu0 %v20_v26 }
  0xf6   :  { %v103_v28 = vpop.f32.mrb[0].mxu0 }
  0xf7   :  { %v120_v29 = vadd.f32 %v129_v27, %v103_v28  ;;  %v181_v30 = vpop.f32.mrb[1].mxu0 }
  0xf9   :  { %209 = vtanh.f32 %v120_v29 }
 0x103   :  { %v210_v31 = vpop.eup %209 }
 0x104   :  { %v122_v32 = vmul.f32 0.5, %v210_v31 }
 0x106   :  { %v123_v33 = vadd.f32 0.5, %v122_v32 }
 0x108   :  { %124 = vst [vmem:[%s294_s3] sm:$0xff] %v123_v33 }

</bundles_post_ra>
